<compile_context>
chip_gen: v7x
topology: tpu7x:2x2x1
jax: 0.10.0
libtpu: 0.0.40
codegen_flags: <defaults>
</compile_context>

<pallas_src>
import functools

import numpy as np
import jax
import jax.numpy as jnp
from jax.experimental import pallas as pl
from jax.experimental.pallas import tpu as pltpu


# ----------------------------------------------------------------------------
# Operator construction (wrapper side, done once at model-prep time)
# ----------------------------------------------------------------------------
def _conv2d_s2_operator(weight, H, W):
    """Conv2d(k=3, s=2, p=1) as a dense matrix acting on NCHW-flattened vectors.

    weight: (Cout, Cin, 3, 3).  Returns (M, Ho, Wo) with M of shape
    (Cin*H*W, Cout*Ho*Wo), so that  y_flat = x_flat @ M  (bias handled apart).
    """
    Cout, Cin, KH, KW = weight.shape
    Ho = (H - 1) // 2 + 1
    Wo = (W - 1) // 2 + 1
    S = np.zeros((KH * KW, H * W, Ho * Wo), np.float32)
    for kh in range(KH):
        for kw in range(KW):
            k = kh * KW + kw
            for oh in range(Ho):
                ih = 2 * oh + kh - 1
                if ih < 0 or ih >= H:
                    continue
                for ow in range(Wo):
                    iw = 2 * ow + kw - 1
                    if iw < 0 or iw >= W:
                        continue
                    S[k, ih * W + iw, oh * Wo + ow] = 1.0
    Wr = weight.reshape(Cout, Cin, KH * KW)                       # (o, c, k)
    M = jnp.einsum("kpq,ock->cpoq", jnp.asarray(S), Wr,
                   precision=jax.lax.Precision.HIGHEST)           # (c, p, o, q)
    return M.reshape(Cin * H * W, Cout * Ho * Wo), Ho, Wo


def _conv_transpose2d_s2_operator(weight, H, W):
    """ConvTranspose2d(k=2, s=2) as a dense matrix on NCHW-flattened vectors.

    weight: (Cin, Cout, 2, 2).  Returns (M, 2H, 2W) with M of shape
    (Cin*H*W, Cout*2H*2W); the depth-to-space shuffle is folded into M.
    """
    Cin, Cout, KH, KW = weight.shape
    Ho, Wo = 2 * H, 2 * W
    T = np.zeros((KH * KW, H * W, Ho * Wo), np.float32)
    for a in range(KH):
        for b in range(KW):
            k = a * KW + b
            for ih in range(H):
                for iw in range(W):
                    T[k, ih * W + iw, (2 * ih + a) * Wo + (2 * iw + b)] = 1.0
    Wr = weight.reshape(Cin, Cout, KH * KW)                       # (c, o, k)
    M = jnp.einsum("kpq,cok->cpoq", jnp.asarray(T), Wr,
                   precision=jax.lax.Precision.HIGHEST)
    return M.reshape(Cin * H * W, Cout * Ho * Wo), Ho, Wo


# ----------------------------------------------------------------------------
# Fused Pallas kernel: entire forward pass (one batch tile per grid step)
# ----------------------------------------------------------------------------
def _fused_forward_kernel(*refs, n_enc, n_dec, head_splits, training,
                          compute_dtype):
    n_trunk = n_enc + n_dec
    x_ref = refs[0]
    trunk_refs = refs[1:1 + 2 * n_trunk]                  # (W, b) per layer
    fc_w_ref = refs[1 + 2 * n_trunk]
    fc_b_ref = refs[2 + 2 * n_trunk]
    out_ae_ref = refs[3 + 2 * n_trunk]
    out_cls_ref = refs[4 + 2 * n_trunk]

    # ---- encoder + decoder trunk: chain of lane-dense MXU matmuls ----------
    h = x_ref[...]                                        # already bf16
    latent = None
    for i in range(n_trunk):
        w = trunk_refs[2 * i][...]                        # (Din, Dout) bf16
        b = trunk_refs[2 * i + 1][...]                    # (1, Dout)  f32
        y = jnp.dot(h, w, preferred_element_type=jnp.float32) + b
        if i == n_trunk - 1:
            # last decoder layer: sigmoid, write autoencoder output
            out_ae_ref[...] = jax.nn.sigmoid(y).astype(out_ae_ref.dtype)
        else:
            h = jnp.maximum(y, 0.0).astype(compute_dtype)   # f32 ReLU -> bf16
            if i == n_enc - 1:
                latent = h                                  # NCHW-flattened latent

    # ---- merged classification heads: one matmul, one packed store ---------
    logits = (jnp.dot(latent, fc_w_ref[...],
                      preferred_element_type=jnp.float32) + fc_b_ref[...])
    if training:
        out_cls_ref[...] = logits.astype(out_cls_ref.dtype)
        return

    # Per-head softmax on the packed logits via lane masks (no value slicing).
    col = jax.lax.broadcasted_iota(jnp.int32, logits.shape, 1)
    probs = jnp.zeros_like(logits)
    off = 0
    for nc in head_splits:
        mask = (col >= off) & (col < off + nc)
        z = jnp.where(mask, logits, -jnp.inf)
        m = jnp.max(z, axis=-1, keepdims=True)
        e = jnp.exp(jnp.where(mask, logits - m, -jnp.inf))   # exp(-inf) = 0
        s = jnp.sum(e, axis=-1, keepdims=True)
        probs = probs + e * pl.reciprocal(s, approx=False)
        off += nc
    out_cls_ref[...] = probs.astype(out_cls_ref.dtype)


# ----------------------------------------------------------------------------
# Parameter init (deterministic, in-script) and model preparation
# ----------------------------------------------------------------------------
def init_params(key, input_shape=(3, 16, 16), n_classes=(5, 3),
                input_channels=3, latent_channels=4):
    enc_ch = [input_channels, 8, 16, 32, latent_channels]
    dec_ch = [latent_channels, 32, 16, 8, input_channels]
    latent_flat = latent_channels * (input_shape[1] // 16) * (input_shape[2] // 16)
    keys = jax.random.split(key, 2 * 8 + 2 * len(n_classes))
    ki = 0
    params = {"enc": [], "dec": [], "fc": []}
    for i in range(4):
        cin, cout = enc_ch[i], enc_ch[i + 1]
        w = 0.1 * jax.random.normal(keys[ki], (cout, cin, 3, 3), jnp.float32); ki += 1
        b = 0.01 * jax.random.normal(keys[ki], (cout,), jnp.float32); ki += 1
        params["enc"].append((w, b))
    for i in range(4):
        cin, cout = dec_ch[i], dec_ch[i + 1]
        w = 0.1 * jax.random.normal(keys[ki], (cin, cout, 2, 2), jnp.float32); ki += 1
        b = 0.01 * jax.random.normal(keys[ki], (cout,), jnp.float32); ki += 1
        params["dec"].append((w, b))
    for nc in n_classes:
        w = 0.1 * jax.random.normal(keys[ki], (nc, latent_flat), jnp.float32); ki += 1
        b = 0.01 * jax.random.normal(keys[ki], (nc,), jnp.float32); ki += 1
        params["fc"].append((w, b))
    return params


def prepare_model(params, input_shape, compute_dtype=jnp.bfloat16):
    """Materialize each conv/deconv as a dense operator + tiled bias (once)."""
    _, H, W = input_shape
    trunk, h, w = [], H, W
    for (wt, b) in params["enc"]:
        M, h, w = _conv2d_s2_operator(wt, h, w)
        trunk += [M.astype(compute_dtype),
                  jnp.repeat(b, h * w).reshape(1, -1).astype(jnp.float32)]
    for (wt, b) in params["dec"]:
        M, h, w = _conv_transpose2d_s2_operator(wt, h, w)
        trunk += [M.astype(compute_dtype),
                  jnp.repeat(b, h * w).reshape(1, -1).astype(jnp.float32)]
    # Merged classification heads (torch Linear: y = x W^T + b) -> one matmul.
    fc_w = jnp.concatenate([wt.T for (wt, _) in params["fc"]],
                           axis=1).astype(compute_dtype)
    fc_b = jnp.concatenate([b for (_, b) in params["fc"]]
                           ).reshape(1, -1).astype(jnp.float32)
    n_classes = tuple(int(wt.shape[0]) for (wt, _) in params["fc"])
    out_channels = params["dec"][-1][0].shape[1]
    return dict(trunk=trunk, fc_w=fc_w, fc_b=fc_b,
                n_enc=len(params["enc"]), n_dec=len(params["dec"]),
                n_classes=n_classes,
                ae_shape=(out_channels, h, w),
                compute_dtype=compute_dtype)


# ----------------------------------------------------------------------------
# Forward pass: free reshapes + one pallas_call (batch-tiled parallel grid)
# ----------------------------------------------------------------------------
def classif_conv_ae_forward(prepared, x_nchw, training=False, batch_tile=256):
    """Returns (autoencoder_output_NCHW, classifier_output_0, classifier_output_1, ...)."""
    N, C, H, W = x_nchw.shape
    cd = prepared["compute_dtype"]
    n_enc, n_dec = prepared["n_enc"], prepared["n_dec"]
    n_classes = prepared["n_classes"]
    c_out, h_out, w_out = prepared["ae_shape"]
    d_in = C * H * W
    d_ae = c_out * h_out * w_out
    d_cls = int(sum(n_classes))

    # NCHW flatten (free) + pre-cast to bf16: halves input DMA bytes.
    x2d = x_nchw.reshape(N, d_in).astype(cd)

    if N <= batch_tile:
        tile_m, n_pad = N, N                       # single full block
    else:
        tile_m = batch_tile
        n_pad = ((N + tile_m - 1) // tile_m) * tile_m
        if n_pad != N:
            x2d = jnp.pad(x2d, ((0, n_pad - N), (0, 0)))
    grid = (n_pad // tile_m,)

    weights = list(prepared["trunk"]) + [prepared["fc_w"], prepared["fc_b"]]
    inputs = [x2d] + weights

    def _row_spec(d):                              # batch-tiled activations/outputs
        return pl.BlockSpec((tile_m, d), lambda i: (i, 0))

    def _const_spec(shape):
        # Constant block index across batch tiles -> weights fetched once and
        # kept VMEM-resident for the whole grid (amortized weight DMA).
        return pl.BlockSpec(shape, lambda i: (0, 0))

    in_specs = [_row_spec(d_in)] + [_const_spec(a.shape) for a in weights]
    out_shape = (jax.ShapeDtypeStruct((n_pad, d_ae), jnp.float32),
                 jax.ShapeDtypeStruct((n_pad, d_cls), jnp.float32))
    out_specs = (_row_spec(d_ae), _row_spec(d_cls))

    kernel = functools.partial(
        _fused_forward_kernel, n_enc=n_enc, n_dec=n_dec,
        head_splits=n_classes, training=training, compute_dtype=cd)

    out_ae2d, cls_packed = pl.pallas_call(
        kernel,
        out_shape=out_shape,
        grid=grid,
        in_specs=in_specs,
        out_specs=out_specs,
        compiler_params=pltpu.CompilerParams(
            dimension_semantics=("parallel",),     # shard batch tiles (v7x megacore)
            vmem_limit_bytes=16 * 1024 * 1024),
    )(*inputs)

    out_ae = out_ae2d[:N].reshape(N, c_out, h_out, w_out)   # already NCHW order
    if (h_out, w_out) != (H, W):
        # TODO(synk): torch F.interpolate default 'nearest' rounding can differ
        # from jax.image.resize 'nearest' for non-multiple-of-16 inputs.
        out_ae = jax.image.resize(out_ae, (N, c_out, H, W), method="nearest")

    cls_packed = cls_packed[:N]                    # free slices on the packed slab
    cls_outs, off = [], 0
    for nc in n_classes:
        cls_outs.append(cls_packed[:, off:off + nc])
        off += nc
    return (out_ae,) + tuple(cls_outs)


# ----------------------------------------------------------------------------
# Plain-JAX float32 reference (no Pallas) for validation
# ----------------------------------------------------------------------------
def _reference_forward(params, x_nchw, training=False):
    hp = jax.lax.Precision.HIGHEST
    h = x_nchw
    for (w, b) in params["enc"]:
        h = jax.lax.conv_general_dilated(
            h, w, window_strides=(2, 2), padding=((1, 1), (1, 1)),
            dimension_numbers=("NCHW", "OIHW", "NCHW"), precision=hp)
        h = jax.nn.relu(h + b[None, :, None, None])
    latent = h
    d = latent
    for i, (w, b) in enumerate(params["dec"]):
        y = jnp.einsum("nchw,cdab->ndhawb", d, w, precision=hp)
        n, co, hh, _, ww, _ = y.shape
        y = y.reshape(n, co, 2 * hh, 2 * ww) + b[None, :, None, None]
        d = jax.nn.relu(y) if i < len(params["dec"]) - 1 else jax.nn.sigmoid(y)
    out_ae = d
    if out_ae.shape[-2:] != x_nchw.shape[-2:]:
        out_ae = jax.image.resize(out_ae, x_nchw.shape, method="nearest")
    lat_flat = latent.reshape(latent.shape[0], -1)
    outs = []
    for (w, b) in params["fc"]:
        logits = jnp.dot(lat_flat, w.T, precision=hp) + b
        outs.append(logits if training else jax.nn.softmax(logits, axis=-1))
    return (out_ae,) + tuple(outs)


# ----------------------------------------------------------------------------
if __name__ == "__main__":
    key = jax.random.PRNGKey(0)
    k_param, k1, k2 = jax.random.split(key, 3)

    input_shape = (3, 16, 16)
    n_classes = (5, 3)
    params = init_params(k_param, input_shape=input_shape, n_classes=n_classes,
                         input_channels=3, latent_channels=4)
    prepared = prepare_model(params, input_shape)

    # --- Case 1: tiny batch (single full block, like default PyTorch usage) ---
    x = jax.random.normal(k1, (2, 3, 16, 16), jnp.float32)      # NCHW, like PyTorch
    out_ae, cls0, cls1 = jax.block_until_ready(
        classif_conv_ae_forward(prepared, x, training=False))
    assert out_ae.shape == x.shape, out_ae.shape
    assert cls0.shape == (2, 5) and cls1.shape == (2, 3)
    assert bool(jnp.all((out_ae >= 0.0) & (out_ae <= 1.0)))      # sigmoid range
    assert jnp.allclose(jnp.sum(cls0, axis=-1), 1.0, atol=1e-3)  # exact-recip softmax
    assert jnp.allclose(jnp.sum(cls1, axis=-1), 1.0, atol=1e-3)
    ref = _reference_forward(params, x, training=False)
    assert jnp.allclose(out_ae, ref[0], atol=3e-2), \
        float(jnp.max(jnp.abs(out_ae - ref[0])))
    assert jnp.allclose(cls0, ref[1], atol=3e-2)
    assert jnp.allclose(cls1, ref[2], atol=3e-2)

    # --- Case 2: batch > tile -> padded, multi-step "parallel" grid with
    #     VMEM-resident weights (exercises the batch-tiled path). ---
    xb = jax.random.normal(k2, (10, 3, 16, 16), jnp.float32)
    outs_b = jax.block_until_ready(
        classif_conv_ae_forward(prepared, xb, training=False, batch_tile=8))
    ref_b = _reference_forward(params, xb, training=False)
    for got, want in zip(outs_b, ref_b):
        assert got.shape == want.shape
        assert jnp.allclose(got, want, atol=3e-2), \
            float(jnp.max(jnp.abs(got - want)))

    # --- Case 3: training mode (raw logits, no softmax) ---
    outs_t = jax.block_until_ready(
        classif_conv_ae_forward(prepared, x, training=True))
    ref_t = _reference_forward(params, x, training=True)
    assert jnp.allclose(outs_t[1], ref_t[1], atol=3e-2)
    assert jnp.allclose(outs_t[2], ref_t[2], atol=3e-2)

    print("KERNEL_OK")
</pallas_src>

<mosaic_0001>
module attributes {stable_mosaic.version = 11 : i64} {
  func.func @_fused_forward_kernel(%arg0: i32, %arg1: memref<2x768xbf16, #tpu.memory_space<vmem>>, %arg2: memref<768x512xbf16, #tpu.memory_space<vmem>>, %arg3: memref<1x512xf32, #tpu.memory_space<vmem>>, %arg4: memref<512x256xbf16, #tpu.memory_space<vmem>>, %arg5: memref<1x256xf32, #tpu.memory_space<vmem>>, %arg6: memref<256x128xbf16, #tpu.memory_space<vmem>>, %arg7: memref<1x128xf32, #tpu.memory_space<vmem>>, %arg8: memref<128x4xbf16, #tpu.memory_space<vmem>>, %arg9: memref<1x4xf32, #tpu.memory_space<vmem>>, %arg10: memref<4x128xbf16, #tpu.memory_space<vmem>>, %arg11: memref<1x128xf32, #tpu.memory_space<vmem>>, %arg12: memref<128x256xbf16, #tpu.memory_space<vmem>>, %arg13: memref<1x256xf32, #tpu.memory_space<vmem>>, %arg14: memref<256x512xbf16, #tpu.memory_space<vmem>>, %arg15: memref<1x512xf32, #tpu.memory_space<vmem>>, %arg16: memref<512x768xbf16, #tpu.memory_space<vmem>>, %arg17: memref<1x768xf32, #tpu.memory_space<vmem>>, %arg18: memref<4x8xbf16, #tpu.memory_space<vmem>>, %arg19: memref<1x8xf32, #tpu.memory_space<vmem>>, %arg20: memref<2x768xf32, #tpu.memory_space<vmem>>, %arg21: memref<2x8xf32, #tpu.memory_space<vmem>>) attributes {dimension_semantics = [#tpu.dimension_semantics<parallel>], iteration_bounds = array<i64: 1>, scalar_prefetch = 0 : i64, scratch_operands = 0 : i64, tpu.core_type = #tpu.core_type<tc>, window_params = [{transform_indices = @transform_0, window_bounds = array<i64: 2, 768>}, {pipeline_mode = #tpu.pipeline_mode<synchronous>, transform_indices = @transform_1, window_bounds = array<i64: 768, 512>}, {pipeline_mode = #tpu.pipeline_mode<synchronous>, transform_indices = @transform_2, window_bounds = array<i64: 1, 512>}, {pipeline_mode = #tpu.pipeline_mode<synchronous>, transform_indices = @transform_3, window_bounds = array<i64: 512, 256>}, {pipeline_mode = #tpu.pipeline_mode<synchronous>, transform_indices = @transform_4, window_bounds = array<i64: 1, 256>}, {pipeline_mode = #tpu.pipeline_mode<synchronous>, transform_indices = @transform_5, window_bounds = array<i64: 256, 128>}, {pipeline_mode = #tpu.pipeline_mode<synchronous>, transform_indices = @transform_6, window_bounds = array<i64: 1, 128>}, {pipeline_mode = #tpu.pipeline_mode<synchronous>, transform_indices = @transform_7, window_bounds = array<i64: 128, 4>}, {pipeline_mode = #tpu.pipeline_mode<synchronous>, transform_indices = @transform_8, window_bounds = array<i64: 1, 4>}, {pipeline_mode = #tpu.pipeline_mode<synchronous>, transform_indices = @transform_9, window_bounds = array<i64: 4, 128>}, {pipeline_mode = #tpu.pipeline_mode<synchronous>, transform_indices = @transform_10, window_bounds = array<i64: 1, 128>}, {pipeline_mode = #tpu.pipeline_mode<synchronous>, transform_indices = @transform_11, window_bounds = array<i64: 128, 256>}, {pipeline_mode = #tpu.pipeline_mode<synchronous>, transform_indices = @transform_12, window_bounds = array<i64: 1, 256>}, {pipeline_mode = #tpu.pipeline_mode<synchronous>, transform_indices = @transform_13, window_bounds = array<i64: 256, 512>}, {pipeline_mode = #tpu.pipeline_mode<synchronous>, transform_indices = @transform_14, window_bounds = array<i64: 1, 512>}, {pipeline_mode = #tpu.pipeline_mode<synchronous>, transform_indices = @transform_15, window_bounds = array<i64: 512, 768>}, {pipeline_mode = #tpu.pipeline_mode<synchronous>, transform_indices = @transform_16, window_bounds = array<i64: 1, 768>}, {pipeline_mode = #tpu.pipeline_mode<synchronous>, transform_indices = @transform_17, window_bounds = array<i64: 4, 8>}, {pipeline_mode = #tpu.pipeline_mode<synchronous>, transform_indices = @transform_18, window_bounds = array<i64: 1, 8>}, {transform_indices = @transform_19, window_bounds = array<i64: 2, 768>}, {transform_indices = @transform_20, window_bounds = array<i64: 2, 8>}]} {
    %c0 = arith.constant 0 : index
    %c0_0 = arith.constant 0 : index
    %0 = vector.load %arg1[%c0, %c0_0] : memref<2x768xbf16, #tpu.memory_space<vmem>>, vector<2x768xbf16>
    %c0_1 = arith.constant 0 : index
    %c0_2 = arith.constant 0 : index
    %1 = vector.load %arg2[%c0_1, %c0_2] : memref<768x512xbf16, #tpu.memory_space<vmem>>, vector<768x512xbf16>
    %c0_3 = arith.constant 0 : index
    %c0_4 = arith.constant 0 : index
    %2 = vector.load %arg3[%c0_3, %c0_4] : memref<1x512xf32, #tpu.memory_space<vmem>>, vector<1x512xf32>
    %cst = arith.constant dense<0.000000e+00> : vector<2x512xf32>
    %3 = tpu.matmul %0, %1, %cst {dimension_numbers = #tpu.dot_dimension_numbers<[1], [0], [0], [1], [0, 0, 1, 1], [], []>} : vector<2x768xbf16>, vector<768x512xbf16>, vector<2x512xf32> -> vector<2x512xf32>
    %4 = vector.broadcast %2 : vector<1x512xf32> to vector<2x512xf32>
    %5 = arith.addf %3, %4 : vector<2x512xf32>
    %cst_5 = arith.constant 0.000000e+00 : f32
    %6 = vector.broadcast %cst_5 : f32 to vector<2x512xf32>
    %7 = arith.maximumf %5, %6 : vector<2x512xf32>
    %8 = arith.truncf %7 : vector<2x512xf32> to vector<2x512xbf16>
    %c0_6 = arith.constant 0 : index
    %c0_7 = arith.constant 0 : index
    %9 = vector.load %arg4[%c0_6, %c0_7] : memref<512x256xbf16, #tpu.memory_space<vmem>>, vector<512x256xbf16>
    %c0_8 = arith.constant 0 : index
    %c0_9 = arith.constant 0 : index
    %10 = vector.load %arg5[%c0_8, %c0_9] : memref<1x256xf32, #tpu.memory_space<vmem>>, vector<1x256xf32>
    %cst_10 = arith.constant dense<0.000000e+00> : vector<2x256xf32>
    %11 = tpu.matmul %8, %9, %cst_10 {dimension_numbers = #tpu.dot_dimension_numbers<[1], [0], [0], [1], [0, 0, 1, 1], [], []>} : vector<2x512xbf16>, vector<512x256xbf16>, vector<2x256xf32> -> vector<2x256xf32>
    %12 = vector.broadcast %10 : vector<1x256xf32> to vector<2x256xf32>
    %13 = arith.addf %11, %12 : vector<2x256xf32>
    %cst_11 = arith.constant 0.000000e+00 : f32
    %14 = vector.broadcast %cst_11 : f32 to vector<2x256xf32>
    %15 = arith.maximumf %13, %14 : vector<2x256xf32>
    %16 = arith.truncf %15 : vector<2x256xf32> to vector<2x256xbf16>
    %c0_12 = arith.constant 0 : index
    %c0_13 = arith.constant 0 : index
    %17 = vector.load %arg6[%c0_12, %c0_13] : memref<256x128xbf16, #tpu.memory_space<vmem>>, vector<256x128xbf16>
    %c0_14 = arith.constant 0 : index
    %c0_15 = arith.constant 0 : index
    %18 = vector.load %arg7[%c0_14, %c0_15] : memref<1x128xf32, #tpu.memory_space<vmem>>, vector<1x128xf32>
    %cst_16 = arith.constant dense<0.000000e+00> : vector<2x128xf32>
    %19 = tpu.matmul %16, %17, %cst_16 {dimension_numbers = #tpu.dot_dimension_numbers<[1], [0], [0], [1], [0, 0, 1, 1], [], []>} : vector<2x256xbf16>, vector<256x128xbf16>, vector<2x128xf32> -> vector<2x128xf32>
    %20 = vector.broadcast %18 : vector<1x128xf32> to vector<2x128xf32>
    %21 = arith.addf %19, %20 : vector<2x128xf32>
    %cst_17 = arith.constant 0.000000e+00 : f32
    %22 = vector.broadcast %cst_17 : f32 to vector<2x128xf32>
    %23 = arith.maximumf %21, %22 : vector<2x128xf32>
    %24 = arith.truncf %23 : vector<2x128xf32> to vector<2x128xbf16>
    %c0_18 = arith.constant 0 : index
    %c0_19 = arith.constant 0 : index
    %25 = vector.load %arg8[%c0_18, %c0_19] : memref<128x4xbf16, #tpu.memory_space<vmem>>, vector<128x4xbf16>
    %c0_20 = arith.constant 0 : index
    %c0_21 = arith.constant 0 : index
    %26 = vector.load %arg9[%c0_20, %c0_21] : memref<1x4xf32, #tpu.memory_space<vmem>>, vector<1x4xf32>
    %cst_22 = arith.constant dense<0.000000e+00> : vector<2x4xf32>
    %27 = tpu.matmul %24, %25, %cst_22 {dimension_numbers = #tpu.dot_dimension_numbers<[1], [0], [0], [1], [0, 0, 1, 1], [], []>} : vector<2x128xbf16>, vector<128x4xbf16>, vector<2x4xf32> -> vector<2x4xf32>
    %28 = vector.broadcast %26 : vector<1x4xf32> to vector<2x4xf32>
    %29 = arith.addf %27, %28 : vector<2x4xf32>
    %cst_23 = arith.constant 0.000000e+00 : f32
    %30 = vector.broadcast %cst_23 : f32 to vector<2x4xf32>
    %31 = arith.maximumf %29, %30 : vector<2x4xf32>
    %32 = arith.truncf %31 : vector<2x4xf32> to vector<2x4xbf16>
    %c0_24 = arith.constant 0 : index
    %c0_25 = arith.constant 0 : index
    %33 = vector.load %arg10[%c0_24, %c0_25] : memref<4x128xbf16, #tpu.memory_space<vmem>>, vector<4x128xbf16>
    %c0_26 = arith.constant 0 : index
    %c0_27 = arith.constant 0 : index
    %34 = vector.load %arg11[%c0_26, %c0_27] : memref<1x128xf32, #tpu.memory_space<vmem>>, vector<1x128xf32>
    %cst_28 = arith.constant dense<0.000000e+00> : vector<2x128xf32>
    %35 = tpu.matmul %32, %33, %cst_28 {dimension_numbers = #tpu.dot_dimension_numbers<[1], [0], [0], [1], [0, 0, 1, 1], [], []>} : vector<2x4xbf16>, vector<4x128xbf16>, vector<2x128xf32> -> vector<2x128xf32>
    %36 = vector.broadcast %34 : vector<1x128xf32> to vector<2x128xf32>
    %37 = arith.addf %35, %36 : vector<2x128xf32>
    %cst_29 = arith.constant 0.000000e+00 : f32
    %38 = vector.broadcast %cst_29 : f32 to vector<2x128xf32>
    %39 = arith.maximumf %37, %38 : vector<2x128xf32>
    %40 = arith.truncf %39 : vector<2x128xf32> to vector<2x128xbf16>
    %c0_30 = arith.constant 0 : index
    %c0_31 = arith.constant 0 : index
    %41 = vector.load %arg12[%c0_30, %c0_31] : memref<128x256xbf16, #tpu.memory_space<vmem>>, vector<128x256xbf16>
    %c0_32 = arith.constant 0 : index
    %c0_33 = arith.constant 0 : index
    %42 = vector.load %arg13[%c0_32, %c0_33] : memref<1x256xf32, #tpu.memory_space<vmem>>, vector<1x256xf32>
    %cst_34 = arith.constant dense<0.000000e+00> : vector<2x256xf32>
    %43 = tpu.matmul %40, %41, %cst_34 {dimension_numbers = #tpu.dot_dimension_numbers<[1], [0], [0], [1], [0, 0, 1, 1], [], []>} : vector<2x128xbf16>, vector<128x256xbf16>, vector<2x256xf32> -> vector<2x256xf32>
    %44 = vector.broadcast %42 : vector<1x256xf32> to vector<2x256xf32>
    %45 = arith.addf %43, %44 : vector<2x256xf32>
    %cst_35 = arith.constant 0.000000e+00 : f32
    %46 = vector.broadcast %cst_35 : f32 to vector<2x256xf32>
    %47 = arith.maximumf %45, %46 : vector<2x256xf32>
    %48 = arith.truncf %47 : vector<2x256xf32> to vector<2x256xbf16>
    %c0_36 = arith.constant 0 : index
    %c0_37 = arith.constant 0 : index
    %49 = vector.load %arg14[%c0_36, %c0_37] : memref<256x512xbf16, #tpu.memory_space<vmem>>, vector<256x512xbf16>
    %c0_38 = arith.constant 0 : index
    %c0_39 = arith.constant 0 : index
    %50 = vector.load %arg15[%c0_38, %c0_39] : memref<1x512xf32, #tpu.memory_space<vmem>>, vector<1x512xf32>
    %cst_40 = arith.constant dense<0.000000e+00> : vector<2x512xf32>
    %51 = tpu.matmul %48, %49, %cst_40 {dimension_numbers = #tpu.dot_dimension_numbers<[1], [0], [0], [1], [0, 0, 1, 1], [], []>} : vector<2x256xbf16>, vector<256x512xbf16>, vector<2x512xf32> -> vector<2x512xf32>
    %52 = vector.broadcast %50 : vector<1x512xf32> to vector<2x512xf32>
    %53 = arith.addf %51, %52 : vector<2x512xf32>
    %cst_41 = arith.constant 0.000000e+00 : f32
    %54 = vector.broadcast %cst_41 : f32 to vector<2x512xf32>
    %55 = arith.maximumf %53, %54 : vector<2x512xf32>
    %56 = arith.truncf %55 : vector<2x512xf32> to vector<2x512xbf16>
    %c0_42 = arith.constant 0 : index
    %c0_43 = arith.constant 0 : index
    %57 = vector.load %arg16[%c0_42, %c0_43] : memref<512x768xbf16, #tpu.memory_space<vmem>>, vector<512x768xbf16>
    %c0_44 = arith.constant 0 : index
    %c0_45 = arith.constant 0 : index
    %58 = vector.load %arg17[%c0_44, %c0_45] : memref<1x768xf32, #tpu.memory_space<vmem>>, vector<1x768xf32>
    %cst_46 = arith.constant dense<0.000000e+00> : vector<2x768xf32>
    %59 = tpu.matmul %56, %57, %cst_46 {dimension_numbers = #tpu.dot_dimension_numbers<[1], [0], [0], [1], [0, 0, 1, 1], [], []>} : vector<2x512xbf16>, vector<512x768xbf16>, vector<2x768xf32> -> vector<2x768xf32>
    %60 = vector.broadcast %58 : vector<1x768xf32> to vector<2x768xf32>
    %61 = arith.addf %59, %60 : vector<2x768xf32>
    %62 = arith.negf %61 : vector<2x768xf32>
    %63 = math.exp %62 : vector<2x768xf32>
    %cst_47 = arith.constant 1.000000e+00 : f32
    %64 = vector.broadcast %cst_47 : f32 to vector<2x768xf32>
    %65 = arith.addf %64, %63 : vector<2x768xf32>
    %66 = arith.divf %64, %65 : vector<2x768xf32>
    %c0_48 = arith.constant 0 : index
    %c0_49 = arith.constant 0 : index
    %67 = vector.load %arg20[%c0_48, %c0_49] : memref<2x768xf32, #tpu.memory_space<vmem>>, vector<2x768xf32>
    tpu.vector_store %arg20[%c0_48, %c0_49], %66 {strides = array<i32>} : memref<2x768xf32, #tpu.memory_space<vmem>>, vector<2x768xf32>,
    %c0_50 = arith.constant 0 : index
    %c0_51 = arith.constant 0 : index
    %68 = vector.load %arg18[%c0_50, %c0_51] : memref<4x8xbf16, #tpu.memory_space<vmem>>, vector<4x8xbf16>
    %cst_52 = arith.constant dense<0.000000e+00> : vector<2x8xf32>
    %69 = tpu.matmul %32, %68, %cst_52 {dimension_numbers = #tpu.dot_dimension_numbers<[1], [0], [0], [1], [0, 0, 1, 1], [], []>} : vector<2x4xbf16>, vector<4x8xbf16>, vector<2x8xf32> -> vector<2x8xf32>
    %c0_53 = arith.constant 0 : index
    %c0_54 = arith.constant 0 : index
    %70 = vector.load %arg19[%c0_53, %c0_54] : memref<1x8xf32, #tpu.memory_space<vmem>>, vector<1x8xf32>
    %71 = vector.broadcast %70 : vector<1x8xf32> to vector<2x8xf32>
    %72 = arith.addf %69, %71 : vector<2x8xf32>
    %73 = tpu.iota {dimensions = array<i32: 1>} : vector<2x8xi32>
    %cst_55 = arith.constant 0.000000e+00 : f32
    %74 = vector.broadcast %cst_55 : f32 to vector<2x8xf32>
    %c0_i32 = arith.constant 0 : i32
    %75 = vector.broadcast %c0_i32 : i32 to vector<2x8xi32>
    %76 = arith.cmpi sge, %73, %75 : vector<2x8xi32>
    %c5_i32 = arith.constant 5 : i32
    %77 = vector.broadcast %c5_i32 : i32 to vector<2x8xi32>
    %78 = arith.cmpi slt, %73, %77 : vector<2x8xi32>
    %79 = arith.andi %76, %78 : vector<2x8xi1>
    %cst_56 = arith.constant 0xFF800000 : f32
    %80 = vector.broadcast %cst_56 : f32 to vector<2x8xf32>
    %81 = arith.select %79, %72, %80 : vector<2x8xi1>, vector<2x8xf32>
    %cst_57 = arith.constant dense<0xFF800000> : vector<2xf32>
    %82 = vector.multi_reduction <maximumf>, %81, %cst_57 [1] : vector<2x8xf32> to vector<2xf32>
    %83 = vector.shape_cast %82 : vector<2xf32> to vector<2x1xf32>
    %84 = vector.broadcast %83 : vector<2x1xf32> to vector<2x8xf32>
    %85 = arith.subf %72, %84 : vector<2x8xf32>
    %cst_58 = arith.constant 0xFF800000 : f32
    %86 = vector.broadcast %cst_58 : f32 to vector<2x8xf32>
    %87 = arith.select %79, %85, %86 : vector<2x8xi1>, vector<2x8xf32>
    %88 = math.exp %87 : vector<2x8xf32>
    %cst_59 = arith.constant dense<0.000000e+00> : vector<2xf32>
    %89 = vector.multi_reduction <add>, %88, %cst_59 [1] : vector<2x8xf32> to vector<2xf32>
    %90 = vector.shape_cast %89 : vector<2xf32> to vector<2x1xf32>
    %91 = tpu.reciprocal %90 : vector<2x1xf32> -> vector<2x1xf32>
    %92 = vector.broadcast %91 : vector<2x1xf32> to vector<2x8xf32>
    %93 = arith.mulf %88, %92 : vector<2x8xf32>
    %94 = arith.addf %74, %93 : vector<2x8xf32>
    %c5_i32_60 = arith.constant 5 : i32
    %95 = vector.broadcast %c5_i32_60 : i32 to vector<2x8xi32>
    %96 = arith.cmpi sge, %73, %95 : vector<2x8xi32>
    %c8_i32 = arith.constant 8 : i32
    %97 = vector.broadcast %c8_i32 : i32 to vector<2x8xi32>
    %98 = arith.cmpi slt, %73, %97 : vector<2x8xi32>
    %99 = arith.andi %96, %98 : vector<2x8xi1>
    %cst_61 = arith.constant 0xFF800000 : f32
    %100 = vector.broadcast %cst_61 : f32 to vector<2x8xf32>
    %101 = arith.select %99, %72, %100 : vector<2x8xi1>, vector<2x8xf32>
    %cst_62 = arith.constant dense<0xFF800000> : vector<2xf32>
    %102 = vector.multi_reduction <maximumf>, %101, %cst_62 [1] : vector<2x8xf32> to vector<2xf32>
    %103 = vector.shape_cast %102 : vector<2xf32> to vector<2x1xf32>
    %104 = vector.broadcast %103 : vector<2x1xf32> to vector<2x8xf32>
    %105 = arith.subf %72, %104 : vector<2x8xf32>
    %cst_63 = arith.constant 0xFF800000 : f32
    %106 = vector.broadcast %cst_63 : f32 to vector<2x8xf32>
    %107 = arith.select %99, %105, %106 : vector<2x8xi1>, vector<2x8xf32>
    %108 = math.exp %107 : vector<2x8xf32>
    %cst_64 = arith.constant dense<0.000000e+00> : vector<2xf32>
    %109 = vector.multi_reduction <add>, %108, %cst_64 [1] : vector<2x8xf32> to vector<2xf32>
    %110 = vector.shape_cast %109 : vector<2xf32> to vector<2x1xf32>
    %111 = tpu.reciprocal %110 : vector<2x1xf32> -> vector<2x1xf32>
    %112 = vector.broadcast %111 : vector<2x1xf32> to vector<2x8xf32>
    %113 = arith.mulf %108, %112 : vector<2x8xf32>
    %114 = arith.addf %94, %113 : vector<2x8xf32>
    %c0_65 = arith.constant 0 : index
    %c0_66 = arith.constant 0 : index
    %115 = vector.load %arg21[%c0_65, %c0_66] : memref<2x8xf32, #tpu.memory_space<vmem>>, vector<2x8xf32>
    tpu.vector_store %arg21[%c0_65, %c0_66], %114 {strides = array<i32>} : memref<2x8xf32, #tpu.memory_space<vmem>>, vector<2x8xf32>,
    return
  }
  func.func @transform_0(%arg0: i32) -> (i32, i32) {
    %c0_i32 = arith.constant 0 : i32
    %c0_i32_0 = arith.constant 0 : i32
    return %arg0, %c0_i32 : i32, i32
  }
  func.func @transform_1(%arg0: i32) -> (i32, i32) {
    %c0_i32 = arith.constant 0 : i32
    %c0_i32_0 = arith.constant 0 : i32
    %c0_i32_1 = arith.constant 0 : i32
    return %c0_i32, %c0_i32_0 : i32, i32
  }
  func.func @transform_2(%arg0: i32) -> (i32, i32) {
    %c0_i32 = arith.constant 0 : i32
    %c0_i32_0 = arith.constant 0 : i32
    %c0_i32_1 = arith.constant 0 : i32
    return %c0_i32, %c0_i32_0 : i32, i32
  }
  func.func @transform_3(%arg0: i32) -> (i32, i32) {
    %c0_i32 = arith.constant 0 : i32
    %c0_i32_0 = arith.constant 0 : i32
    %c0_i32_1 = arith.constant 0 : i32
    return %c0_i32, %c0_i32_0 : i32, i32
  }
  func.func @transform_4(%arg0: i32) -> (i32, i32) {
    %c0_i32 = arith.constant 0 : i32
    %c0_i32_0 = arith.constant 0 : i32
    %c0_i32_1 = arith.constant 0 : i32
    return %c0_i32, %c0_i32_0 : i32, i32
  }
  func.func @transform_5(%arg0: i32) -> (i32, i32) {
    %c0_i32 = arith.constant 0 : i32
    %c0_i32_0 = arith.constant 0 : i32
    %c0_i32_1 = arith.constant 0 : i32
    return %c0_i32, %c0_i32_0 : i32, i32
  }
  func.func @transform_6(%arg0: i32) -> (i32, i32) {
    %c0_i32 = arith.constant 0 : i32
    %c0_i32_0 = arith.constant 0 : i32
    %c0_i32_1 = arith.constant 0 : i32
    return %c0_i32, %c0_i32_0 : i32, i32
  }
  func.func @transform_7(%arg0: i32) -> (i32, i32) {
    %c0_i32 = arith.constant 0 : i32
    %c0_i32_0 = arith.constant 0 : i32
    %c0_i32_1 = arith.constant 0 : i32
    return %c0_i32, %c0_i32_0 : i32, i32
  }
  func.func @transform_8(%arg0: i32) -> (i32, i32) {
    %c0_i32 = arith.constant 0 : i32
    %c0_i32_0 = arith.constant 0 : i32
    %c0_i32_1 = arith.constant 0 : i32
    return %c0_i32, %c0_i32_0 : i32, i32
  }
  func.func @transform_9(%arg0: i32) -> (i32, i32) {
    %c0_i32 = arith.constant 0 : i32
    %c0_i32_0 = arith.constant 0 : i32
    %c0_i32_1 = arith.constant 0 : i32
    return %c0_i32, %c0_i32_0 : i32, i32
  }
  func.func @transform_10(%arg0: i32) -> (i32, i32) {
    %c0_i32 = arith.constant 0 : i32
    %c0_i32_0 = arith.constant 0 : i32
    %c0_i32_1 = arith.constant 0 : i32
    return %c0_i32, %c0_i32_0 : i32, i32
  }
  func.func @transform_11(%arg0: i32) -> (i32, i32) {
    %c0_i32 = arith.constant 0 : i32
    %c0_i32_0 = arith.constant 0 : i32
    %c0_i32_1 = arith.constant 0 : i32
    return %c0_i32, %c0_i32_0 : i32, i32
  }
  func.func @transform_12(%arg0: i32) -> (i32, i32) {
    %c0_i32 = arith.constant 0 : i32
    %c0_i32_0 = arith.constant 0 : i32
    %c0_i32_1 = arith.constant 0 : i32
    return %c0_i32, %c0_i32_0 : i32, i32
  }
  func.func @transform_13(%arg0: i32) -> (i32, i32) {
    %c0_i32 = arith.constant 0 : i32
    %c0_i32_0 = arith.constant 0 : i32
    %c0_i32_1 = arith.constant 0 : i32
    return %c0_i32, %c0_i32_0 : i32, i32
  }
  func.func @transform_14(%arg0: i32) -> (i32, i32) {
    %c0_i32 = arith.constant 0 : i32
    %c0_i32_0 = arith.constant 0 : i32
    %c0_i32_1 = arith.constant 0 : i32
    return %c0_i32, %c0_i32_0 : i32, i32
  }
  func.func @transform_15(%arg0: i32) -> (i32, i32) {
    %c0_i32 = arith.constant 0 : i32
    %c0_i32_0 = arith.constant 0 : i32
    %c0_i32_1 = arith.constant 0 : i32
    return %c0_i32, %c0_i32_0 : i32, i32
  }
  func.func @transform_16(%arg0: i32) -> (i32, i32) {
    %c0_i32 = arith.constant 0 : i32
    %c0_i32_0 = arith.constant 0 : i32
    %c0_i32_1 = arith.constant 0 : i32
    return %c0_i32, %c0_i32_0 : i32, i32
  }
  func.func @transform_17(%arg0: i32) -> (i32, i32) {
    %c0_i32 = arith.constant 0 : i32
    %c0_i32_0 = arith.constant 0 : i32
    %c0_i32_1 = arith.constant 0 : i32
    return %c0_i32, %c0_i32_0 : i32, i32
  }
  func.func @transform_18(%arg0: i32) -> (i32, i32) {
    %c0_i32 = arith.constant 0 : i32
    %c0_i32_0 = arith.constant 0 : i32
    %c0_i32_1 = arith.constant 0 : i32
    return %c0_i32, %c0_i32_0 : i32, i32
  }
  func.func @transform_19(%arg0: i32) -> (i32, i32) {
    %c0_i32 = arith.constant 0 : i32
    %c0_i32_0 = arith.constant 0 : i32
    return %arg0, %c0_i32 : i32, i32
  }
  func.func @transform_20(%arg0: i32) -> (i32, i32) {
    %c0_i32 = arith.constant 0 : i32
    %c0_i32_0 = arith.constant 0 : i32
    return %arg0, %c0_i32 : i32, i32
  }
}

</mosaic_0001>

<bundles_post_ra>
// kernel: tpu_custom_call.1
= control target key start
LH: loop header
LB: loop body
LE: loop exit
PB: predicated region body
PF: predicated region fallthrough
CT: control target
= control target key end

     0   :  { %s6922_s0 = inlined_call_operand.vmem [shape: bf16[2,768], index: 0, kind: input, shape index: {}]   ;;  %s6923_s1 = inlined_call_operand.hbm [shape: bf16[768,512], index: 1, kind: input, shape index: {}]   ;;  %s6924_s2 = inlined_call_operand.vmem [shape: f32[1,512], index: 2, kind: input, shape index: {}]   ;;  %s6925_s3 = inlined_call_operand.hbm [shape: bf16[512,256], index: 3, kind: input, shape index: {}]   ;;  %s6926_s4 = inlined_call_operand.vmem [shape: f32[1,256], index: 4, kind: input, shape index: {}]   ;;  %s6927_s5 = inlined_call_operand.hbm [shape: bf16[256,128], index: 5, kind: input, shape index: {}]   ;;  %s6928_s6 = inlined_call_operand.vmem [shape: f32[1,128], index: 6, kind: input, shape index: {}]   ;;  %s6929_s7 = inlined_call_operand.vmem [shape: bf16[128,4], index: 7, kind: input, shape index: {}]   ;;  %s6930_s8 = inlined_call_operand.vmem [shape: f32[1,4], index: 8, kind: input, shape index: {}]   ;;  %s6931_s9 = inlined_call_operand.vmem [shape: bf16[4,128], index: 9, kind: input, shape index: {}]   ;;  %s6932_s10 = inlined_call_operand.vmem [shape: f32[1,128], index: 10, kind: input, shape index: {}]   ;;  %s6933_s11 = inlined_call_operand.hbm [shape: bf16[128,256], index: 11, kind: input, shape index: {}]   ;;  %s6934_s12 = inlined_call_operand.vmem [shape: f32[1,256], index: 12, kind: input, shape index: {}]   ;;  %s6935_s13 = inlined_call_operand.hbm [shape: bf16[256,512], index: 13, kind: input, shape index: {}]   ;;  %s6936_s14 = inlined_call_operand.vmem [shape: f32[1,512], index: 14, kind: input, shape index: {}]   ;;  %s6937_s15 = inlined_call_operand.hbm [shape: bf16[512,768], index: 15, kind: input, shape index: {}]   ;;  %s6938_s16 = inlined_call_operand.vmem [shape: f32[1,768], index: 16, kind: input, shape index: {}]   ;;  %s6939_s17 = inlined_call_operand.vmem [shape: bf16[4,8], index: 17, kind: input, shape index: {}]   ;;  %s6940_s18 = inlined_call_operand.vmem [shape: f32[1,8], index: 18, kind: input, shape index: {}]   ;;  %s6941_s19 = inlined_call_operand.hbm [shape: f32[2,768], index: 19, kind: output, shape index: {0}]   ;;  %s6942_s20 = inlined_call_operand.hbm [shape: f32[2,8], index: 20, kind: output, shape index: {1}]  }
   0x1   :  { %6947 = sst [smem:[#allocation22_spill]] %s6922_s0 }
   0x2   :  { %6948 = sst [smem:[#allocation23_spill]] %s6923_s1 }
   0x3   :  { %6949 = sst [smem:[#allocation24_spill]] %s6924_s2 }
   0x4   :  { %6950 = sst [smem:[#allocation25_spill]] %s6925_s3 }
   0x5   :  { %6951 = sst [smem:[#allocation26_spill]] %s6926_s4 }
   0x6   :  { %6952 = sst [smem:[#allocation27_spill]] %s6941_s19 }
   0x7   :  { %6953 = sst [smem:[#allocation28_spill]] %s6942_s20 }
   0x8   :  { %26 = vsyncpa [#allocation3], 0 }
   0x9   :  { %27 = vsyncpa [#allocation6], 0 }
   0xa   :  { %28 = vsyncpa [#allocation9], 0 }
   0xb   :  { %29 = vsyncpa [#allocation12], 0 }
   0xc   :  { %30 = vsyncpa [#allocation4], 0 }
   0xd   :  { %31 = vsyncpa [#allocation15], 0  ;;  %s6465_s1 = smov [#allocation5]   ;;  %s6954_s2 = sld [smem:[#allocation25_spill]] }
   0xe   :  { %s53_s22 = sshll.u32 %s6465_s1, 4  ;;  %s54_s22 = int_to_ptr.vmem [resolvable:$true] %s53_s22 }
  0x13   :  { %s6277_s25 = scalar_lea.hbm %s6954_s2, 8192 }
  0x14   :  { %p6278_p0 = scmp.ne.s32.totalorder %s6954_s2, %s6277_s25  ;;  %p6281_p1 = scmp.lt.u32.totalorder %s6277_s25, %s6954_s2 }
  0x16   :  { %p6283_p2 = pnand %p6281_p1, %p6278_p0 }
  0x18   :  { %6286 = shalt.err (!%p6283_p2)
}
  0x19   :  { %s6287_s4 = scalar_lea.vmem %s54_s22, 8192  ;;  %p6292_p4 = scmp.lt.s32.totalorder %s54_s22, %s54_s22 }
  0x1a   :  { %p6288_p3 = scmp.ne.s32.totalorder %s54_s22, %s6287_s4  ;;  %p6293_p5 = scmp.lt.s32.totalorder %s6287_s4, %s6287_s4 }
  0x1c   :  { %p6294_p6 = por %p6293_p5, %p6292_p4 }
  0x1e   :  { %p6295_p7 = pnand %p6294_p6, %p6288_p3 }
  0x20   :  { %6298 = shalt.err (!%p6295_p7)
}
  0x21   :  { %s6466_s29 = smov 128   ;;  %s6467_s30 = smov 8  }
  0x22   :  { %59 = dma.hbm_to_vmem [thread:$0]  %s6954_s2, 8192, %s54_s22, [#allocation6], %s6466_s29, %s6466_s29, %s6467_s30  }
  0x23   :  { %s6468_s1 = smov [#allocation8]   ;;  %s6469_s24 = smov [#allocation2]  }
  0x24   :  { %s89_s23 = sshll.u32 %s6468_s1, 4  ;;  %s39_s25 = sshll.u32 %s6469_s24, 4  ;;  %s90_s23 = int_to_ptr.vmem [resolvable:$true] %s89_s23  ;;  %s40_s25 = int_to_ptr.vmem [resolvable:$true] %s39_s25 }
  0x25   :  { %s6299_s27 = scalar_lea.hbm %s6933_s11, 2048 }
  0x26   :  { %p6300_p8 = scmp.ne.s32.totalorder %s6933_s11, %s6299_s27  ;;  %p6303_p9 = scmp.lt.u32.totalorder %s6299_s27, %s6933_s11 }
  0x28   :  { %p6305_p10 = pnand %p6303_p9, %p6300_p8 }
  0x2a   :  { %6308 = shalt.err (!%p6305_p10)
}
  0x2b   :  { %s6309_s22 = scalar_lea.vmem %s90_s23, 2048  ;;  %p6314_p12 = scmp.lt.s32.totalorder %s90_s23, %s90_s23 }
  0x2c   :  { %p6310_p11 = scmp.ne.s32.totalorder %s90_s23, %s6309_s22  ;;  %p6315_p13 = scmp.lt.s32.totalorder %s6309_s22, %s6309_s22 }
  0x2e   :  { %p6316_p0 = por %p6315_p13, %p6314_p12 }
  0x30   :  { %p6317_p1 = pnand %p6316_p0, %p6310_p11 }
  0x32   :  { %6320 = shalt.err (!%p6317_p1)
}
  0x33   :  { %95 = dma.hbm_to_vmem [thread:$0]  %s6933_s11, 2048, %s90_s23, [#allocation9], %s6466_s29, %s6466_s29, %s6467_s30  }
  0x34   :  { %s6955_s24 = sld [smem:[#allocation23_spill]] }
  0x3a   :  { %s6321_s3 = scalar_lea.hbm %s6955_s24, 24576 }
  0x3b   :  { %p6322_p2 = scmp.ne.s32.totalorder %s6955_s24, %s6321_s3  ;;  %p6325_p3 = scmp.lt.u32.totalorder %s6321_s3, %s6955_s24 }
  0x3d   :  { %p6327_p4 = pnand %p6325_p3, %p6322_p2 }
  0x3f   :  { %6330 = shalt.err (!%p6327_p4)
}
  0x40   :  { %s6331_s28 = scalar_lea.vmem %s40_s25, 24576  ;;  %p6336_p6 = scmp.lt.s32.totalorder %s40_s25, %s40_s25 }
  0x41   :  { %p6332_p5 = scmp.ne.s32.totalorder %s40_s25, %s6331_s28  ;;  %p6337_p7 = scmp.lt.s32.totalorder %s6331_s28, %s6331_s28 }
  0x43   :  { %p6338_p8 = por %p6337_p7, %p6336_p6 }
  0x45   :  { %p6339_p9 = pnand %p6338_p8, %p6332_p5 }
  0x47   :  { %6342 = shalt.err (!%p6339_p9)
}
  0x48   :  { %s6470_s11 = smov 256   ;;  %s6471_s29 = smov 16  }
  0x49   :  { %45 = dma.hbm_to_vmem [thread:$0]  %s6955_s24, 24576, %s40_s25, [#allocation3], %s6470_s11, %s6470_s11, %s6471_s29  }
  0x4a   :  { %s6472_s4 = smov [#allocation7]   ;;  %s6343_s21 = scalar_lea.hbm %s6927_s5, 2048 }
  0x4b   :  { %s67_s22 = sshll.u32 %s6472_s4, 4  ;;  %p6344_p10 = scmp.ne.s32.totalorder %s6927_s5, %s6343_s21  ;;  %s68_s22 = int_to_ptr.vmem [resolvable:$true] %s67_s22 }
  0x4c   :  { %p6347_p11 = scmp.lt.u32.totalorder %s6343_s21, %s6927_s5 }
  0x4e   :  { %p6349_p12 = pnand %p6347_p11, %p6344_p10 }
  0x50   :  { %6352 = shalt.err (!%p6349_p12)
}
  0x51   :  { %s6353_s26 = scalar_lea.vmem %s68_s22, 2048  ;;  %p6358_p0 = scmp.lt.s32.totalorder %s68_s22, %s68_s22 }
  0x52   :  { %p6354_p13 = scmp.ne.s32.totalorder %s68_s22, %s6353_s26  ;;  %p6359_p1 = scmp.lt.s32.totalorder %s6353_s26, %s6353_s26 }
  0x54   :  { %p6360_p2 = por %p6359_p1, %p6358_p0 }
  0x56   :  { %p6361_p3 = pnand %p6360_p2, %p6354_p13 }
  0x58   :  { %6364 = shalt.err (!%p6361_p3)
}
  0x59   :  { %s6473_s25 = smov 64   ;;  %s6474_s24 = smov 4  }
  0x5a   :  { %73 = dma.hbm_to_vmem [thread:$0]  %s6927_s5, 2048, %s68_s22, [#allocation6], %s6473_s25, %s6473_s25, %s6474_s24  }
  0x5b   :  { %s6475_s30 = smov [#allocation10]   ;;  %s6476_s4 = smov [#allocation11]  }
  0x5c   :  { %s103_s23 = sshll.u32 %s6475_s30, 4  ;;  %s117_s2 = sshll.u32 %s6476_s4, 4  ;;  %s104_s23 = int_to_ptr.vmem [resolvable:$true] %s103_s23  ;;  %s6642_s2 = int_to_ptr.vmem [resolvable:$true] %s117_s2 }
  0x5d   :  { %s6365_s1 = scalar_lea.hbm %s6935_s13, 8192 }
  0x5e   :  { %p6366_p4 = scmp.ne.s32.totalorder %s6935_s13, %s6365_s1  ;;  %p6369_p5 = scmp.lt.u32.totalorder %s6365_s1, %s6935_s13 }
  0x60   :  { %p6371_p6 = pnand %p6369_p5, %p6366_p4 }
  0x62   :  { %6374 = shalt.err (!%p6371_p6)
}
  0x63   :  { %s6375_s5 = scalar_lea.vmem %s104_s23, 8192  ;;  %p6380_p8 = scmp.lt.s32.totalorder %s104_s23, %s104_s23 }
  0x64   :  { %p6376_p7 = scmp.ne.s32.totalorder %s104_s23, %s6375_s5  ;;  %p6381_p9 = scmp.lt.s32.totalorder %s6375_s5, %s6375_s5 }
  0x66   :  { %p6382_p10 = por %p6381_p9, %p6380_p8 }
  0x68   :  { %p6383_p11 = pnand %p6382_p10, %p6376_p7 }
  0x6a   :  { %6386 = shalt.err (!%p6383_p11)
}
  0x6b   :  { %109 = dma.hbm_to_vmem [thread:$0]  %s6935_s13, 8192, %s104_s23, [#allocation9], %s6470_s11, %s6470_s11, %s6471_s29  }
  0x6c   :  { %s6387_s28 = scalar_lea.hbm %s6937_s15, 24576 }
  0x6d   :  { %p6388_p12 = scmp.ne.s32.totalorder %s6937_s15, %s6387_s28  ;;  %p6391_p13 = scmp.lt.u32.totalorder %s6387_s28, %s6937_s15 }
  0x6f   :  { %p6393_p0 = pnand %p6391_p13, %p6388_p12 }
  0x71   :  { %6396 = shalt.err (!%p6393_p0)
}
  0x72   :  { %s6397_s1 = scalar_lea.vmem %s6642_s2, 24576  ;;  %p6402_p2 = scmp.lt.s32.totalorder %s6642_s2, %s6642_s2 }
  0x73   :  { %p6398_p1 = scmp.ne.s32.totalorder %s6642_s2, %s6397_s1  ;;  %p6403_p3 = scmp.lt.s32.totalorder %s6397_s1, %s6397_s1 }
  0x75   :  { %p6404_p4 = por %p6403_p3, %p6402_p2 }
  0x77   :  { %p6405_p5 = pnand %p6404_p4, %p6398_p1 }
  0x79   :  { %6408 = shalt.err (!%p6405_p5)
}
  0x7a   :  { %s6477_s13 = smov 384   ;;  %s6478_s11 = smov 24  }
  0x7b   :  { %123 = dma.hbm_to_vmem [thread:$0]  %s6937_s15, 24576, %s6642_s2, [#allocation12], %s6477_s13, %s6477_s13, %s6478_s11  }
  0x7c   :  { %6453 = dma.done.wait [#allocation3], 24576  }
  0x7d   :  { %6454 = vsyncadd [#allocation3], 4294942720 }
  0x7e   :  { %6455 = dma.done.wait [#allocation6], 10240  }
  0x7f   :  { %6456 = vsyncadd [#allocation6], 4294957056 }
  0x80   :  { %6457 = dma.done.wait [#allocation9], 10240  }
  0x81   :  { %6458 = vsyncadd [#allocation9], 4294957056 }
  0x82   :  { %6459 = dma.done.wait [#allocation12], 24576  }
  0x83   :  { %6460 = vsyncadd [#allocation12], 4294942720  ;;  %v5428_v0 = vld [vmem:[#allocation2 + $0x4] ss:$16 sps:$4 sm:$0xff]   ;;  %v5430_v1 = vld [vmem:[#allocation2] ss:$16 sps:$4 sm:$0xff]   ;;  %v344_v7 = vlaneseq }
  0x84   :  { %1378 = vmatprep.subr.bf16.mxu0 %v5428_v0  ;;  %v5431_v2 = vld [vmem:[#allocation2 + $0x24] ss:$16 sps:$4 sm:$0xff]   ;;  %v5433_v3 = vld [vmem:[#allocation2 + $0x20] ss:$16 sps:$4 sm:$0xff]   ;;  %v6479_v8 = vmov 1966171168  }
  0x85   :  { %1379 = vmatpush1.bf16.msra.mxu0 %v5430_v1  ;;  %v5434_v4 = vld [vmem:[#allocation2 + $0x44] ss:$16 sps:$4 sm:$0xff]   ;;  %v5436_v5 = vld [vmem:[#allocation2 + $0x40] ss:$16 sps:$4 sm:$0xff]   ;;  %v367_v9 = vunpack.c.l.s4 %v6479_v8  ;;  %v6677_v12 = vshrl.u32 %v344_v7, 7  ;;  %s6956_s3 = sld [smem:[#allocation22_spill]] }
  0x86   :  { %1380 = vmatprep.subr.bf16.mxu0 %v5431_v2  ;;  %v5437_v6 = vld [vmem:[#allocation2 + $0x64] ss:$16 sps:$4 sm:$0xff]   ;;  %v5439_v10 = vld [vmem:[#allocation2 + $0x60] ss:$16 sps:$4 sm:$0xff]   ;;  %v5479_v23 = vld [vmem:[#allocation2 + $0x20c] ss:$16 sps:$4 sm:$0xff]  }
  0x87   :  { %v5440_v11 = vld [vmem:[#allocation2 + $0x84] ss:$16 sps:$4 sm:$0xff]   ;;  %v368_v13 = vunpack.c.0.s8 %v367_v9  ;;  %v5442_v14 = vld [vmem:[#allocation2 + $0x80] ss:$16 sps:$4 sm:$0xff]   ;;  %v5481_v25 = vld [vmem:[#allocation2 + $0x208] ss:$16 sps:$4 sm:$0xff]   ;;  %1542 = vmatprep.subr.bf16.mxu1 %v5479_v23 }
  0x88   :  { %v5443_v15 = vld [vmem:[#allocation2 + $0xa4] ss:$16 sps:$4 sm:$0xff]   ;;  %v5445_v17 = vld [vmem:[#allocation2 + $0xa0] ss:$16 sps:$4 sm:$0xff]   ;;  %1543 = vmatpush1.bf16.msra.mxu1 %v5481_v25  ;;  %v5485_v27 = vld [vmem:[#allocation2 + $0x22c] ss:$16 sps:$4 sm:$0xff]  }
  0x89   :  { %1381 = vmatpush1.bf16.msra.mxu0 %v5433_v3  ;;  %v6680_v16 = vsub.s32 %v368_v13, %v6677_v12  ;;  %v5446_v18 = vld [vmem:[#allocation2 + $0xc4] ss:$16 sps:$4 sm:$0xff]   ;;  %v5448_v20 = vld [vmem:[#allocation2 + $0xc0] ss:$16 sps:$4 sm:$0xff]   ;;  %v5487_v28 = vld [vmem:[#allocation2 + $0x228] ss:$16 sps:$4 sm:$0xff]   ;;  %1544 = vmatprep.subr.bf16.mxu1 %v5485_v27 }
  0x8a   :  { %1382 = vmatprep.subr.bf16.mxu0 %v5434_v4  ;;  %v5449_v21 = vld [vmem:[#allocation2 + $0xe4] ss:$16 sps:$4 sm:$0xff]   ;;  %v5451_v29 = vld [vmem:[#allocation2 + $0xe0] ss:$16 sps:$4 sm:$0xff]   ;;  %v5491_v32 = vld [vmem:[#allocation2 + $0x24c] ss:$16 sps:$4 sm:$0xff]  }
  0x8b   :  { %v6685_v19 = vld [vmem:[%s6956_s3] sm:$0x3f]  ;;  %v5493_v34 = vld [vmem:[#allocation2 + $0x248] ss:$16 sps:$4 sm:$0xff]   ;;  %v5497_v35 = vld [vmem:[#allocation2 + $0x26c] ss:$16 sps:$4 sm:$0xff]  }
  0x8c   :  { %v6689_v22 = vrot.slane %v6685_v19, %v6680_v16  ;;  %v5452_v30 = vld [vmem:[#allocation2 + $0x104] ss:$16 sps:$4 sm:$0xff]   ;;  %v5454_v33 = vld [vmem:[#allocation2 + $0x100] ss:$16 sps:$4 sm:$0xff]   ;;  %1545 = vmatpush1.bf16.msra.mxu1 %v5487_v28  ;;  %v5499_v38 = vld [vmem:[#allocation2 + $0x268] ss:$16 sps:$4 sm:$0xff]   ;;  %v365_v61 = vcombine.high %v6685_v19, %v6685_v19 }
  0x8d   :  { %1383 = vmatpush1.bf16.msra.mxu0 %v5436_v5  ;;  %1546 = vmatprep.subr.bf16.mxu1 %v5491_v32  ;;  %v5455_v36 = vld [vmem:[#allocation2 + $0x124] ss:$16 sps:$4 sm:$0xff]   ;;  %v5457_v37 = vld [vmem:[#allocation2 + $0x120] ss:$16 sps:$4 sm:$0xff]   ;;  %v5503_v39 = vld [vmem:[#allocation2 + $0x28c] ss:$16 sps:$4 sm:$0xff]  }
  0x8e   :  { %1384 = vmatprep.subr.bf16.mxu0 %v5437_v6  ;;  %v380_v24 = vcombine.high %v6689_v22, %v6689_v22  ;;  %v5458_v40 = vld [vmem:[#allocation2 + $0x144] ss:$16 sps:$4 sm:$0xff]   ;;  %v5460_v41 = vld [vmem:[#allocation2 + $0x140] ss:$16 sps:$4 sm:$0xff]   ;;  %v5505_v42 = vld [vmem:[#allocation2 + $0x288] ss:$16 sps:$4 sm:$0xff]   ;;  %v379_v2 = vrot.slane %v365_v61, %v6680_v16  ;;  %v6707_v4 = vrot.slane %v6689_v22, %v6680_v16 }
  0x8f   :  { %v5509_v43 = vld [vmem:[#allocation2 + $0x2ac] ss:$16 sps:$4 sm:$0xff]   ;;  %v5461_v44 = vld [vmem:[#allocation2 + $0x164] ss:$16 sps:$4 sm:$0xff]   ;;  %v5463_v45 = vld [vmem:[#allocation2 + $0x160] ss:$16 sps:$4 sm:$0xff]  }
  0x90   :  { %v6694_v26 = vrot.slane %v380_v24, %v6680_v16  ;;  %1547 = vmatpush1.bf16.msra.mxu1 %v5493_v34  ;;  %v5511_v46 = vld [vmem:[#allocation2 + $0x2a8] ss:$16 sps:$4 sm:$0xff]   ;;  %v5515_v47 = vld [vmem:[#allocation2 + $0x2cc] ss:$16 sps:$4 sm:$0xff]   ;;  %v5464_v48 = vld [vmem:[#allocation2 + $0x184] ss:$16 sps:$4 sm:$0xff]   ;;  %v6710_v8 = vrot.slane %v379_v2, %v6680_v16  ;;  %v6716_v34 = vcombine.high %v6707_v4, %v6707_v4 }
  0x91   :  { %1385 = vmatpush1.bf16.msra.mxu0 %v5439_v10  ;;  %1548 = vmatprep.subr.bf16.mxu1 %v5497_v35  ;;  %v5466_v49 = vld [vmem:[#allocation2 + $0x180] ss:$16 sps:$4 sm:$0xff]   ;;  %v5517_v50 = vld [vmem:[#allocation2 + $0x2c8] ss:$16 sps:$4 sm:$0xff]   ;;  %v5521_v51 = vld [vmem:[#allocation2 + $0x2ec] ss:$16 sps:$4 sm:$0xff]  }
  0x92   :  { %1386 = vmatprep.subr.bf16.mxu0 %v5440_v11  ;;  %1410 = vmatprep.mubr.bf16.mxu0 %v6694_v26  ;;  %v6699_v31 = vcombine.high %v6694_v26, %v6694_v26  ;;  %v5467_v52 = vld [vmem:[#allocation2 + $0x1a4] ss:$16 sps:$4 sm:$0xff]   ;;  %v5469_v53 = vld [vmem:[#allocation2 + $0x1a0] ss:$16 sps:$4 sm:$0xff]   ;;  %v5523_v54 = vld [vmem:[#allocation2 + $0x2e8] ss:$16 sps:$4 sm:$0xff]  }
  0x93   :  { %v5527_v55 = vld [vmem:[#allocation2 + $0x30c] ss:$16 sps:$4 sm:$0xff]   ;;  %v5470_v56 = vld [vmem:[#allocation2 + $0x1c4] ss:$16 sps:$4 sm:$0xff]   ;;  %v5472_v57 = vld [vmem:[#allocation2 + $0x1c0] ss:$16 sps:$4 sm:$0xff]  }
  0x94   :  { %1574 = vmatprep.mubr.bf16.mxu1 %v6699_v31  ;;  %1549 = vmatpush1.bf16.msra.mxu1 %v5499_v38  ;;  %v5529_v58 = vld [vmem:[#allocation2 + $0x308] ss:$16 sps:$4 sm:$0xff]   ;;  %v5533_v59 = vld [vmem:[#allocation2 + $0x32c] ss:$16 sps:$4 sm:$0xff]   ;;  %v5473_v60 = vld [vmem:[#allocation2 + $0x1e4] ss:$16 sps:$4 sm:$0xff]  }
  0x95   :  { %1387 = vmatpush1.bf16.msra.mxu0 %v5442_v14  ;;  %1550 = vmatprep.subr.bf16.mxu1 %v5503_v39  ;;  %v5475_v62 = vld [vmem:[#allocation2 + $0x1e0] ss:$16 sps:$4 sm:$0xff]   ;;  %v5535_v63 = vld [vmem:[#allocation2 + $0x328] ss:$16 sps:$4 sm:$0xff]   ;;  %v5539_v0 = vld [vmem:[#allocation2 + $0x34c] ss:$16 sps:$4 sm:$0xff]  }
  0x96   :  { %1388 = vmatprep.subr.bf16.mxu0 %v5443_v15  ;;  %v5478_v1 = vld [vmem:[#allocation2 + $0x204] ss:$16 sps:$4 sm:$0xff]   ;;  %v5476_v3 = vld [vmem:[#allocation2 + $0x200] ss:$16 sps:$4 sm:$0xff]   ;;  %v5541_v5 = vld [vmem:[#allocation2 + $0x348] ss:$16 sps:$4 sm:$0xff]  }
  0x97   :  { %v5545_v6 = vld [vmem:[#allocation2 + $0x36c] ss:$16 sps:$4 sm:$0xff]   ;;  %v5484_v9 = vld [vmem:[#allocation2 + $0x224] ss:$16 sps:$4 sm:$0xff]   ;;  %v5482_v10 = vld [vmem:[#allocation2 + $0x220] ss:$16 sps:$4 sm:$0xff]  }
  0x98   :  { %1551 = vmatpush1.bf16.msra.mxu1 %v5505_v42  ;;  %v5547_v11 = vld [vmem:[#allocation2 + $0x368] ss:$16 sps:$4 sm:$0xff]   ;;  %v5551_v13 = vld [vmem:[#allocation2 + $0x38c] ss:$16 sps:$4 sm:$0xff]   ;;  %v5490_v14 = vld [vmem:[#allocation2 + $0x244] ss:$16 sps:$4 sm:$0xff]  }
  0x99   :  { %1389 = vmatpush1.bf16.msra.mxu0 %v5445_v17  ;;  %1552 = vmatprep.subr.bf16.mxu1 %v5509_v43  ;;  %v5488_v15 = vld [vmem:[#allocation2 + $0x240] ss:$16 sps:$4 sm:$0xff]   ;;  %v5553_v17 = vld [vmem:[#allocation2 + $0x388] ss:$16 sps:$4 sm:$0xff]   ;;  %v5496_v19 = vld [vmem:[#allocation2 + $0x264] ss:$16 sps:$4 sm:$0xff]  }
  0x9a   :  { %1390 = vmatprep.subr.bf16.mxu0 %v5446_v18  ;;  %v5557_v18 = vld [vmem:[#allocation2 + $0x3ac] ss:$16 sps:$4 sm:$0xff]   ;;  %v5502_v23 = vld [vmem:[#allocation2 + $0x284] ss:$16 sps:$4 sm:$0xff]   ;;  %v5500_v24 = vld [vmem:[#allocation2 + $0x280] ss:$16 sps:$4 sm:$0xff]  }
  0x9b   :  { %v5563_v22 = vld [vmem:[#allocation2 + $0x3cc] ss:$16 sps:$4 sm:$0xff]   ;;  %v5565_v25 = vld [vmem:[#allocation2 + $0x3c8] ss:$16 sps:$4 sm:$0xff]   ;;  %v5508_v28 = vld [vmem:[#allocation2 + $0x2a4] ss:$16 sps:$4 sm:$0xff]  }
  0x9c   :  { %1553 = vmatpush1.bf16.msra.mxu1 %v5511_v46  ;;  %v5569_v27 = vld [vmem:[#allocation2 + $0x3ec] ss:$16 sps:$4 sm:$0xff]   ;;  %v5512_v35 = vld [vmem:[#allocation2 + $0x2c0] ss:$16 sps:$4 sm:$0xff]   ;;  %v5520_v39 = vld [vmem:[#allocation2 + $0x2e4] ss:$16 sps:$4 sm:$0xff]  }
  0x9d   :  { %1391 = vmatpush1.bf16.msra.mxu0 %v5448_v20  ;;  %1554 = vmatprep.subr.bf16.mxu1 %v5515_v47  ;;  %v5494_v20 = vld [vmem:[#allocation2 + $0x260] ss:$16 sps:$4 sm:$0xff]   ;;  %v5577_v32 = vld [vmem:[#allocation2 + $0x40c] ss:$16 sps:$4 sm:$0xff]   ;;  %v5526_v43 = vld [vmem:[#allocation2 + $0x304] ss:$16 sps:$4 sm:$0xff]  }
  0x9e   :  { %1392 = vmatprep.subr.bf16.mxu0 %v5449_v21  ;;  %v5559_v21 = vld [vmem:[#allocation2 + $0x3a8] ss:$16 sps:$4 sm:$0xff]   ;;  %v5583_v38 = vld [vmem:[#allocation2 + $0x42c] ss:$16 sps:$4 sm:$0xff]   ;;  %v5532_v46 = vld [vmem:[#allocation2 + $0x324] ss:$16 sps:$4 sm:$0xff]  }
  0x9f   :  { %v5589_v42 = vld [vmem:[#allocation2 + $0x44c] ss:$16 sps:$4 sm:$0xff]   ;;  %v5530_v47 = vld [vmem:[#allocation2 + $0x320] ss:$16 sps:$4 sm:$0xff]   ;;  %s6957_s26 = sld [smem:[#allocation24_spill]]  ;;  %s6958_s25 = sld [smem:[#allocation26_spill]] }
  0xa0   :  { %1555 = vmatpush1.bf16.msra.mxu1 %v5517_v50  ;;  %v5538_v50 = vld [vmem:[#allocation2 + $0x344] ss:$16 sps:$4 sm:$0xff]   ;;  %v5619_v61 = vld [vmem:[#allocation2 + $0x4ec] ss:$16 sps:$4 sm:$0xff]   ;;  %vm6481_vm0 = vmmov 0   ;;  %vm2416_vm1 = vcmask 1041408  }
  0xa1   :  { %1393 = vmatpush1.bf16.msra.mxu0 %v5451_v29  ;;  %1556 = vmatprep.subr.bf16.mxu1 %v5521_v51  ;;  %v5506_v29 = vld [vmem:[#allocation2 + $0x2a0] ss:$16 sps:$4 sm:$0xff]   ;;  %vm2412_vm2 = vcmask 31744   ;;  %vm4669_vm6 = vcmask 58368  }
  0xa2   :  { %1394 = vmatprep.subr.bf16.mxu0 %v5452_v30  ;;  %v5571_v30 = vld [vmem:[#allocation2 + $0x3e8] ss:$16 sps:$4 sm:$0xff]   ;;  %v5536_v51 = vld [vmem:[#allocation2 + $0x340] ss:$16 sps:$4 sm:$0xff]  }
  0xa4   :  { %1557 = vmatpush1.bf16.msra.mxu1 %v5523_v54  ;;  %v5544_v54 = vld [vmem:[#allocation2 + $0x364] ss:$16 sps:$4 sm:$0xff]  }
  0xa5   :  { %1395 = vmatpush1.bf16.msra.mxu0 %v5454_v33  ;;  %1558 = vmatprep.subr.bf16.mxu1 %v5527_v55  ;;  %v5514_v33 = vld [vmem:[#allocation2 + $0x2c4] ss:$16 sps:$4 sm:$0xff]   ;;  %v5542_v55 = vld [vmem:[#allocation2 + $0x360] ss:$16 sps:$4 sm:$0xff]  }
  0xa6   :  { %1396 = vmatprep.subr.bf16.mxu0 %v5455_v36  ;;  %v5575_v36 = vld [vmem:[#allocation2 + $0x408] ss:$16 sps:$4 sm:$0xff]  }
  0xa8   :  { %1559 = vmatpush1.bf16.msra.mxu1 %v5529_v58  ;;  %v5550_v58 = vld [vmem:[#allocation2 + $0x384] ss:$16 sps:$4 sm:$0xff]  }
  0xa9   :  { %1397 = vmatpush1.bf16.msra.mxu0 %v5457_v37  ;;  %1560 = vmatprep.subr.bf16.mxu1 %v5533_v59  ;;  %v5548_v59 = vld [vmem:[#allocation2 + $0x380] ss:$16 sps:$4 sm:$0xff]  }
  0xaa   :  { %1398 = vmatprep.subr.bf16.mxu0 %v5458_v40  ;;  %v5518_v40 = vld [vmem:[#allocation2 + $0x2e0] ss:$16 sps:$4 sm:$0xff]  }
  0xac   :  { %1561 = vmatpush1.bf16.msra.mxu1 %v5535_v63  ;;  %v5554_v63 = vld [vmem:[#allocation2 + $0x3a0] ss:$16 sps:$4 sm:$0xff]  }
  0xad   :  { %1399 = vmatpush1.bf16.msra.mxu0 %v5460_v41  ;;  %1562 = vmatprep.subr.bf16.mxu1 %v5539_v0  ;;  %v5581_v41 = vld [vmem:[#allocation2 + $0x428] ss:$16 sps:$4 sm:$0xff]  }
  0xae   :  { %1400 = vmatprep.subr.bf16.mxu0 %v5461_v44  ;;  %v5524_v44 = vld [vmem:[#allocation2 + $0x300] ss:$16 sps:$4 sm:$0xff]   ;;  %v5617_v0 = vld [vmem:[#allocation2 + $0x4e8] ss:$16 sps:$4 sm:$0xff]  }
  0xb0   :  { %1563 = vmatpush1.bf16.msra.mxu1 %v5541_v5  ;;  %v5623_v5 = vld [vmem:[#allocation2 + $0x508] ss:$16 sps:$4 sm:$0xff]  }
  0xb1   :  { %1401 = vmatpush1.bf16.msra.mxu0 %v5463_v45  ;;  %1564 = vmatprep.subr.bf16.mxu1 %v5545_v6  ;;  %v5595_v45 = vld [vmem:[#allocation2 + $0x46c] ss:$16 sps:$4 sm:$0xff]  }
  0xb2   :  { %1402 = vmatprep.subr.bf16.mxu0 %v5464_v48  ;;  %v5593_v48 = vld [vmem:[#allocation2 + $0x468] ss:$16 sps:$4 sm:$0xff]   ;;  %v5631_v6 = vld [vmem:[#allocation2 + $0x52c] ss:$16 sps:$4 sm:$0xff]  }
  0xb4   :  { %1565 = vmatpush1.bf16.msra.mxu1 %v5547_v11  ;;  %v5629_v11 = vld [vmem:[#allocation2 + $0x528] ss:$16 sps:$4 sm:$0xff]  }
  0xb5   :  { %1403 = vmatpush1.bf16.msra.mxu0 %v5466_v49  ;;  %1566 = vmatprep.subr.bf16.mxu1 %v5551_v13  ;;  %v5601_v49 = vld [vmem:[#allocation2 + $0x48c] ss:$16 sps:$4 sm:$0xff]  }
  0xb6   :  { %1404 = vmatprep.subr.bf16.mxu0 %v5467_v52  ;;  %v5599_v52 = vld [vmem:[#allocation2 + $0x488] ss:$16 sps:$4 sm:$0xff]   ;;  %v5637_v13 = vld [vmem:[#allocation2 + $0x54c] ss:$16 sps:$4 sm:$0xff]  }
  0xb8   :  { %1567 = vmatpush1.bf16.msra.mxu1 %v5553_v17  ;;  %v5635_v17 = vld [vmem:[#allocation2 + $0x548] ss:$16 sps:$4 sm:$0xff]  }
  0xb9   :  { %1405 = vmatpush1.bf16.msra.mxu0 %v5469_v53  ;;  %1568 = vmatprep.subr.bf16.mxu1 %v5557_v18  ;;  %v5607_v53 = vld [vmem:[#allocation2 + $0x4ac] ss:$16 sps:$4 sm:$0xff]  }
  0xba   :  { %1406 = vmatprep.subr.bf16.mxu0 %v5470_v56  ;;  %v5605_v56 = vld [vmem:[#allocation2 + $0x4a8] ss:$16 sps:$4 sm:$0xff]   ;;  %v5643_v18 = vld [vmem:[#allocation2 + $0x56c] ss:$16 sps:$4 sm:$0xff]  }
  0xbc   :  { %1569 = vmatpush1.bf16.msra.mxu1 %v5559_v21  ;;  %v5641_v21 = vld [vmem:[#allocation2 + $0x568] ss:$16 sps:$4 sm:$0xff]  }
  0xbd   :  { %1407 = vmatpush1.bf16.msra.mxu0 %v5472_v57  ;;  %1570 = vmatprep.subr.bf16.mxu1 %v5563_v22  ;;  %v5613_v57 = vld [vmem:[#allocation2 + $0x4cc] ss:$16 sps:$4 sm:$0xff]   ;;  %v5586_v22 = vld [vmem:[#allocation2 + $0x444] ss:$16 sps:$4 sm:$0xff]  }
  0xbe   :  { %1408 = vmatprep.subr.bf16.mxu0 %v5473_v60  ;;  %v5611_v60 = vld [vmem:[#allocation2 + $0x4c8] ss:$16 sps:$4 sm:$0xff]  }
  0xc0   :  { %1571 = vmatpush1.bf16.msra.mxu1 %v5565_v25  ;;  %v5584_v25 = vld [vmem:[#allocation2 + $0x440] ss:$16 sps:$4 sm:$0xff]  }
  0xc1   :  { %1409 = vmatpush1.bf16.msra.mxu0 %v5475_v62  ;;  %1572 = vmatprep.subr.bf16.mxu1 %v5569_v27  ;;  %v5556_v62 = vld [vmem:[#allocation2 + $0x3a4] ss:$16 sps:$4 sm:$0xff]  }
  0xc2   :  { %1419 = vmatprep.subr.bf16.mxu0 %v5478_v1  ;;  %v5625_v1 = vld [vmem:[#allocation2 + $0x50c] ss:$16 sps:$4 sm:$0xff]   ;;  %v5592_v27 = vld [vmem:[#allocation2 + $0x464] ss:$16 sps:$4 sm:$0xff]  }
  0xc4   :  { %1411 = vmatmul.mubr.bf16.vlgmr.msra.gmra.mrb[0].mxu0 %v6707_v4  ;;  %1573 = vmatpush1.bf16.msra.mxu1 %v5571_v30  ;;  %v5590_v30 = vld [vmem:[#allocation2 + $0x460] ss:$16 sps:$4 sm:$0xff]  }
  0xc5   :  { %1420 = vmatpush1.bf16.msra.mxu0 %v5476_v3  ;;  %1451 = vmatprep.mubr.bf16.mxu0 %v6699_v31  ;;  %v381_v31 = vcombine.high %v379_v2, %v379_v2  ;;  %v5562_v2 = vld [vmem:[#allocation2 + $0x3c4] ss:$16 sps:$4 sm:$0xff]   ;;  %v5560_v3 = vld [vmem:[#allocation2 + $0x3c0] ss:$16 sps:$4 sm:$0xff]  }
  0xc6   :  { %1421 = vmatprep.subr.bf16.mxu0 %v5484_v9  ;;  %1583 = vmatprep.subr.bf16.mxu1 %v5577_v32  ;;  %v5568_v9 = vld [vmem:[#allocation2 + $0x3e4] ss:$16 sps:$4 sm:$0xff]   ;;  %v5661_v32 = vld [vmem:[#allocation2 + $0x5cc] ss:$16 sps:$4 sm:$0xff]  }
  0xc7   :  { %v6719_v37 = vrot.slane %v381_v31, %v6680_v16  ;;  %1575 = vmatmul.mubr.bf16.vlgmr.msra.gmra.mrb[0].mxu1 %v6716_v34  ;;  %v5587_v16 = vld [vmem:[#allocation2 + $0x448] ss:$16 sps:$4 sm:$0xff]   ;;  %v5598_v31 = vld [vmem:[#allocation2 + $0x484] ss:$16 sps:$4 sm:$0xff]  }
  0xc8   :  { %1584 = vmatpush1.bf16.msra.mxu1 %v5575_v36  ;;  %v5667_v36 = vld [vmem:[#allocation2 + $0x5ec] ss:$16 sps:$4 sm:$0xff]  }
  0xc9   :  { %1422 = vmatpush1.bf16.msra.mxu0 %v5482_v10  ;;  %1615 = vmatprep.mubr.bf16.mxu1 %v6719_v37  ;;  %v5566_v10 = vld [vmem:[#allocation2 + $0x3e0] ss:$16 sps:$4 sm:$0xff]  }
  0xca   :  { %1423 = vmatprep.subr.bf16.mxu0 %v5490_v14  ;;  %1585 = vmatprep.subr.bf16.mxu1 %v5583_v38  ;;  %v5574_v14 = vld [vmem:[#allocation2 + $0x404] ss:$16 sps:$4 sm:$0xff]   ;;  %v5602_v38 = vld [vmem:[#allocation2 + $0x4a0] ss:$16 sps:$4 sm:$0xff]  }
  0xcc   :  { %1586 = vmatpush1.bf16.msra.mxu1 %v5581_v41  ;;  %v5616_v41 = vld [vmem:[#allocation2 + $0x4e4] ss:$16 sps:$4 sm:$0xff]  }
  0xcd   :  { %1424 = vmatpush1.bf16.msra.mxu0 %v5488_v15  ;;  %1587 = vmatprep.subr.bf16.mxu1 %v5589_v42  ;;  %v5572_v15 = vld [vmem:[#allocation2 + $0x400] ss:$16 sps:$4 sm:$0xff]  }
  0xce   :  { %1425 = vmatprep.subr.bf16.mxu0 %v5496_v19  ;;  %v5580_v19 = vld [vmem:[#allocation2 + $0x424] ss:$16 sps:$4 sm:$0xff]   ;;  %v5614_v42 = vld [vmem:[#allocation2 + $0x4e0] ss:$16 sps:$4 sm:$0xff]  }
  0xd0   :  { %1588 = vmatpush1.bf16.msra.mxu1 %v5587_v16  ;;  %v5628_v16 = vld [vmem:[#allocation2 + $0x524] ss:$16 sps:$4 sm:$0xff]  }
  0xd1   :  { %1426 = vmatpush1.bf16.msra.mxu0 %v5494_v20  ;;  %1589 = vmatprep.subr.bf16.mxu1 %v5595_v45  ;;  %v5578_v20 = vld [vmem:[#allocation2 + $0x420] ss:$16 sps:$4 sm:$0xff]  }
  0xd2   :  { %1427 = vmatprep.subr.bf16.mxu0 %v5502_v23  ;;  %v5649_v23 = vld [vmem:[#allocation2 + $0x58c] ss:$16 sps:$4 sm:$0xff]   ;;  %v5626_v45 = vld [vmem:[#allocation2 + $0x520] ss:$16 sps:$4 sm:$0xff]  }
  0xd4   :  { %1590 = vmatpush1.bf16.msra.mxu1 %v5593_v48  ;;  %v5640_v48 = vld [vmem:[#allocation2 + $0x564] ss:$16 sps:$4 sm:$0xff]  }
  0xd5   :  { %1428 = vmatpush1.bf16.msra.mxu0 %v5500_v24  ;;  %1591 = vmatprep.subr.bf16.mxu1 %v5601_v49  ;;  %v5647_v24 = vld [vmem:[#allocation2 + $0x588] ss:$16 sps:$4 sm:$0xff]   ;;  %v5638_v49 = vld [vmem:[#allocation2 + $0x560] ss:$16 sps:$4 sm:$0xff]  }
  0xd6   :  { %1429 = vmatprep.subr.bf16.mxu0 %v5508_v28  ;;  %v5655_v28 = vld [vmem:[#allocation2 + $0x5ac] ss:$16 sps:$4 sm:$0xff]  }
  0xd8   :  { %1592 = vmatpush1.bf16.msra.mxu1 %v5599_v52  ;;  %v5652_v52 = vld [vmem:[#allocation2 + $0x5a4] ss:$16 sps:$4 sm:$0xff]  }
  0xd9   :  { %1430 = vmatpush1.bf16.msra.mxu0 %v5506_v29  ;;  %1593 = vmatprep.subr.bf16.mxu1 %v5607_v53  ;;  %v5653_v29 = vld [vmem:[#allocation2 + $0x5a8] ss:$16 sps:$4 sm:$0xff]   ;;  %v5650_v53 = vld [vmem:[#allocation2 + $0x5a0] ss:$16 sps:$4 sm:$0xff]  }
  0xda   :  { %1431 = vmatprep.subr.bf16.mxu0 %v5514_v33  ;;  %v5659_v33 = vld [vmem:[#allocation2 + $0x5c8] ss:$16 sps:$4 sm:$0xff]  }
  0xdc   :  { %1594 = vmatpush1.bf16.msra.mxu1 %v5605_v56  ;;  %v5664_v56 = vld [vmem:[#allocation2 + $0x5e4] ss:$16 sps:$4 sm:$0xff]  }
  0xdd   :  { %1432 = vmatpush1.bf16.msra.mxu0 %v5512_v35  ;;  %1595 = vmatprep.subr.bf16.mxu1 %v5613_v57  ;;  %v5604_v35 = vld [vmem:[#allocation2 + $0x4a4] ss:$16 sps:$4 sm:$0xff]   ;;  %v5662_v57 = vld [vmem:[#allocation2 + $0x5e0] ss:$16 sps:$4 sm:$0xff]  }
  0xde   :  { %1433 = vmatprep.subr.bf16.mxu0 %v5520_v39  ;;  %v5610_v39 = vld [vmem:[#allocation2 + $0x4c4] ss:$16 sps:$4 sm:$0xff]  }
  0xe0   :  { %1596 = vmatpush1.bf16.msra.mxu1 %v5611_v60  ;;  %v5674_v60 = vld [vmem:[#allocation2 + $0x2c] ss:$16 sps:$4 sm:$0xff]  }
  0xe1   :  { %1434 = vmatpush1.bf16.msra.mxu0 %v5518_v40  ;;  %1597 = vmatprep.subr.bf16.mxu1 %v5619_v61  ;;  %v5608_v40 = vld [vmem:[#allocation2 + $0x4c0] ss:$16 sps:$4 sm:$0xff]   ;;  %v5672_v61 = vld [vmem:[#allocation2 + $0x28] ss:$16 sps:$4 sm:$0xff]  }
  0xe2   :  { %1435 = vmatprep.subr.bf16.mxu0 %v5526_v43  ;;  %v5622_v43 = vld [vmem:[#allocation2 + $0x504] ss:$16 sps:$4 sm:$0xff]  }
  0xe4   :  { %1598 = vmatpush1.bf16.msra.mxu1 %v5617_v0  ;;  %v5680_v0 = vld [vmem:[#allocation2 + $0x6c] ss:$16 sps:$4 sm:$0xff]  }
  0xe5   :  { %1436 = vmatpush1.bf16.msra.mxu0 %v5524_v44  ;;  %1599 = vmatprep.subr.bf16.mxu1 %v5625_v1  ;;  %v5620_v44 = vld [vmem:[#allocation2 + $0x500] ss:$16 sps:$4 sm:$0xff]   ;;  %v5678_v1 = vld [vmem:[#allocation2 + $0x68] ss:$16 sps:$4 sm:$0xff]  }
  0xe6   :  { %1437 = vmatprep.subr.bf16.mxu0 %v5532_v46  ;;  %v5634_v46 = vld [vmem:[#allocation2 + $0x544] ss:$16 sps:$4 sm:$0xff]  }
  0xe8   :  { %1600 = vmatpush1.bf16.msra.mxu1 %v5623_v5  ;;  %v5686_v5 = vld [vmem:[#allocation2 + $0xac] ss:$16 sps:$4 sm:$0xff]  }
  0xe9   :  { %1438 = vmatpush1.bf16.msra.mxu0 %v5530_v47  ;;  %1601 = vmatprep.subr.bf16.mxu1 %v5631_v6  ;;  %v5632_v47 = vld [vmem:[#allocation2 + $0x540] ss:$16 sps:$4 sm:$0xff]   ;;  %v5684_v6 = vld [vmem:[#allocation2 + $0xa8] ss:$16 sps:$4 sm:$0xff]  }
  0xea   :  { %1439 = vmatprep.subr.bf16.mxu0 %v5538_v50  ;;  %v5646_v50 = vld [vmem:[#allocation2 + $0x584] ss:$16 sps:$4 sm:$0xff]  }
  0xec   :  { %1602 = vmatpush1.bf16.msra.mxu1 %v5629_v11  ;;  %v5695_v11 = vld [vmem:[#allocation2 + $0x10c] ss:$16 sps:$4 sm:$0xff]  }
  0xed   :  { %1440 = vmatpush1.bf16.msra.mxu0 %v5536_v51  ;;  %1603 = vmatprep.subr.bf16.mxu1 %v5637_v13  ;;  %v5644_v51 = vld [vmem:[#allocation2 + $0x580] ss:$16 sps:$4 sm:$0xff]   ;;  %v5693_v13 = vld [vmem:[#allocation2 + $0x108] ss:$16 sps:$4 sm:$0xff]  }
  0xee   :  { %1441 = vmatprep.subr.bf16.mxu0 %v5544_v54  ;;  %v5658_v54 = vld [vmem:[#allocation2 + $0x5c4] ss:$16 sps:$4 sm:$0xff]  }
  0xf0   :  { %1604 = vmatpush1.bf16.msra.mxu1 %v5635_v17  ;;  %v5701_v17 = vld [vmem:[#allocation2 + $0x14c] ss:$16 sps:$4 sm:$0xff]  }
  0xf1   :  { %1442 = vmatpush1.bf16.msra.mxu0 %v5542_v55  ;;  %1605 = vmatprep.subr.bf16.mxu1 %v5643_v18  ;;  %v5656_v55 = vld [vmem:[#allocation2 + $0x5c0] ss:$16 sps:$4 sm:$0xff]   ;;  %v5699_v18 = vld [vmem:[#allocation2 + $0x148] ss:$16 sps:$4 sm:$0xff]  }
  0xf2   :  { %1443 = vmatprep.subr.bf16.mxu0 %v5550_v58  ;;  %v5671_v58 = vld [vmem:[#allocation2 + $0xc] ss:$16 sps:$4 sm:$0xff]  }
  0xf4   :  { %1606 = vmatpush1.bf16.msra.mxu1 %v5641_v21  ;;  %v5707_v21 = vld [vmem:[#allocation2 + $0x18c] ss:$16 sps:$4 sm:$0xff]  }
  0xf5   :  { %1444 = vmatpush1.bf16.msra.mxu0 %v5548_v59  ;;  %1607 = vmatprep.subr.bf16.mxu1 %v5649_v23  ;;  %v5669_v59 = vld [vmem:[#allocation2 + $0x8] ss:$16 sps:$4 sm:$0xff]   ;;  %v5710_v23 = vld [vmem:[#allocation2 + $0x1ac] ss:$16 sps:$4 sm:$0xff]  }
  0xf6   :  { %1445 = vmatprep.subr.bf16.mxu0 %v5556_v62  ;;  %v5677_v62 = vld [vmem:[#allocation2 + $0x4c] ss:$16 sps:$4 sm:$0xff]  }
  0xf8   :  { %1608 = vmatpush1.bf16.msra.mxu1 %v5647_v24  ;;  %v5708_v24 = vld [vmem:[#allocation2 + $0x1a8] ss:$16 sps:$4 sm:$0xff]  }
  0xf9   :  { %1446 = vmatpush1.bf16.msra.mxu0 %v5554_v63  ;;  %1609 = vmatprep.subr.bf16.mxu1 %v5655_v28  ;;  %v5675_v63 = vld [vmem:[#allocation2 + $0x48] ss:$16 sps:$4 sm:$0xff]   ;;  %v5716_v28 = vld [vmem:[#allocation2 + $0x1ec] ss:$16 sps:$4 sm:$0xff]  }
  0xfa   :  { %1447 = vmatprep.subr.bf16.mxu0 %v5562_v2  ;;  %v5683_v2 = vld [vmem:[#allocation2 + $0x8c] ss:$16 sps:$4 sm:$0xff]  }
  0xfc   :  { %1610 = vmatpush1.bf16.msra.mxu1 %v5653_v29  ;;  %v5714_v29 = vld [vmem:[#allocation2 + $0x1e8] ss:$16 sps:$4 sm:$0xff]  }
  0xfd   :  { %1448 = vmatpush1.bf16.msra.mxu0 %v5560_v3  ;;  %1611 = vmatprep.subr.bf16.mxu1 %v5661_v32  ;;  %v5681_v3 = vld [vmem:[#allocation2 + $0x88] ss:$16 sps:$4 sm:$0xff]   ;;  %v5722_v32 = vld [vmem:[#allocation5 + $0x14] ss:$8 sps:$4 sm:$0xff]  }
  0xfe   :  { %1449 = vmatprep.subr.bf16.mxu0 %v5568_v9  ;;  %v5689_v9 = vld [vmem:[#allocation2 + $0xcc] ss:$16 sps:$4 sm:$0xff]  }
 0x100   :  { %1612 = vmatpush1.bf16.msra.mxu1 %v5659_v33  ;;  %v5720_v33 = vld [vmem:[#allocation5 + $0x10] ss:$8 sps:$4 sm:$0xff]  }
 0x101   :  { %1450 = vmatpush1.bf16.msra.mxu0 %v5566_v10  ;;  %1613 = vmatprep.subr.bf16.mxu1 %v5667_v36  ;;  %v5692_v10 = vld [vmem:[#allocation2 + $0xec] ss:$16 sps:$4 sm:$0xff]  }
 0x102   :  { %1460 = vmatprep.subr.bf16.mxu0 %v5574_v14  ;;  %v5698_v14 = vld [vmem:[#allocation2 + $0x12c] ss:$16 sps:$4 sm:$0xff]  }
 0x103   :  { %v5728_v36 = vld [vmem:[#allocation5 + $0x34] ss:$8 sps:$4 sm:$0xff]  }
 0x104   :  { %1452 = vmatmul.mubr.bf16.vlgmr.msra.gmra.mrb[0].mxu0 %v6716_v34  ;;  %v5596_v34 = vld [vmem:[#allocation2 + $0x480] ss:$16 sps:$4 sm:$0xff]  }
 0x105   :  { %1461 = vmatpush1.bf16.msra.mxu0 %v5572_v15  ;;  %1492 = vmatprep.mubr.bf16.mxu0 %v6719_v37  ;;  %v5665_v37 = vld [vmem:[#allocation2 + $0x5e8] ss:$16 sps:$4 sm:$0xff]  }
 0x106   :  { %1462 = vmatprep.subr.bf16.mxu0 %v5580_v19  ;;  %1614 = vmatpush1.bf16.msra.mxu1 %v5665_v37  ;;  %v5696_v15 = vld [vmem:[#allocation2 + $0x128] ss:$16 sps:$4 sm:$0xff]   ;;  %v5704_v19 = vld [vmem:[#allocation2 + $0x16c] ss:$16 sps:$4 sm:$0xff]  }
 0x107   :  { %v5726_v37 = vld [vmem:[#allocation5 + $0x30] ss:$8 sps:$4 sm:$0xff]  }
 0x109   :  { %1463 = vmatpush1.bf16.msra.mxu0 %v5578_v20  ;;  %1616 = vmatmul.mubr.bf16.vlgmr.msra.gmra.mrb[0].mxu1 %v6710_v8  ;;  %v5702_v20 = vld [vmem:[#allocation2 + $0x168] ss:$16 sps:$4 sm:$0xff]  }
 0x10a   :  { %1464 = vmatprep.subr.bf16.mxu0 %v5586_v22  ;;  %v5705_v22 = vld [vmem:[#allocation2 + $0x188] ss:$16 sps:$4 sm:$0xff]  }
 0x10d   :  { %1465 = vmatpush1.bf16.msra.mxu0 %v5584_v25  ;;  %v5713_v25 = vld [vmem:[#allocation2 + $0x1cc] ss:$16 sps:$4 sm:$0xff]  }
 0x10e   :  { %1466 = vmatprep.subr.bf16.mxu0 %v5592_v27  ;;  %v5711_v27 = vld [vmem:[#allocation2 + $0x1c8] ss:$16 sps:$4 sm:$0xff]  }
 0x111   :  { %1467 = vmatpush1.bf16.msra.mxu0 %v5590_v30  ;;  %v5719_v30 = vld [vmem:[#allocation5 + $0x4] ss:$8 sps:$4 sm:$0xff]  }
 0x112   :  { %1468 = vmatprep.subr.bf16.mxu0 %v5598_v31  ;;  %v5717_v31 = vld [vmem:[#allocation5] ss:$8 sps:$4 sm:$0xff]  }
 0x115   :  { %1469 = vmatpush1.bf16.msra.mxu0 %v5596_v34  ;;  %v5725_v34 = vld [vmem:[#allocation5 + $0x24] ss:$8 sps:$4 sm:$0xff]  }
 0x116   :  { %1470 = vmatprep.subr.bf16.mxu0 %v5604_v35  ;;  %v5723_v35 = vld [vmem:[#allocation5 + $0x20] ss:$8 sps:$4 sm:$0xff]  }
 0x119   :  { %1471 = vmatpush1.bf16.msra.mxu0 %v5602_v38  ;;  %v5731_v38 = vld [vmem:[#allocation5 + $0x44] ss:$8 sps:$4 sm:$0xff]  }
 0x11a   :  { %1472 = vmatprep.subr.bf16.mxu0 %v5610_v39  ;;  %v5729_v39 = vld [vmem:[#allocation5 + $0x40] ss:$8 sps:$4 sm:$0xff]  }
 0x11d   :  { %1473 = vmatpush1.bf16.msra.mxu0 %v5608_v40  ;;  %v5734_v40 = vld [vmem:[#allocation5 + $0x54] ss:$8 sps:$4 sm:$0xff]  }
 0x11e   :  { %1474 = vmatprep.subr.bf16.mxu0 %v5616_v41  ;;  %v5732_v41 = vld [vmem:[#allocation5 + $0x50] ss:$8 sps:$4 sm:$0xff]  }
 0x121   :  { %1475 = vmatpush1.bf16.msra.mxu0 %v5614_v42  ;;  %v5737_v42 = vld [vmem:[#allocation5 + $0x64] ss:$8 sps:$4 sm:$0xff]  }
 0x122   :  { %1476 = vmatprep.subr.bf16.mxu0 %v5622_v43  ;;  %v5740_v43 = vld [vmem:[#allocation5 + $0x74] ss:$8 sps:$4 sm:$0xff]  }
 0x125   :  { %1477 = vmatpush1.bf16.msra.mxu0 %v5620_v44  ;;  %v5738_v44 = vld [vmem:[#allocation5 + $0x70] ss:$8 sps:$4 sm:$0xff]  }
 0x126   :  { %1478 = vmatprep.subr.bf16.mxu0 %v5628_v16  ;;  %v5743_v16 = vld [vmem:[#allocation5 + $0x84] ss:$8 sps:$4 sm:$0xff]  }
 0x129   :  { %1479 = vmatpush1.bf16.msra.mxu0 %v5626_v45  ;;  %v5741_v45 = vld [vmem:[#allocation5 + $0x80] ss:$8 sps:$4 sm:$0xff]  }
 0x12a   :  { %1480 = vmatprep.subr.bf16.mxu0 %v5634_v46  ;;  %v5746_v46 = vld [vmem:[#allocation5 + $0x94] ss:$8 sps:$4 sm:$0xff]  }
 0x12d   :  { %1481 = vmatpush1.bf16.msra.mxu0 %v5632_v47  ;;  %v5744_v47 = vld [vmem:[#allocation5 + $0x90] ss:$8 sps:$4 sm:$0xff]  }
 0x12e   :  { %1482 = vmatprep.subr.bf16.mxu0 %v5640_v48  ;;  %v5749_v48 = vld [vmem:[#allocation5 + $0xa4] ss:$8 sps:$4 sm:$0xff]  }
 0x131   :  { %1483 = vmatpush1.bf16.msra.mxu0 %v5638_v49  ;;  %v5747_v49 = vld [vmem:[#allocation5 + $0xa0] ss:$8 sps:$4 sm:$0xff]  }
 0x132   :  { %1484 = vmatprep.subr.bf16.mxu0 %v5646_v50  ;;  %v5752_v50 = vld [vmem:[#allocation5 + $0xb4] ss:$8 sps:$4 sm:$0xff]  }
 0x135   :  { %1485 = vmatpush1.bf16.msra.mxu0 %v5644_v51  ;;  %v5750_v51 = vld [vmem:[#allocation5 + $0xb0] ss:$8 sps:$4 sm:$0xff]  }
 0x136   :  { %1486 = vmatprep.subr.bf16.mxu0 %v5652_v52  ;;  %v5755_v52 = vld [vmem:[#allocation5 + $0xc4] ss:$8 sps:$4 sm:$0xff]  }
 0x139   :  { %1487 = vmatpush1.bf16.msra.mxu0 %v5650_v53  ;;  %v5753_v53 = vld [vmem:[#allocation5 + $0xc0] ss:$8 sps:$4 sm:$0xff]  }
 0x13a   :  { %1488 = vmatprep.subr.bf16.mxu0 %v5658_v54  ;;  %v5758_v54 = vld [vmem:[#allocation5 + $0xd4] ss:$8 sps:$4 sm:$0xff]  }
 0x13d   :  { %1489 = vmatpush1.bf16.msra.mxu0 %v5656_v55  ;;  %v5756_v55 = vld [vmem:[#allocation5 + $0xd0] ss:$8 sps:$4 sm:$0xff]  }
 0x13e   :  { %1490 = vmatprep.subr.bf16.mxu0 %v5664_v56  ;;  %v5761_v56 = vld [vmem:[#allocation5 + $0xe4] ss:$8 sps:$4 sm:$0xff]  }
 0x141   :  { %1491 = vmatpush1.bf16.msra.mxu0 %v5662_v57  ;;  %v5759_v57 = vld [vmem:[#allocation5 + $0xe0] ss:$8 sps:$4 sm:$0xff]  }
 0x142   :  { %1501 = vmatprep.subr.bf16.mxu0 %v5671_v58  ;;  %v5764_v58 = vld [vmem:[#allocation5 + $0xf4] ss:$8 sps:$4 sm:$0xff]  }
 0x144   :  { %1493 = vmatmul.mubr.bf16.vlgmr.msra.gmra.mrb[0].mxu0 %v6710_v8  ;;  %v5687_v8 = vld [vmem:[#allocation2 + $0xc8] ss:$16 sps:$4 sm:$0xff]  }
 0x145   :  { %1502 = vmatpush1.bf16.msra.mxu0 %v5669_v59  ;;  %1533 = vmatprep.mubr.bf16.mxu0 %v6694_v26  ;;  %v5690_v26 = vld [vmem:[#allocation2 + $0xe8] ss:$16 sps:$4 sm:$0xff]  }
 0x146   :  { %1503 = vmatprep.subr.bf16.mxu0 %v5674_v60  ;;  %v5762_v59 = vld [vmem:[#allocation5 + $0xf0] ss:$8 sps:$4 sm:$0xff]   ;;  %v5767_v60 = vld [vmem:[#allocation5 + $0x104] ss:$8 sps:$4 sm:$0xff]  }
 0x149   :  { %1504 = vmatpush1.bf16.msra.mxu0 %v5672_v61  ;;  %v5813_v61 = vld [vmem:[#allocation7 + $0x40] sm:$0xff]  }
 0x14a   :  { %1505 = vmatprep.subr.bf16.mxu0 %v5677_v62  ;;  %v5814_v62 = vld [vmem:[#allocation7] sm:$0xff]   ;;  %5298 = vmatprep.subr.bf16.mxu1 %v5813_v61 }
 0x14b   :  { %5299 = vmatpush3.bf16.msra.mxu1 %v5814_v62  ;;  %v5807_v62 = vld [vmem:[#allocation5 + $0x1e0] ss:$8 sps:$4 sm:$0xff]  }
 0x14d   :  { %1506 = vmatpush1.bf16.msra.mxu0 %v5675_v63  ;;  %v5815_v63 = vld [vmem:[#allocation7 + $0x48] sm:$0xff]  }
 0x14e   :  { %1507 = vmatprep.subr.bf16.mxu0 %v5680_v0  ;;  %v5816_v0 = vld [vmem:[#allocation7 + $0x8] sm:$0xff]   ;;  %5300 = vmatprep.subr.bf16.mxu1 %v5815_v63  ;;  %v5812_v63 = vld [vmem:[#allocation5 + $0x1f4] ss:$8 sps:$4 sm:$0xff]  }
 0x14f   :  { %5301 = vmatpush3.bf16.msra.mxu1 %v5816_v0 }
 0x151   :  { %1508 = vmatpush1.bf16.msra.mxu0 %v5678_v1  ;;  %v5817_v1 = vld [vmem:[#allocation7 + $0x50] sm:$0xff]  }
 0x152   :  { %1509 = vmatprep.subr.bf16.mxu0 %v5683_v2  ;;  %v5818_v2 = vld [vmem:[#allocation7 + $0x10] sm:$0xff]   ;;  %5302 = vmatprep.subr.bf16.mxu1 %v5817_v1 }
 0x153   :  { %5303 = vmatpush3.bf16.msra.mxu1 %v5818_v2 }
 0x155   :  { %1510 = vmatpush1.bf16.msra.mxu0 %v5681_v3  ;;  %v5819_v3 = vld [vmem:[#allocation7 + $0x58] sm:$0xff]  }
 0x156   :  { %1511 = vmatprep.subr.bf16.mxu0 %v5686_v5  ;;  %v5820_v5 = vld [vmem:[#allocation7 + $0x18] sm:$0xff]   ;;  %5304 = vmatprep.subr.bf16.mxu1 %v5819_v3 }
 0x157   :  { %5305 = vmatpush3.bf16.msra.mxu1 %v5820_v5 }
 0x159   :  { %1512 = vmatpush1.bf16.msra.mxu0 %v5684_v6 }
 0x15a   :  { %1513 = vmatprep.subr.bf16.mxu0 %v5689_v9  ;;  %v5821_v9 = vld [vmem:[#allocation7 + $0x60] sm:$0xff]  }
 0x15b   :  { %5306 = vmatprep.subr.bf16.mxu1 %v5821_v9  ;;  %v5810_v9 = vld [vmem:[#allocation5 + $0x1f0] ss:$8 sps:$4 sm:$0xff]  }
 0x15d   :  { %1514 = vmatpush1.bf16.msra.mxu0 %v5687_v8 }
 0x15e   :  { %1515 = vmatprep.subr.bf16.mxu0 %v5692_v10 }
 0x161   :  { %1516 = vmatpush1.bf16.msra.mxu0 %v5690_v26 }
 0x162   :  { %1517 = vmatprep.subr.bf16.mxu0 %v5695_v11  ;;  %v5822_v11 = vld [vmem:[#allocation7 + $0x20] sm:$0xff]  }
 0x163   :  { %5307 = vmatpush3.bf16.msra.mxu1 %v5822_v11 }
 0x165   :  { %1518 = vmatpush1.bf16.msra.mxu0 %v5693_v13  ;;  %v5823_v13 = vld [vmem:[#allocation7 + $0x68] sm:$0xff]  }
 0x166   :  { %1519 = vmatprep.subr.bf16.mxu0 %v5698_v14  ;;  %v5824_v14 = vld [vmem:[#allocation7 + $0x28] sm:$0xff]   ;;  %5308 = vmatprep.subr.bf16.mxu1 %v5823_v13 }
 0x167   :  { %5309 = vmatpush3.bf16.msra.mxu1 %v5824_v14 }
 0x169   :  { %1520 = vmatpush1.bf16.msra.mxu0 %v5696_v15  ;;  %v6734_v15 = vsub.s32 0, %v6677_v12 }
 0x16a   :  { %1521 = vmatprep.subr.bf16.mxu0 %v5701_v17  ;;  %v6739_v17 = vld [vmem:[%s6957_s26] sm:$0xf] }
 0x16d   :  { %1522 = vmatpush1.bf16.msra.mxu0 %v5699_v18  ;;  %v6742_v18 = vsub.s32 1, %v6677_v12 }
 0x16e   :  { %1523 = vmatprep.subr.bf16.mxu0 %v5704_v19  ;;  %v347_v19 = vrot.slane %v6739_v17, %v6734_v15 }
 0x171   :  { %1524 = vmatpush1.bf16.msra.mxu0 %v5702_v20  ;;  %v351_v20 = vrot.slane %v6739_v17, %v6742_v18 }
 0x172   :  { %1525 = vmatprep.subr.bf16.mxu0 %v5707_v21 }
 0x175   :  { %1526 = vmatpush1.bf16.msra.mxu0 %v5705_v22 }
 0x176   :  { %1527 = vmatprep.subr.bf16.mxu0 %v5710_v23 }
 0x179   :  { %1528 = vmatpush1.bf16.msra.mxu0 %v5708_v24 }
 0x17a   :  { %1529 = vmatprep.subr.bf16.mxu0 %v5713_v25 }
 0x17d   :  { %1530 = vmatpush1.bf16.msra.mxu0 %v5711_v27 }
 0x17e   :  { %1531 = vmatprep.subr.bf16.mxu0 %v5716_v28 }
 0x181   :  { %1532 = vmatpush1.bf16.msra.mxu0 %v5714_v29 }
 0x182   :  { %2028 = vmatprep.subr.bf16.mxu0 %v5719_v30 }
 0x184   :  { %1534 = vmatmul.mubr.bf16.vlgmr.msra.gmra.mrb[4].mxu0 %v6707_v4  ;;  %v5735_v4 = vld [vmem:[#allocation5 + $0x60] ss:$8 sps:$4 sm:$0xff]  }
 0x185   :  { %2029 = vmatpush1.bf16.msra.mxu0 %v5717_v31  ;;  %v5765_v31 = vld [vmem:[#allocation5 + $0x100] ss:$8 sps:$4 sm:$0xff]  }
 0x186   :  { %2030 = vmatprep.subr.bf16.mxu0 %v5722_v32 }
 0x189   :  { %2031 = vmatpush1.bf16.msra.mxu0 %v5720_v33  ;;  %v5770_v33 = vld [vmem:[#allocation5 + $0x114] ss:$8 sps:$4 sm:$0xff]  }
 0x18a   :  { %2032 = vmatprep.subr.bf16.mxu0 %v5725_v34  ;;  %v5768_v34 = vld [vmem:[#allocation5 + $0x110] ss:$8 sps:$4 sm:$0xff]  }
 0x18d   :  { %2033 = vmatpush1.bf16.msra.mxu0 %v5723_v35  ;;  %v5773_v35 = vld [vmem:[#allocation5 + $0x124] ss:$8 sps:$4 sm:$0xff]  }
 0x18e   :  { %2034 = vmatprep.subr.bf16.mxu0 %v5728_v36  ;;  %v5771_v36 = vld [vmem:[#allocation5 + $0x120] ss:$8 sps:$4 sm:$0xff]  }
 0x191   :  { %2035 = vmatpush1.bf16.msra.mxu0 %v5726_v37  ;;  %v5776_v37 = vld [vmem:[#allocation5 + $0x134] ss:$8 sps:$4 sm:$0xff]  }
 0x192   :  { %2036 = vmatprep.subr.bf16.mxu0 %v5731_v38  ;;  %v5774_v38 = vld [vmem:[#allocation5 + $0x130] ss:$8 sps:$4 sm:$0xff]  }
 0x195   :  { %2037 = vmatpush1.bf16.msra.mxu0 %v5729_v39  ;;  %v5779_v39 = vld [vmem:[#allocation5 + $0x144] ss:$8 sps:$4 sm:$0xff]  }
 0x196   :  { %2038 = vmatprep.subr.bf16.mxu0 %v5734_v40  ;;  %v5777_v40 = vld [vmem:[#allocation5 + $0x140] ss:$8 sps:$4 sm:$0xff]  }
 0x199   :  { %2039 = vmatpush1.bf16.msra.mxu0 %v5732_v41  ;;  %v5782_v41 = vld [vmem:[#allocation5 + $0x154] ss:$8 sps:$4 sm:$0xff]  }
 0x19a   :  { %2040 = vmatprep.subr.bf16.mxu0 %v5737_v42  ;;  %v5780_v42 = vld [vmem:[#allocation5 + $0x150] ss:$8 sps:$4 sm:$0xff]  }
 0x19d   :  { %2041 = vmatpush1.bf16.msra.mxu0 %v5735_v4  ;;  %v5785_v4 = vld [vmem:[#allocation5 + $0x164] ss:$8 sps:$4 sm:$0xff]  }
 0x19e   :  { %2042 = vmatprep.subr.bf16.mxu0 %v5740_v43  ;;  %v5783_v43 = vld [vmem:[#allocation5 + $0x160] ss:$8 sps:$4 sm:$0xff]  }
 0x1a1   :  { %2043 = vmatpush1.bf16.msra.mxu0 %v5738_v44  ;;  %v5788_v44 = vld [vmem:[#allocation5 + $0x174] ss:$8 sps:$4 sm:$0xff]  }
 0x1a2   :  { %2044 = vmatprep.subr.bf16.mxu0 %v5743_v16  ;;  %v5786_v16 = vld [vmem:[#allocation5 + $0x170] ss:$8 sps:$4 sm:$0xff]  }
 0x1a5   :  { %2045 = vmatpush1.bf16.msra.mxu0 %v5741_v45  ;;  %v5791_v45 = vld [vmem:[#allocation5 + $0x184] ss:$8 sps:$4 sm:$0xff]  }
 0x1a6   :  { %2046 = vmatprep.subr.bf16.mxu0 %v5746_v46  ;;  %v5789_v46 = vld [vmem:[#allocation5 + $0x180] ss:$8 sps:$4 sm:$0xff]  }
 0x1a9   :  { %2047 = vmatpush1.bf16.msra.mxu0 %v5744_v47  ;;  %v5794_v47 = vld [vmem:[#allocation5 + $0x194] ss:$8 sps:$4 sm:$0xff]  }
 0x1aa   :  { %2048 = vmatprep.subr.bf16.mxu0 %v5749_v48  ;;  %v5792_v48 = vld [vmem:[#allocation5 + $0x190] ss:$8 sps:$4 sm:$0xff]  }
 0x1ad   :  { %2049 = vmatpush1.bf16.msra.mxu0 %v5747_v49  ;;  %v5797_v49 = vld [vmem:[#allocation5 + $0x1a4] ss:$8 sps:$4 sm:$0xff]  }
 0x1ae   :  { %2050 = vmatprep.subr.bf16.mxu0 %v5752_v50  ;;  %v5795_v50 = vld [vmem:[#allocation5 + $0x1a0] ss:$8 sps:$4 sm:$0xff]  }
 0x1b1   :  { %2051 = vmatpush1.bf16.msra.mxu0 %v5750_v51  ;;  %v5800_v51 = vld [vmem:[#allocation5 + $0x1b4] ss:$8 sps:$4 sm:$0xff]  }
 0x1b2   :  { %2052 = vmatprep.subr.bf16.mxu0 %v5755_v52  ;;  %v5798_v52 = vld [vmem:[#allocation5 + $0x1b0] ss:$8 sps:$4 sm:$0xff]  }
 0x1b5   :  { %2053 = vmatpush1.bf16.msra.mxu0 %v5753_v53  ;;  %v5803_v53 = vld [vmem:[#allocation5 + $0x1c4] ss:$8 sps:$4 sm:$0xff]  }
 0x1b6   :  { %2054 = vmatprep.subr.bf16.mxu0 %v5758_v54  ;;  %v5801_v54 = vld [vmem:[#allocation5 + $0x1c0] ss:$8 sps:$4 sm:$0xff]  }
 0x1b9   :  { %2055 = vmatpush1.bf16.msra.mxu0 %v5756_v55  ;;  %v5806_v55 = vld [vmem:[#allocation5 + $0x1d4] ss:$8 sps:$4 sm:$0xff]  }
 0x1ba   :  { %2056 = vmatprep.subr.bf16.mxu0 %v5761_v56  ;;  %v6749_v56 = vsub.s32 2, %v6677_v12 }
 0x1bd   :  { %2057 = vmatpush1.bf16.msra.mxu0 %v5759_v57  ;;  %v5804_v57 = vld [vmem:[#allocation5 + $0x1d0] ss:$8 sps:$4 sm:$0xff]  }
 0x1be   :  { %2058 = vmatprep.subr.bf16.mxu0 %v5764_v58  ;;  %v6752_v58 = vsub.s32 3, %v6677_v12 }
 0x1c0   :  { %v359_v61 = vrot.slane %v6739_v17, %v6752_v58 }
 0x1c1   :  { %2059 = vmatpush1.bf16.msra.mxu0 %v5762_v59  ;;  %v5809_v59 = vld [vmem:[#allocation5 + $0x1e4] ss:$8 sps:$4 sm:$0xff]  }
 0x1c2   :  { %2069 = vmatprep.subr.bf16.mxu0 %v5767_v60  ;;  %v355_v60 = vrot.slane %v6739_v17, %v6749_v56 }
 0x1dc   :  { %v6729_v6 = vpop.f32.mrb[0].mxu1 }
 0x1dd   :  { %v6731_v8 = vpop.f32.mrb[1].mxu1 }
 0x1de   :  { %v1621_v10 = vpop.f32.mrb[2].mxu1 }
 0x1df   :  { %v1622_v26 = vpop.f32.mrb[3].mxu1 }
 0x217   :  { %v1494_v21 = vpop.f32.mrb[0].mxu0 }
 0x218   :  { %v5365_v22 = vadd.f32 %v1494_v21, %v347_v19  ;;  %v1496_v23 = vpop.f32.mrb[1].mxu0  ;;  %v5826_v21 = vld [vmem:[#allocation7 + $0x30] sm:$0xff]  }
 0x219   :  { %v5366_v24 = vadd.f32 %v1496_v23, %v351_v20  ;;  %v1498_v25 = vpop.f32.mrb[2].mxu0  ;;  %v5825_v20 = vld [vmem:[#allocation7 + $0x70] sm:$0xff]   ;;  %v5828_v23 = vld [vmem:[#allocation7 + $0x38] sm:$0xff]  }
 0x21a   :  { %v1624_v27 = vmax.f32 %v5365_v22, 0.0  ;;  %v1499_v28 = vpop.f32.mrb[3].mxu0  ;;  %5310 = vmatprep.subr.bf16.mxu1 %v5825_v20  ;;  %v5827_v22 = vld [vmem:[#allocation7 + $0x78] sm:$0xff]   ;;  %v5855_v20 = vld [vmem:[#allocation8 + $0x60] ss:$8 sps:$4 sm:$0xff]  }
 0x21b   :  { %v1625_v29 = vmax.f32 %v5366_v24, 0.0  ;;  %5311 = vmatpush3.bf16.msra.mxu1 %v5826_v21  ;;  %v5860_v21 = vld [vmem:[#allocation8 + $0x74] ss:$8 sps:$4 sm:$0xff]  }
 0x21c   :  { %v1628_v32 = vpack.c.bf16 %v1624_v27, %v1624_v27  ;;  %5312 = vmatprep.subr.bf16.mxu1 %v5827_v22  ;;  %v5858_v22 = vld [vmem:[#allocation8 + $0x70] ss:$8 sps:$4 sm:$0xff]  }
 0x21d   :  { %v1629_v30 = vpack.c.bf16 %v1625_v29, %v1625_v29 }
 0x21f   :  { %2060 = vmatprep.mubr.bf16.mxu0 %v1629_v30  ;;  %5313 = vmatpush3.bf16.msra.mxu1 %v5828_v23  ;;  %v6482_v23 = vmov 0  }
 0x220   :  { %2061 = vmatmul.mubr.bf16.vlgmr.msra.gmra.mrb[8].mxu0 %v1628_v32 }
 0x221   :  { %2070 = vmatpush1.bf16.msra.mxu0 %v5765_v31 }
 0x222   :  { %2071 = vmatprep.subr.bf16.mxu0 %v5770_v33 }
 0x225   :  { %2072 = vmatpush1.bf16.msra.mxu0 %v5768_v34 }
 0x226   :  { %2073 = vmatprep.subr.bf16.mxu0 %v5773_v35 }
 0x229   :  { %2074 = vmatpush1.bf16.msra.mxu0 %v5771_v36  ;;  %v5829_v36 = vld [vmem:[%s6929_s7] sm:$0xff]  }
 0x22a   :  { %2075 = vmatprep.subr.bf16.mxu0 %v5776_v37 }
 0x22d   :  { %2076 = vmatpush1.bf16.msra.mxu0 %v5774_v38  ;;  %v5830_v38 = vld [vmem:[%s6929_s7 + $0x8] sm:$0xff]  }
 0x22e   :  { %2077 = vmatprep.subr.bf16.mxu0 %v5779_v39  ;;  %v5831_v39 = vld [vmem:[%s6929_s7 + $0x10] sm:$0xff]  }
 0x231   :  { %2078 = vmatpush1.bf16.msra.mxu0 %v5777_v40  ;;  %v5832_v40 = vld [vmem:[%s6929_s7 + $0x18] sm:$0xff]  }
 0x232   :  { %2079 = vmatprep.subr.bf16.mxu0 %v5782_v41  ;;  %v5833_v41 = vld [vmem:[%s6929_s7 + $0x20] sm:$0xff]  }
 0x235   :  { %2080 = vmatpush1.bf16.msra.mxu0 %v5780_v42  ;;  %v5834_v42 = vld [vmem:[%s6929_s7 + $0x28] sm:$0xff]  }
 0x236   :  { %2081 = vmatprep.subr.bf16.mxu0 %v5785_v4  ;;  %v5835_v4 = vld [vmem:[%s6929_s7 + $0x30] sm:$0xff]  }
 0x239   :  { %2082 = vmatpush1.bf16.msra.mxu0 %v5783_v43  ;;  %v5836_v43 = vld [vmem:[%s6929_s7 + $0x38] sm:$0xff]  }
 0x23a   :  { %2083 = vmatprep.subr.bf16.mxu0 %v5788_v44 }
 0x23d   :  { %2084 = vmatpush1.bf16.msra.mxu0 %v5786_v16  ;;  %v4989_v16 = vld [vmem:[%s6928_s6] ss:$0 sm:$0xff] }
 0x23e   :  { %2085 = vmatprep.subr.bf16.mxu0 %v5791_v45 }
 0x241   :  { %2086 = vmatpush1.bf16.msra.mxu0 %v5789_v46 }
 0x242   :  { %2087 = vmatprep.subr.bf16.mxu0 %v5794_v47 }
 0x245   :  { %2088 = vmatpush1.bf16.msra.mxu0 %v5792_v48 }
 0x246   :  { %2089 = vmatprep.subr.bf16.mxu0 %v5797_v49 }
 0x249   :  { %2090 = vmatpush1.bf16.msra.mxu0 %v5795_v50 }
 0x24a   :  { %2091 = vmatprep.subr.bf16.mxu0 %v5800_v51 }
 0x24d   :  { %2092 = vmatpush1.bf16.msra.mxu0 %v5798_v52  ;;  %v2404_v52 = vld [vmem:[%s6931_s9] sm:$0x3] }
 0x24e   :  { %2093 = vmatprep.subr.bf16.mxu0 %v5803_v53  ;;  %v2418_v53 = vsel %vm2416_vm1, %v2404_v52, 0 }
 0x251   :  { %2094 = vmatpush1.bf16.msra.mxu0 %v5801_v54  ;;  %v5839_v54 = vld [vmem:[#allocation8 + $0x4] ss:$8 sps:$4 sm:$0xff]  }
 0x252   :  { %2095 = vmatprep.subr.bf16.mxu0 %v5806_v55  ;;  %v5006_v55 = vld [vmem:[%s6930_s8] ss:$0 sm:$0xff] }
 0x255   :  { %2096 = vmatpush1.bf16.msra.mxu0 %v5804_v57 }
 0x256   :  { %2097 = vmatprep.subr.bf16.mxu0 %v5809_v59 }
 0x257   :  { %v1535_v0 = vpop.f32.mrb[4].mxu0 }
 0x258   :  { %v1536_v1 = vadd.f32 %v1535_v0, %v355_v60  ;;  %v1537_v2 = vpop.f32.mrb[5].mxu0  ;;  %v5837_v0 = vld [vmem:[#allocation8] ss:$8 sps:$4 sm:$0xff]  }
 0x259   :  { %v1538_v3 = vadd.f32 %v1537_v2, %v359_v61  ;;  %v1539_v5 = vpop.f32.mrb[6].mxu0  ;;  %2098 = vmatpush1.bf16.msra.mxu0 %v5807_v62  ;;  %v5842_v2 = vld [vmem:[#allocation8 + $0x14] ss:$8 sps:$4 sm:$0xff]  }
 0x25a   :  { %v5368_v10 = vadd.f32 %v6729_v6, %v1536_v1  ;;  %v1540_v26 = vpop.f32.mrb[7].mxu0  ;;  %2099 = vmatprep.subr.bf16.mxu0 %v5812_v63  ;;  %v6480_v6 = vmov 0.0   ;;  %v5845_v5 = vld [vmem:[#allocation8 + $0x24] ss:$8 sps:$4 sm:$0xff]  }
 0x25b   :  { %v5370_v11 = vadd.f32 %v6731_v8, %v1538_v3  ;;  %5333 = vmatprep.subr.bf16.mxu1 %v6480_v6  ;;  %v1696_v8 = vld [vmem:[%s6958_s25] sm:$0x3]  ;;  %v5840_v3 = vld [vmem:[#allocation8 + $0x10] ss:$8 sps:$4 sm:$0xff]  }
 0x25c   :  { %v1626_v13 = vmax.f32 %v5368_v10, 0.0  ;;  %v1701_v24 = vrot.slane %v1696_v8, %v6734_v15  ;;  %v1705_v25 = vrot.slane %v1696_v8, %v6742_v18  ;;  %v5848_v10 = vld [vmem:[#allocation8 + $0x34] ss:$8 sps:$4 sm:$0xff]   ;;  %v5846_v26 = vld [vmem:[#allocation8 + $0x30] ss:$8 sps:$4 sm:$0xff]  }
 0x25d   :  { %v1627_v14 = vmax.f32 %v5370_v11, 0.0  ;;  %2100 = vmatpush1.bf16.msra.mxu0 %v5810_v9  ;;  %v5843_v9 = vld [vmem:[#allocation8 + $0x20] ss:$8 sps:$4 sm:$0xff]   ;;  %v5851_v11 = vld [vmem:[#allocation8 + $0x44] ss:$8 sps:$4 sm:$0xff]  }
 0x25e   :  { %v1630_v19 = vpack.c.bf16 %v1626_v13, %v1626_v13  ;;  %v5849_v13 = vld [vmem:[#allocation8 + $0x40] ss:$8 sps:$4 sm:$0xff]   ;;  %v5863_v8 = vld [vmem:[#allocation10 + $0x4] ss:$16 sps:$4 sm:$0xff]  }
 0x25f   :  { %v1631_v17 = vpack.c.bf16 %v1627_v14, %v1627_v14  ;;  %v5854_v14 = vld [vmem:[#allocation8 + $0x54] ss:$8 sps:$4 sm:$0xff]  }
 0x261   :  { %2101 = vmatprep.mubr.bf16.mxu0 %v1631_v17  ;;  %v5852_v17 = vld [vmem:[#allocation8 + $0x50] ss:$8 sps:$4 sm:$0xff]  }
 0x262   :  { %2102 = vmatmul.mubr.bf16.vlgmr.msra.gmra.mrb[8].mxu0 %v1630_v19  ;;  %v5857_v19 = vld [vmem:[#allocation8 + $0x64] ss:$8 sps:$4 sm:$0xff]  }
 0x335   :  { %v2103_v27 = vpop.f32.mrb[8].mxu0 }
 0x336   :  { %v5371_v28 = vadd.f32 %v2103_v27, %v1701_v24  ;;  %v2105_v29 = vpop.f32.mrb[9].mxu0  ;;  %v5864_v24 = vld [vmem:[#allocation10 + $0x8] ss:$16 sps:$4 sm:$0xff]   ;;  %v5872_v27 = vld [vmem:[#allocation10 + $0x2c] ss:$16 sps:$4 sm:$0xff]  }
 0x337   :  { %v5372_v30 = vadd.f32 %v2105_v29, %v1705_v25  ;;  %v2107_v31 = vpop.f32.mrb[10].mxu0  ;;  %v5866_v25 = vld [vmem:[#allocation10 + $0xc] ss:$16 sps:$4 sm:$0xff]  }
 0x338   :  { %v2110_v32 = vmax.f32 %v5371_v28, 0.0  ;;  %v2108_v33 = vpop.f32.mrb[11].mxu0  ;;  %3062 = vmatprep.subr.bf16.mxu0 %v5866_v25  ;;  %v5870_v28 = vld [vmem:[#allocation10 + $0x28] ss:$16 sps:$4 sm:$0xff]   ;;  %v5878_v29 = vld [vmem:[#allocation10 + $0x4c] ss:$16 sps:$4 sm:$0xff]  }
 0x339   :  { %v2111_v34 = vmax.f32 %v5372_v30, 0.0  ;;  %3063 = vmatpush1.bf16.msra.mxu0 %v5864_v24  ;;  %v5876_v30 = vld [vmem:[#allocation10 + $0x48] ss:$16 sps:$4 sm:$0xff]   ;;  %v5884_v31 = vld [vmem:[#allocation10 + $0x6c] ss:$16 sps:$4 sm:$0xff]  }
 0x33a   :  { %v2112_v37 = vpack.c.bf16 %v2110_v32, %v2110_v32  ;;  %3064 = vmatprep.subr.bf16.mxu0 %v5872_v27  ;;  %v5882_v32 = vld [vmem:[#allocation10 + $0x68] ss:$16 sps:$4 sm:$0xff]   ;;  %v5890_v33 = vld [vmem:[#allocation10 + $0x8c] ss:$16 sps:$4 sm:$0xff]   ;;  %v5921_v24 = vld [vmem:[#allocation10 + $0x140] ss:$16 sps:$4 sm:$0xff]  }
 0x33b   :  { %v2113_v35 = vpack.c.bf16 %v2111_v34, %v2111_v34  ;;  %v5888_v34 = vld [vmem:[#allocation10 + $0x88] ss:$16 sps:$4 sm:$0xff]   ;;  %v5929_v25 = vld [vmem:[#allocation10 + $0x164] ss:$16 sps:$4 sm:$0xff]   ;;  %v5927_v27 = vld [vmem:[#allocation10 + $0x160] ss:$16 sps:$4 sm:$0xff]  }
 0x33d   :  { %2281 = vmatprep.mubr.bf16.mxu1 %v2113_v35  ;;  %3065 = vmatpush1.bf16.msra.mxu0 %v5870_v28  ;;  %v5896_v35 = vld [vmem:[#allocation10 + $0xac] ss:$16 sps:$4 sm:$0xff]   ;;  %v5935_v28 = vld [vmem:[#allocation10 + $0x184] ss:$16 sps:$4 sm:$0xff]  }
 0x33e   :  { %2282 = vmatmul.mubr.bf16.vlgmr.msra.gmra.mrb[4].mxu1 %v2112_v37  ;;  %3066 = vmatprep.subr.bf16.mxu0 %v5878_v29  ;;  %v5902_v37 = vld [vmem:[#allocation10 + $0xcc] ss:$16 sps:$4 sm:$0xff]   ;;  %v5933_v29 = vld [vmem:[#allocation10 + $0x180] ss:$16 sps:$4 sm:$0xff]  }
 0x33f   :  { %5334 = vmatpush3.bf16.msra.mxu1 %v5829_v36  ;;  %5349 = vmatprep.mubr.msk.bf16.mxu1 %vm6481_vm0, %v6480_v6  ;;  %v5894_v36 = vld [vmem:[#allocation10 + $0xa8] ss:$16 sps:$4 sm:$0xff]  }
 0x340   :  { %5335 = vmatprep.subr.bf16.mxu1 %v6480_v6 }
 0x341   :  { %3067 = vmatpush1.bf16.msra.mxu0 %v5876_v30  ;;  %v5941_v30 = vld [vmem:[#allocation10 + $0x1a4] ss:$16 sps:$4 sm:$0xff]  }
 0x342   :  { %3068 = vmatprep.subr.bf16.mxu0 %v5884_v31  ;;  %v5939_v31 = vld [vmem:[#allocation10 + $0x1a0] ss:$16 sps:$4 sm:$0xff]  }
 0x343   :  { %5336 = vmatpush3.bf16.msra.mxu1 %v5830_v38  ;;  %v5900_v38 = vld [vmem:[#allocation10 + $0xc8] ss:$16 sps:$4 sm:$0xff]  }
 0x344   :  { %5337 = vmatprep.subr.bf16.mxu1 %v6480_v6 }
 0x345   :  { %3069 = vmatpush1.bf16.msra.mxu0 %v5882_v32  ;;  %v5947_v32 = vld [vmem:[#allocation10 + $0x1c4] ss:$16 sps:$4 sm:$0xff]  }
 0x346   :  { %3070 = vmatprep.subr.bf16.mxu0 %v5890_v33  ;;  %v5950_v33 = vld [vmem:[#allocation10 + $0x1cc] ss:$16 sps:$4 sm:$0xff]  }
 0x347   :  { %5338 = vmatpush3.bf16.msra.mxu1 %v5831_v39  ;;  %v5908_v39 = vld [vmem:[#allocation10 + $0xec] ss:$16 sps:$4 sm:$0xff]  }
 0x348   :  { %5339 = vmatprep.subr.bf16.mxu1 %v6480_v6 }
 0x349   :  { %3071 = vmatpush1.bf16.msra.mxu0 %v5888_v34  ;;  %v5945_v34 = vld [vmem:[#allocation10 + $0x1c0] ss:$16 sps:$4 sm:$0xff]  }
 0x34a   :  { %3072 = vmatprep.subr.bf16.mxu0 %v5896_v35  ;;  %v5948_v35 = vld [vmem:[#allocation10 + $0x1c8] ss:$16 sps:$4 sm:$0xff]  }
 0x34b   :  { %5340 = vmatpush3.bf16.msra.mxu1 %v5832_v40  ;;  %v5906_v40 = vld [vmem:[#allocation10 + $0xe8] ss:$16 sps:$4 sm:$0xff]  }
 0x34c   :  { %5341 = vmatprep.subr.bf16.mxu1 %v6480_v6 }
 0x34d   :  { %3073 = vmatpush1.bf16.msra.mxu0 %v5894_v36  ;;  %v5953_v36 = vld [vmem:[#allocation10 + $0x1e4] ss:$16 sps:$4 sm:$0xff]  }
 0x34e   :  { %3074 = vmatprep.subr.bf16.mxu0 %v5902_v37  ;;  %v5956_v37 = vld [vmem:[#allocation10 + $0x1ec] ss:$16 sps:$4 sm:$0xff]  }
 0x34f   :  { %5342 = vmatpush3.bf16.msra.mxu1 %v5833_v41  ;;  %v5914_v41 = vld [vmem:[#allocation10 + $0x10c] ss:$16 sps:$4 sm:$0xff]  }
 0x350   :  { %5343 = vmatprep.subr.bf16.mxu1 %v6480_v6 }
 0x351   :  { %3075 = vmatpush1.bf16.msra.mxu0 %v5900_v38  ;;  %v5951_v38 = vld [vmem:[#allocation10 + $0x1e0] ss:$16 sps:$4 sm:$0xff]  }
 0x352   :  { %3076 = vmatprep.subr.bf16.mxu0 %v5908_v39  ;;  %v5954_v39 = vld [vmem:[#allocation10 + $0x1e8] ss:$16 sps:$4 sm:$0xff]  }
 0x353   :  { %5344 = vmatpush3.bf16.msra.mxu1 %v5834_v42  ;;  %v5912_v42 = vld [vmem:[#allocation10 + $0x108] ss:$16 sps:$4 sm:$0xff]  }
 0x354   :  { %5345 = vmatprep.subr.bf16.mxu1 %v6480_v6 }
 0x355   :  { %3077 = vmatpush1.bf16.msra.mxu0 %v5906_v40  ;;  %v5959_v40 = vld [vmem:[#allocation11 + $0x4] ss:$24 sps:$4 sm:$0xff]  }
 0x356   :  { %3078 = vmatprep.subr.bf16.mxu0 %v5914_v41  ;;  %v5962_v41 = vld [vmem:[#allocation11 + $0xc] ss:$24 sps:$4 sm:$0xff]  }
 0x357   :  { %5346 = vmatpush3.bf16.msra.mxu1 %v5835_v4  ;;  %v5920_v4 = vld [vmem:[#allocation10 + $0x12c] ss:$16 sps:$4 sm:$0xff]  }
 0x358   :  { %5347 = vmatprep.subr.bf16.mxu1 %v6480_v6 }
 0x359   :  { %3079 = vmatpush1.bf16.msra.mxu0 %v5912_v42  ;;  %v2478_v42 = vld [vmem:[%s6934_s12] sm:$0x3] }
 0x35a   :  { %3080 = vmatprep.subr.bf16.mxu0 %v5920_v4  ;;  %v2483_v4 = vrot.slane %v2478_v42, %v6734_v15 }
 0x35b   :  { %5348 = vmatpush3.bf16.msra.mxu1 %v5836_v43  ;;  %v5918_v43 = vld [vmem:[#allocation10 + $0x128] ss:$16 sps:$4 sm:$0xff]  }
 0x35c   :  { %5353 = vmatprep.subr.bf16.mxu1 %v6480_v6 }
 0x35d   :  { %3081 = vmatpush1.bf16.msra.mxu0 %v5918_v43  ;;  %v2487_v43 = vrot.slane %v2478_v42, %v6742_v18  ;;  %v6028_v42 = vld [vmem:[#allocation11 + $0x21c] ss:$24 sps:$4 sm:$0xff]  }
 0x411   :  { %v5314_v44 = vpop.f32.mrb[4].mxu1 }
 0x412   :  { %v5315_v45 = vpop.f32.mrb[5].mxu1 }
 0x413   :  { %v5316_v46 = vadd.f32 %v5315_v45, %v5314_v44  ;;  %v5317_v47 = vpop.f32.mrb[6].mxu1  ;;  %v5926_v44 = vld [vmem:[#allocation10 + $0x14c] ss:$16 sps:$4 sm:$0xff]  }
 0x414   :  { %v5318_v48 = vpop.f32.mrb[7].mxu1  ;;  %3082 = vmatprep.subr.bf16.mxu0 %v5926_v44  ;;  %v5932_v45 = vld [vmem:[#allocation10 + $0x16c] ss:$16 sps:$4 sm:$0xff]  }
 0x415   :  { %v2284_v49 = vadd.f32 %v5316_v46, %v4989_v16  ;;  %v5924_v16 = vld [vmem:[#allocation10 + $0x148] ss:$16 sps:$4 sm:$0xff]   ;;  %v5938_v47 = vld [vmem:[#allocation10 + $0x18c] ss:$16 sps:$4 sm:$0xff]  }
 0x416   :  { %3083 = vmatpush1.bf16.msra.mxu0 %v5924_v16  ;;  %v5930_v46 = vld [vmem:[#allocation10 + $0x168] ss:$16 sps:$4 sm:$0xff]  }
 0x417   :  { %v2289_v50 = vmax.f32 %v2284_v49, 0.0  ;;  %3084 = vmatprep.subr.bf16.mxu0 %v5932_v45  ;;  %v5936_v48 = vld [vmem:[#allocation10 + $0x188] ss:$16 sps:$4 sm:$0xff]   ;;  %v5944_v49 = vld [vmem:[#allocation10 + $0x1ac] ss:$16 sps:$4 sm:$0xff]  }
 0x419   :  { %v2290_v51 = vpack.c.bf16 %v2289_v50, %v2289_v50  ;;  %v5942_v50 = vld [vmem:[#allocation10 + $0x1a8] ss:$16 sps:$4 sm:$0xff]  }
 0x41a   :  { %3085 = vmatpush1.bf16.msra.mxu0 %v5930_v46 }
 0x41b   :  { %5350 = vmatmul.mubr.bf16.vlgmr.msra.gmra.mrb[8].mxu1 %v2290_v51  ;;  %3086 = vmatprep.subr.bf16.mxu0 %v5938_v47  ;;  %v5015_v51 = vld [vmem:[%s6932_s10] ss:$0 sm:$0xff] }
 0x41c   :  { %5355 = vmatprep.mubr.msk.bf16.mxu1 %vm6481_vm0, %v6480_v6  ;;  %5354 = vmatpush3.bf16.msra.mxu1 %v2418_v53 }
 0x41d   :  { %2570 = vmatprep.subr.bf16.mxu1 %v5839_v54 }
 0x41e   :  { %3087 = vmatpush1.bf16.msra.mxu0 %v5936_v48 }
 0x41f   :  { %3088 = vmatprep.subr.bf16.mxu0 %v5944_v49 }
 0x422   :  { %3089 = vmatpush1.bf16.msra.mxu0 %v5942_v50 }
 0x423   :  { %3090 = vmatprep.subr.bf16.mxu0 %v5950_v33  ;;  %v6013_v33 = vld [vmem:[#allocation11 + $0x1b4] ss:$24 sps:$4 sm:$0xff]  }
 0x426   :  { %3091 = vmatpush1.bf16.msra.mxu0 %v5948_v35  ;;  %v6011_v35 = vld [vmem:[#allocation11 + $0x1b0] ss:$24 sps:$4 sm:$0xff]  }
 0x427   :  { %3092 = vmatprep.subr.bf16.mxu0 %v5956_v37  ;;  %v6019_v37 = vld [vmem:[#allocation11 + $0x1e4] ss:$24 sps:$4 sm:$0xff]  }
 0x42a   :  { %3093 = vmatpush1.bf16.msra.mxu0 %v5954_v39  ;;  %v6017_v39 = vld [vmem:[#allocation11 + $0x1e0] ss:$24 sps:$4 sm:$0xff]  }
 0x42b   :  { %4377 = vmatprep.subr.bf16.mxu0 %v5962_v41  ;;  %v6025_v41 = vld [vmem:[#allocation11 + $0x214] ss:$24 sps:$4 sm:$0xff]  }
 0x4ee   :  { %v2396_v57 = vpop.f32.mrb[8].mxu1 }
 0x4ef   :  { %v2397_v59 = vadd.f32 %v5006_v55, %v2396_v57  ;;  %v5351_v60 = vpop.f32.mrb[9].mxu1 }
 0x4f0   :  { %v2399_v61 = vpop.f32.mrb[10].mxu1  ;;  %v5861_v60 = vld [vmem:[#allocation10] ss:$16 sps:$4 sm:$0xff]  }
 0x4f1   :  { %v2402_v62 = vmax.f32 %v2397_v59, 0.0  ;;  %v5352_v63 = vpop.f32.mrb[11].mxu1 }
 0x4f2   :  { %v5867_v63 = vld [vmem:[#allocation10 + $0x20] ss:$16 sps:$4 sm:$0xff]  }
 0x4f3   :  { %v6812_v1 = vpack.c.bf16 %v2402_v62, %v2402_v62  ;;  %v5869_v62 = vld [vmem:[#allocation10 + $0x24] ss:$16 sps:$4 sm:$0xff]  }
 0x4f5   :  { %5356 = vmatmul.mubr.msk.bf16.vlgmr.msra.gmra.mrb[12].mxu1 %vm2412_vm2, %v6812_v1 }
 0x4f6   :  { %2571 = vmatpush1.bf16.msra.mxu1 %v5837_v0  ;;  %2602 = vmatprep.mubr.bf16.mxu1 %v6482_v23  ;;  %v5875_v0 = vld [vmem:[#allocation10 + $0x44] ss:$16 sps:$4 sm:$0xff]   ;;  %v5915_v23 = vld [vmem:[#allocation10 + $0x120] ss:$16 sps:$4 sm:$0xff]  }
 0x4f7   :  { %2572 = vmatprep.subr.bf16.mxu1 %v5842_v2  ;;  %v5873_v2 = vld [vmem:[#allocation10 + $0x40] ss:$16 sps:$4 sm:$0xff]  }
 0x4fa   :  { %2573 = vmatpush1.bf16.msra.mxu1 %v5840_v3  ;;  %v5881_v3 = vld [vmem:[#allocation10 + $0x64] ss:$16 sps:$4 sm:$0xff]  }
 0x4fb   :  { %2574 = vmatprep.subr.bf16.mxu1 %v5845_v5  ;;  %v5879_v5 = vld [vmem:[#allocation10 + $0x60] ss:$16 sps:$4 sm:$0xff]  }
 0x4fe   :  { %2575 = vmatpush1.bf16.msra.mxu1 %v5843_v9  ;;  %v5887_v9 = vld [vmem:[#allocation10 + $0x84] ss:$16 sps:$4 sm:$0xff]  }
 0x4ff   :  { %2576 = vmatprep.subr.bf16.mxu1 %v5848_v10  ;;  %v5885_v10 = vld [vmem:[#allocation10 + $0x80] ss:$16 sps:$4 sm:$0xff]  }
 0x502   :  { %2577 = vmatpush1.bf16.msra.mxu1 %v5846_v26  ;;  %v5893_v26 = vld [vmem:[#allocation10 + $0xa4] ss:$16 sps:$4 sm:$0xff]  }
 0x503   :  { %2578 = vmatprep.subr.bf16.mxu1 %v5851_v11  ;;  %v5891_v11 = vld [vmem:[#allocation10 + $0xa0] ss:$16 sps:$4 sm:$0xff]  }
 0x506   :  { %2579 = vmatpush1.bf16.msra.mxu1 %v5849_v13  ;;  %v5899_v13 = vld [vmem:[#allocation10 + $0xc4] ss:$16 sps:$4 sm:$0xff]  }
 0x507   :  { %2580 = vmatprep.subr.bf16.mxu1 %v5854_v14  ;;  %v5897_v14 = vld [vmem:[#allocation10 + $0xc0] ss:$16 sps:$4 sm:$0xff]  }
 0x50a   :  { %2581 = vmatpush1.bf16.msra.mxu1 %v5852_v17  ;;  %v5905_v17 = vld [vmem:[#allocation10 + $0xe4] ss:$16 sps:$4 sm:$0xff]  }
 0x50b   :  { %2582 = vmatprep.subr.bf16.mxu1 %v5857_v19  ;;  %v5903_v19 = vld [vmem:[#allocation10 + $0xe0] ss:$16 sps:$4 sm:$0xff]  }
 0x50e   :  { %2583 = vmatpush1.bf16.msra.mxu1 %v5855_v20  ;;  %v5911_v20 = vld [vmem:[#allocation10 + $0x104] ss:$16 sps:$4 sm:$0xff]  }
 0x50f   :  { %2584 = vmatprep.subr.bf16.mxu1 %v5860_v21  ;;  %v5909_v21 = vld [vmem:[#allocation10 + $0x100] ss:$16 sps:$4 sm:$0xff]  }
 0x512   :  { %2585 = vmatpush1.bf16.msra.mxu1 %v5858_v22  ;;  %v5917_v22 = vld [vmem:[#allocation10 + $0x124] ss:$16 sps:$4 sm:$0xff]  }
 0x513   :  { %3021 = vmatprep.subr.bf16.mxu1 %v5863_v8  ;;  %v5923_v8 = vld [vmem:[#allocation10 + $0x144] ss:$16 sps:$4 sm:$0xff]  }
 0x5c8   :  { %v2454_v52 = vpop.f32.mrb[12].mxu1 }
 0x5c9   :  { %v2455_v53 = vadd.f32 %v5015_v51, %v2454_v52  ;;  %v5357_v54 = vpop.f32.mrb[13].mxu1  ;;  %v5957_v52 = vld [vmem:[#allocation11] ss:$24 sps:$4 sm:$0xff]  }
 0x5ca   :  { %v2457_v55 = vpop.f32.mrb[14].mxu1 }
 0x5cb   :  { %v2460_v57 = vmax.f32 %v2455_v53, 0.0  ;;  %v5358_v59 = vpop.f32.mrb[15].mxu1  ;;  %v5960_v53 = vld [vmem:[#allocation11 + $0x8] ss:$24 sps:$4 sm:$0xff]   ;;  %v5965_v55 = vld [vmem:[#allocation11 + $0x34] ss:$24 sps:$4 sm:$0xff]  }
 0x5cc   :  { %v5963_v59 = vld [vmem:[#allocation11 + $0x30] ss:$24 sps:$4 sm:$0xff]  }
 0x5cd   :  { %v2461_v61 = vpack.c.bf16 %v2460_v57, %v2460_v57  ;;  %v5968_v57 = vld [vmem:[#allocation11 + $0x3c] ss:$24 sps:$4 sm:$0xff]  }
 0x5cf   :  { %2603 = vmatmul.mubr.bf16.vlgmr.msra.gmra.mrb[16].mxu1 %v2461_v61  ;;  %v5971_v61 = vld [vmem:[#allocation11 + $0x64] ss:$24 sps:$4 sm:$0xff]  }
 0x5d0   :  { %3022 = vmatpush1.bf16.msra.mxu1 %v5861_v60  ;;  %v5966_v60 = vld [vmem:[#allocation11 + $0x38] ss:$24 sps:$4 sm:$0xff]  }
 0x5d1   :  { %3023 = vmatprep.subr.bf16.mxu1 %v5869_v62  ;;  %v5974_v62 = vld [vmem:[#allocation11 + $0x6c] ss:$24 sps:$4 sm:$0xff]  }
 0x5d4   :  { %3024 = vmatpush1.bf16.msra.mxu1 %v5867_v63  ;;  %v5969_v63 = vld [vmem:[#allocation11 + $0x60] ss:$24 sps:$4 sm:$0xff]  }
 0x5d5   :  { %3025 = vmatprep.subr.bf16.mxu1 %v5875_v0  ;;  %v5972_v0 = vld [vmem:[#allocation11 + $0x68] ss:$24 sps:$4 sm:$0xff]  }
 0x5d8   :  { %3026 = vmatpush1.bf16.msra.mxu1 %v5873_v2  ;;  %v5977_v2 = vld [vmem:[#allocation11 + $0x94] ss:$24 sps:$4 sm:$0xff]  }
 0x5d9   :  { %3027 = vmatprep.subr.bf16.mxu1 %v5881_v3  ;;  %v5980_v3 = vld [vmem:[#allocation11 + $0x9c] ss:$24 sps:$4 sm:$0xff]  }
 0x5dc   :  { %3028 = vmatpush1.bf16.msra.mxu1 %v5879_v5  ;;  %v5975_v5 = vld [vmem:[#allocation11 + $0x90] ss:$24 sps:$4 sm:$0xff]  }
 0x5dd   :  { %3029 = vmatprep.subr.bf16.mxu1 %v5887_v9  ;;  %v5978_v9 = vld [vmem:[#allocation11 + $0x98] ss:$24 sps:$4 sm:$0xff]  }
 0x5e0   :  { %3030 = vmatpush1.bf16.msra.mxu1 %v5885_v10  ;;  %v5983_v10 = vld [vmem:[#allocation11 + $0xc4] ss:$24 sps:$4 sm:$0xff]  }
 0x5e1   :  { %3031 = vmatprep.subr.bf16.mxu1 %v5893_v26  ;;  %v5986_v26 = vld [vmem:[#allocation11 + $0xcc] ss:$24 sps:$4 sm:$0xff]  }
 0x5e4   :  { %3032 = vmatpush1.bf16.msra.mxu1 %v5891_v11  ;;  %v5981_v11 = vld [vmem:[#allocation11 + $0xc0] ss:$24 sps:$4 sm:$0xff]  }
 0x5e5   :  { %3033 = vmatprep.subr.bf16.mxu1 %v5899_v13  ;;  %v5984_v13 = vld [vmem:[#allocation11 + $0xc8] ss:$24 sps:$4 sm:$0xff]  }
 0x5e8   :  { %3034 = vmatpush1.bf16.msra.mxu1 %v5897_v14  ;;  %v5989_v14 = vld [vmem:[#allocation11 + $0xf4] ss:$24 sps:$4 sm:$0xff]  }
 0x5e9   :  { %3035 = vmatprep.subr.bf16.mxu1 %v5905_v17  ;;  %v5992_v17 = vld [vmem:[#allocation11 + $0xfc] ss:$24 sps:$4 sm:$0xff]  }
 0x5ec   :  { %3036 = vmatpush1.bf16.msra.mxu1 %v5903_v19  ;;  %v5987_v19 = vld [vmem:[#allocation11 + $0xf0] ss:$24 sps:$4 sm:$0xff]  }
 0x5ed   :  { %3037 = vmatprep.subr.bf16.mxu1 %v5911_v20  ;;  %v5990_v20 = vld [vmem:[#allocation11 + $0xf8] ss:$24 sps:$4 sm:$0xff]  }
 0x5f0   :  { %3038 = vmatpush1.bf16.msra.mxu1 %v5909_v21  ;;  %v5995_v21 = vld [vmem:[#allocation11 + $0x124] ss:$24 sps:$4 sm:$0xff]  }
 0x5f1   :  { %3039 = vmatprep.subr.bf16.mxu1 %v5917_v22  ;;  %v5998_v22 = vld [vmem:[#allocation11 + $0x12c] ss:$24 sps:$4 sm:$0xff]  }
 0x5f4   :  { %3040 = vmatpush1.bf16.msra.mxu1 %v5915_v23  ;;  %v5993_v23 = vld [vmem:[#allocation11 + $0x120] ss:$24 sps:$4 sm:$0xff]  }
 0x5f5   :  { %3041 = vmatprep.subr.bf16.mxu1 %v5923_v8  ;;  %v5996_v8 = vld [vmem:[#allocation11 + $0x128] ss:$24 sps:$4 sm:$0xff]  }
 0x5f8   :  { %3042 = vmatpush1.bf16.msra.mxu1 %v5921_v24  ;;  %v6001_v24 = vld [vmem:[#allocation11 + $0x154] ss:$24 sps:$4 sm:$0xff]  }
 0x5f9   :  { %3043 = vmatprep.subr.bf16.mxu1 %v5929_v25  ;;  %v6004_v25 = vld [vmem:[#allocation11 + $0x15c] ss:$24 sps:$4 sm:$0xff]  }
 0x5fc   :  { %3044 = vmatpush1.bf16.msra.mxu1 %v5927_v27  ;;  %v5999_v27 = vld [vmem:[#allocation11 + $0x150] ss:$24 sps:$4 sm:$0xff]  }
 0x5fd   :  { %3045 = vmatprep.subr.bf16.mxu1 %v5935_v28  ;;  %v6002_v28 = vld [vmem:[#allocation11 + $0x158] ss:$24 sps:$4 sm:$0xff]  }
 0x600   :  { %3046 = vmatpush1.bf16.msra.mxu1 %v5933_v29  ;;  %v6007_v29 = vld [vmem:[#allocation11 + $0x184] ss:$24 sps:$4 sm:$0xff]  }
 0x601   :  { %3047 = vmatprep.subr.bf16.mxu1 %v5941_v30  ;;  %v6010_v30 = vld [vmem:[#allocation11 + $0x18c] ss:$24 sps:$4 sm:$0xff]  }
 0x604   :  { %3048 = vmatpush1.bf16.msra.mxu1 %v5939_v31  ;;  %v6005_v31 = vld [vmem:[#allocation11 + $0x180] ss:$24 sps:$4 sm:$0xff]  }
 0x605   :  { %3049 = vmatprep.subr.bf16.mxu1 %v5947_v32  ;;  %v6008_v32 = vld [vmem:[#allocation11 + $0x188] ss:$24 sps:$4 sm:$0xff]  }
 0x608   :  { %3050 = vmatpush1.bf16.msra.mxu1 %v5945_v34  ;;  %v6016_v34 = vld [vmem:[#allocation11 + $0x1bc] ss:$24 sps:$4 sm:$0xff]  }
 0x609   :  { %3051 = vmatprep.subr.bf16.mxu1 %v5953_v36  ;;  %v6014_v36 = vld [vmem:[#allocation11 + $0x1b8] ss:$24 sps:$4 sm:$0xff]  }
 0x60c   :  { %3052 = vmatpush1.bf16.msra.mxu1 %v5951_v38  ;;  %v6022_v38 = vld [vmem:[#allocation11 + $0x1ec] ss:$24 sps:$4 sm:$0xff]  }
 0x60d   :  { %4295 = vmatprep.subr.bf16.mxu1 %v5959_v40  ;;  %v6020_v40 = vld [vmem:[#allocation11 + $0x1e8] ss:$24 sps:$4 sm:$0xff]  }
 0x6a2   :  { %v2604_v44 = vpop.f32.mrb[16].mxu1 }
 0x6a3   :  { %v2605_v16 = vadd.f32 %v2604_v44, %v2483_v4  ;;  %v2606_v45 = vpop.f32.mrb[17].mxu1  ;;  %v6023_v4 = vld [vmem:[#allocation11 + $0x210] ss:$24 sps:$4 sm:$0xff]   ;;  %v6031_v44 = vld [vmem:[#allocation11 + $0x244] ss:$24 sps:$4 sm:$0xff]  }
 0x6a4   :  { %v2607_v46 = vadd.f32 %v2606_v45, %v2487_v43  ;;  %v2608_v47 = vpop.f32.mrb[18].mxu1  ;;  %v6026_v43 = vld [vmem:[#allocation11 + $0x218] ss:$24 sps:$4 sm:$0xff]  }
 0x6a5   :  { %v2611_v48 = vmax.f32 %v2605_v16, 0.0  ;;  %v2609_v49 = vpop.f32.mrb[19].mxu1  ;;  %v6034_v16 = vld [vmem:[#allocation11 + $0x24c] ss:$24 sps:$4 sm:$0xff]   ;;  %v6029_v45 = vld [vmem:[#allocation11 + $0x240] ss:$24 sps:$4 sm:$0xff]  }
 0x6a6   :  { %v2612_v50 = vmax.f32 %v2607_v46, 0.0  ;;  %v6032_v46 = vld [vmem:[#allocation11 + $0x248] ss:$24 sps:$4 sm:$0xff]   ;;  %v6037_v47 = vld [vmem:[#allocation11 + $0x274] ss:$24 sps:$4 sm:$0xff]  }
 0x6a7   :  { %v2613_v54 = vpack.c.bf16 %v2611_v48, %v2611_v48  ;;  %v6040_v48 = vld [vmem:[#allocation11 + $0x27c] ss:$24 sps:$4 sm:$0xff]   ;;  %v6035_v49 = vld [vmem:[#allocation11 + $0x270] ss:$24 sps:$4 sm:$0xff]  }
 0x6a8   :  { %v2614_v51 = vpack.c.bf16 %v2612_v50, %v2612_v50  ;;  %v6038_v50 = vld [vmem:[#allocation11 + $0x278] ss:$24 sps:$4 sm:$0xff]  }
 0x6aa   :  { %3053 = vmatprep.mubr.bf16.mxu1 %v2614_v51  ;;  %3094 = vmatprep.mubr.bf16.mxu0 %v2614_v51  ;;  %v6043_v51 = vld [vmem:[#allocation11 + $0x2a4] ss:$24 sps:$4 sm:$0xff]  }
 0x6ab   :  { %3054 = vmatmul.mubr.bf16.vlgmr.msra.gmra.mrb[20].mxu1 %v2613_v54  ;;  %3095 = vmatmul.mubr.bf16.vlgmr.msra.gmra.mrb[12].mxu0 %v2613_v54  ;;  %v6044_v54 = vld [vmem:[#allocation11 + $0x2a8] ss:$24 sps:$4 sm:$0xff]  }
 0x6ac   :  { %4296 = vmatpush1.bf16.msra.mxu1 %v5957_v52  ;;  %4378 = vmatpush1.bf16.msra.mxu0 %v5960_v53  ;;  %v6046_v52 = vld [vmem:[#allocation11 + $0x2ac] ss:$24 sps:$4 sm:$0xff]   ;;  %v6041_v53 = vld [vmem:[#allocation11 + $0x2a0] ss:$24 sps:$4 sm:$0xff]  }
 0x6ad   :  { %4297 = vmatprep.subr.bf16.mxu1 %v5965_v55  ;;  %4379 = vmatprep.subr.bf16.mxu0 %v5968_v57  ;;  %v6049_v55 = vld [vmem:[#allocation11 + $0x2d4] ss:$24 sps:$4 sm:$0xff]  }
 0x6ae   :  { %v6052_v57 = vld [vmem:[#allocation11 + $0x2dc] ss:$24 sps:$4 sm:$0xff]  }
 0x6b0   :  { %4298 = vmatpush1.bf16.msra.mxu1 %v5963_v59  ;;  %4380 = vmatpush1.bf16.msra.mxu0 %v5966_v60  ;;  %v6047_v59 = vld [vmem:[#allocation11 + $0x2d0] ss:$24 sps:$4 sm:$0xff]  }
 0x6b1   :  { %4299 = vmatprep.subr.bf16.mxu1 %v5971_v61  ;;  %4381 = vmatprep.subr.bf16.mxu0 %v5974_v62  ;;  %v6050_v60 = vld [vmem:[#allocation11 + $0x2d8] ss:$24 sps:$4 sm:$0xff]   ;;  %v6055_v61 = vld [vmem:[#allocation11 + $0x304] ss:$24 sps:$4 sm:$0xff]  }
 0x6b2   :  { %v6058_v62 = vld [vmem:[#allocation11 + $0x30c] ss:$24 sps:$4 sm:$0xff]  }
 0x6b4   :  { %4300 = vmatpush1.bf16.msra.mxu1 %v5969_v63  ;;  %4382 = vmatpush1.bf16.msra.mxu0 %v5972_v0  ;;  %v6827_v63 = vld [vmem:[%s6936_s14] sm:$0xf] }
 0x6b5   :  { %4301 = vmatprep.subr.bf16.mxu1 %v5977_v2  ;;  %4383 = vmatprep.subr.bf16.mxu0 %v5980_v3  ;;  %v2684_v0 = vrot.slane %v6827_v63, %v6734_v15  ;;  %v2688_v2 = vrot.slane %v6827_v63, %v6742_v18  ;;  %v2696_v3 = vrot.slane %v6827_v63, %v6752_v58 }
 0x6b8   :  { %4302 = vmatpush1.bf16.msra.mxu1 %v5975_v5  ;;  %4384 = vmatpush1.bf16.msra.mxu0 %v5978_v9 }
 0x6b9   :  { %4303 = vmatprep.subr.bf16.mxu1 %v5983_v10  ;;  %4385 = vmatprep.subr.bf16.mxu0 %v5986_v26 }
 0x6bc   :  { %4304 = vmatpush1.bf16.msra.mxu1 %v5981_v11  ;;  %4386 = vmatpush1.bf16.msra.mxu0 %v5984_v13 }
 0x6bd   :  { %4305 = vmatprep.subr.bf16.mxu1 %v5989_v14  ;;  %4387 = vmatprep.subr.bf16.mxu0 %v5992_v17 }
 0x6c0   :  { %4306 = vmatpush1.bf16.msra.mxu1 %v5987_v19  ;;  %4388 = vmatpush1.bf16.msra.mxu0 %v5990_v20 }
 0x6c1   :  { %4307 = vmatprep.subr.bf16.mxu1 %v5995_v21  ;;  %4389 = vmatprep.subr.bf16.mxu0 %v5998_v22 }
 0x6c4   :  { %4308 = vmatpush1.bf16.msra.mxu1 %v5993_v23  ;;  %4390 = vmatpush1.bf16.msra.mxu0 %v5996_v8 }
 0x6c5   :  { %4309 = vmatprep.subr.bf16.mxu1 %v6001_v24  ;;  %4391 = vmatprep.subr.bf16.mxu0 %v6004_v25  ;;  %v6053_v25 = vld [vmem:[#allocation11 + $0x300] ss:$24 sps:$4 sm:$0xff]  }
 0x6c8   :  { %4310 = vmatpush1.bf16.msra.mxu1 %v5999_v27  ;;  %4392 = vmatpush1.bf16.msra.mxu0 %v6002_v28  ;;  %v6056_v27 = vld [vmem:[#allocation11 + $0x308] ss:$24 sps:$4 sm:$0xff]  }
 0x6c9   :  { %4311 = vmatprep.subr.bf16.mxu1 %v6007_v29  ;;  %4393 = vmatprep.subr.bf16.mxu0 %v6010_v30  ;;  %v6061_v29 = vld [vmem:[#allocation11 + $0x334] ss:$24 sps:$4 sm:$0xff]  }
 0x6ca   :  { %v6064_v30 = vld [vmem:[#allocation11 + $0x33c] ss:$24 sps:$4 sm:$0xff]  }
 0x6cc   :  { %4312 = vmatpush1.bf16.msra.mxu1 %v6005_v31  ;;  %4394 = vmatpush1.bf16.msra.mxu0 %v6008_v32  ;;  %v6059_v32 = vld [vmem:[#allocation11 + $0x330] ss:$24 sps:$4 sm:$0xff]  }
 0x6cd   :  { %4313 = vmatprep.subr.bf16.mxu1 %v6013_v33  ;;  %4395 = vmatprep.subr.bf16.mxu0 %v6016_v34  ;;  %v6062_v33 = vld [vmem:[#allocation11 + $0x338] ss:$24 sps:$4 sm:$0xff]   ;;  %v6067_v34 = vld [vmem:[#allocation11 + $0x364] ss:$24 sps:$4 sm:$0xff]  }
 0x6d0   :  { %4314 = vmatpush1.bf16.msra.mxu1 %v6011_v35  ;;  %4396 = vmatpush1.bf16.msra.mxu0 %v6014_v36  ;;  %v6070_v35 = vld [vmem:[#allocation11 + $0x36c] ss:$24 sps:$4 sm:$0xff]   ;;  %v6065_v36 = vld [vmem:[#allocation11 + $0x360] ss:$24 sps:$4 sm:$0xff]  }
 0x6d1   :  { %4315 = vmatprep.subr.bf16.mxu1 %v6019_v37  ;;  %4397 = vmatprep.subr.bf16.mxu0 %v6022_v38  ;;  %v6068_v37 = vld [vmem:[#allocation11 + $0x368] ss:$24 sps:$4 sm:$0xff]   ;;  %v6073_v38 = vld [vmem:[#allocation11 + $0x394] ss:$24 sps:$4 sm:$0xff]  }
 0x6d4   :  { %4316 = vmatpush1.bf16.msra.mxu1 %v6017_v39  ;;  %4398 = vmatpush1.bf16.msra.mxu0 %v6020_v40  ;;  %v6076_v39 = vld [vmem:[#allocation11 + $0x39c] ss:$24 sps:$4 sm:$0xff]   ;;  %v6071_v40 = vld [vmem:[#allocation11 + $0x390] ss:$24 sps:$4 sm:$0xff]  }
 0x6d5   :  { %4317 = vmatprep.subr.bf16.mxu1 %v6025_v41  ;;  %4399 = vmatprep.subr.bf16.mxu0 %v6028_v42  ;;  %v6074_v41 = vld [vmem:[#allocation11 + $0x398] ss:$24 sps:$4 sm:$0xff]   ;;  %v6079_v42 = vld [vmem:[#allocation11 + $0x3c4] ss:$24 sps:$4 sm:$0xff]  }
 0x6d8   :  { %4318 = vmatpush1.bf16.msra.mxu1 %v6023_v4  ;;  %4400 = vmatpush1.bf16.msra.mxu0 %v6026_v43  ;;  %v6082_v4 = vld [vmem:[#allocation11 + $0x3cc] ss:$24 sps:$4 sm:$0xff]   ;;  %v6077_v43 = vld [vmem:[#allocation11 + $0x3c0] ss:$24 sps:$4 sm:$0xff]  }
 0x6d9   :  { %4319 = vmatprep.subr.bf16.mxu1 %v6031_v44  ;;  %4401 = vmatprep.subr.bf16.mxu0 %v6034_v16  ;;  %v6080_v44 = vld [vmem:[#allocation11 + $0x3c8] ss:$24 sps:$4 sm:$0xff]   ;;  %v6085_v16 = vld [vmem:[#allocation11 + $0x3f4] ss:$24 sps:$4 sm:$0xff]  }
 0x6dc   :  { %4320 = vmatpush1.bf16.msra.mxu1 %v6029_v45  ;;  %4402 = vmatpush1.bf16.msra.mxu0 %v6032_v46  ;;  %v6088_v45 = vld [vmem:[#allocation11 + $0x3fc] ss:$24 sps:$4 sm:$0xff]   ;;  %v6083_v46 = vld [vmem:[#allocation11 + $0x3f0] ss:$24 sps:$4 sm:$0xff]  }
 0x6dd   :  { %4321 = vmatprep.subr.bf16.mxu1 %v6037_v47  ;;  %4403 = vmatprep.subr.bf16.mxu0 %v6040_v48  ;;  %v6086_v47 = vld [vmem:[#allocation11 + $0x3f8] ss:$24 sps:$4 sm:$0xff]   ;;  %v6091_v48 = vld [vmem:[#allocation11 + $0x424] ss:$24 sps:$4 sm:$0xff]  }
 0x6e0   :  { %4322 = vmatpush1.bf16.msra.mxu1 %v6035_v49  ;;  %4404 = vmatpush1.bf16.msra.mxu0 %v6038_v50  ;;  %v6094_v49 = vld [vmem:[#allocation11 + $0x42c] ss:$24 sps:$4 sm:$0xff]   ;;  %v6089_v50 = vld [vmem:[#allocation11 + $0x420] ss:$24 sps:$4 sm:$0xff]  }
 0x6e1   :  { %4323 = vmatprep.subr.bf16.mxu1 %v6043_v51  ;;  %4405 = vmatprep.subr.bf16.mxu0 %v6046_v52  ;;  %v6092_v51 = vld [vmem:[#allocation11 + $0x428] ss:$24 sps:$4 sm:$0xff]   ;;  %v6097_v52 = vld [vmem:[#allocation11 + $0x454] ss:$24 sps:$4 sm:$0xff]  }
 0x6e4   :  { %4324 = vmatpush1.bf16.msra.mxu1 %v6041_v53  ;;  %4406 = vmatpush1.bf16.msra.mxu0 %v6044_v54  ;;  %v6100_v53 = vld [vmem:[#allocation11 + $0x45c] ss:$24 sps:$4 sm:$0xff]   ;;  %v6095_v54 = vld [vmem:[#allocation11 + $0x450] ss:$24 sps:$4 sm:$0xff]  }
 0x6e5   :  { %4325 = vmatprep.subr.bf16.mxu1 %v6049_v55  ;;  %4407 = vmatprep.subr.bf16.mxu0 %v6052_v57  ;;  %v6098_v55 = vld [vmem:[#allocation11 + $0x458] ss:$24 sps:$4 sm:$0xff]   ;;  %v6103_v57 = vld [vmem:[#allocation11 + $0x484] ss:$24 sps:$4 sm:$0xff]  }
 0x6e8   :  { %4326 = vmatpush1.bf16.msra.mxu1 %v6047_v59  ;;  %4408 = vmatpush1.bf16.msra.mxu0 %v6050_v60  ;;  %v6106_v59 = vld [vmem:[#allocation11 + $0x48c] ss:$24 sps:$4 sm:$0xff]   ;;  %v6101_v60 = vld [vmem:[#allocation11 + $0x480] ss:$24 sps:$4 sm:$0xff]  }
 0x6e9   :  { %4336 = vmatprep.subr.bf16.mxu1 %v6055_v61  ;;  %4418 = vmatprep.subr.bf16.mxu0 %v6058_v62  ;;  %v6104_v61 = vld [vmem:[#allocation11 + $0x488] ss:$24 sps:$4 sm:$0xff]   ;;  %v6109_v62 = vld [vmem:[#allocation11 + $0x4b4] ss:$24 sps:$4 sm:$0xff]  }
 0x77e   :  { %v3055_v5 = vpop.f32.mrb[20].mxu1  ;;  %v6835_v9 = vpop.f32.mrb[12].mxu0 }
 0x77f   :  { %v3056_v10 = vadd.f32 %v3055_v5, %v2684_v0  ;;  %v3057_v26 = vpop.f32.mrb[21].mxu1  ;;  %v3098_v11 = vpop.f32.mrb[13].mxu0  ;;  %v6112_v0 = vld [vmem:[#allocation11 + $0x4bc] ss:$24 sps:$4 sm:$0xff]  }
 0x780   :  { %v3058_v13 = vadd.f32 %v3057_v26, %v2688_v2  ;;  %v3099_v14 = vadd.f32 %v3098_v11, %v2696_v3  ;;  %v3059_v17 = vpop.f32.mrb[22].mxu1  ;;  %v3100_v19 = vpop.f32.mrb[14].mxu0  ;;  %v6107_v2 = vld [vmem:[#allocation11 + $0x4b0] ss:$24 sps:$4 sm:$0xff]   ;;  %v6115_v5 = vld [vmem:[#allocation11 + $0x4e4] ss:$24 sps:$4 sm:$0xff]  }
 0x781   :  { %v3103_v20 = vmax.f32 %v3056_v10, 0.0  ;;  %v3060_v21 = vpop.f32.mrb[23].mxu1  ;;  %v3101_v22 = vpop.f32.mrb[15].mxu0  ;;  %v6110_v3 = vld [vmem:[#allocation11 + $0x4b8] ss:$24 sps:$4 sm:$0xff]  }
 0x782   :  { %v3104_v23 = vmax.f32 %v3058_v13, 0.0  ;;  %v3106_v8 = vmax.f32 %v3099_v14, 0.0  ;;  %v6118_v10 = vld [vmem:[#allocation11 + $0x4ec] ss:$24 sps:$4 sm:$0xff]   ;;  %v6113_v26 = vld [vmem:[#allocation11 + $0x4e0] ss:$24 sps:$4 sm:$0xff]  }
 0x783   :  { %v6839_v28 = vpack.c.bf16 %v3103_v20, %v3103_v20  ;;  %v6116_v11 = vld [vmem:[#allocation11 + $0x4e8] ss:$24 sps:$4 sm:$0xff]   ;;  %v6121_v13 = vld [vmem:[#allocation11 + $0x514] ss:$24 sps:$4 sm:$0xff]   ;;  %v6122_v19 = vld [vmem:[#allocation11 + $0x518] ss:$24 sps:$4 sm:$0xff]  }
 0x784   :  { %v6837_v24 = vpack.c.bf16 %v3104_v23, %v3104_v23  ;;  %v6843_v31 = vpack.c.bf16 %v3106_v8, %v3106_v8  ;;  %v6124_v14 = vld [vmem:[#allocation11 + $0x51c] ss:$24 sps:$4 sm:$0xff]   ;;  %v6119_v17 = vld [vmem:[#allocation11 + $0x510] ss:$24 sps:$4 sm:$0xff]   ;;  %v6130_v21 = vld [vmem:[#allocation11 + $0x54c] ss:$24 sps:$4 sm:$0xff]  }
 0x785   :  { %v6127_v20 = vld [vmem:[#allocation11 + $0x544] ss:$24 sps:$4 sm:$0xff]   ;;  %v6125_v22 = vld [vmem:[#allocation11 + $0x540] ss:$24 sps:$4 sm:$0xff]   ;;  %v6133_v8 = vld [vmem:[#allocation11 + $0x574] ss:$24 sps:$4 sm:$0xff]  }
 0x786   :  { %4327 = vmatprep.mubr.bf16.mxu1 %v6837_v24  ;;  %4409 = vmatprep.mubr.bf16.mxu0 %v6837_v24  ;;  %v6128_v23 = vld [vmem:[#allocation11 + $0x548] ss:$24 sps:$4 sm:$0xff]  }
 0x787   :  { %4328 = vmatmul.mubr.bf16.vlgmr.msra.gmra.mrb[24].mxu1 %v6839_v28  ;;  %4410 = vmatmul.mubr.bf16.vlgmr.msra.gmra.mrb[16].mxu0 %v6839_v28 }
 0x788   :  { %4337 = vmatpush1.bf16.msra.mxu1 %v6053_v25  ;;  %4419 = vmatpush1.bf16.msra.mxu0 %v6056_v27  ;;  %v6136_v25 = vld [vmem:[#allocation11 + $0x57c] ss:$24 sps:$4 sm:$0xff]   ;;  %v6131_v27 = vld [vmem:[#allocation11 + $0x570] ss:$24 sps:$4 sm:$0xff]  }
 0x789   :  { %4368 = vmatprep.mubr.bf16.mxu1 %v6843_v31  ;;  %4450 = vmatprep.mubr.bf16.mxu0 %v6843_v31 }
 0x78a   :  { %4338 = vmatprep.subr.bf16.mxu1 %v6061_v29  ;;  %4420 = vmatprep.subr.bf16.mxu0 %v6064_v30  ;;  %v6134_v29 = vld [vmem:[#allocation11 + $0x578] ss:$24 sps:$4 sm:$0xff]   ;;  %v2692_v30 = vrot.slane %v6827_v63, %v6749_v56  ;;  %v6151_v63 = vld [vmem:[#allocation11 + $0x14] ss:$24 sps:$4 sm:$0xff]  }
 0x78c   :  { %4339 = vmatpush1.bf16.msra.mxu1 %v6059_v32  ;;  %4421 = vmatpush1.bf16.msra.mxu0 %v6062_v33  ;;  %v6139_v32 = vld [vmem:[#allocation11 + $0x5a4] ss:$24 sps:$4 sm:$0xff]  }
 0x78d   :  { %4340 = vmatprep.subr.bf16.mxu1 %v6067_v34  ;;  %4422 = vmatprep.subr.bf16.mxu0 %v6070_v35  ;;  %v6142_v33 = vld [vmem:[#allocation11 + $0x5ac] ss:$24 sps:$4 sm:$0xff]   ;;  %v6137_v34 = vld [vmem:[#allocation11 + $0x5a0] ss:$24 sps:$4 sm:$0xff]  }
 0x78e   :  { %v6140_v35 = vld [vmem:[#allocation11 + $0x5a8] ss:$24 sps:$4 sm:$0xff]  }
 0x790   :  { %4341 = vmatpush1.bf16.msra.mxu1 %v6065_v36  ;;  %4423 = vmatpush1.bf16.msra.mxu0 %v6068_v37  ;;  %v3097_v36 = vadd.f32 %v6835_v9, %v2692_v30  ;;  %v6145_v37 = vld [vmem:[#allocation11 + $0x5d4] ss:$24 sps:$4 sm:$0xff]   ;;  %v6152_v9 = vld [vmem:[#allocation11 + $0x40] ss:$24 sps:$4 sm:$0xff]   ;;  %v6214_v30 = vld [vmem:[#allocation11 + $0x404] ss:$24 sps:$4 sm:$0xff]  }
 0x791   :  { %4342 = vmatprep.subr.bf16.mxu1 %v6073_v38  ;;  %4424 = vmatprep.subr.bf16.mxu0 %v6076_v39  ;;  %v6148_v38 = vld [vmem:[#allocation11 + $0x5dc] ss:$24 sps:$4 sm:$0xff]   ;;  %v6143_v39 = vld [vmem:[#allocation11 + $0x5d0] ss:$24 sps:$4 sm:$0xff]  }
 0x794   :  { %4343 = vmatpush1.bf16.msra.mxu1 %v6071_v40  ;;  %4425 = vmatpush1.bf16.msra.mxu0 %v6074_v41  ;;  %v6146_v40 = vld [vmem:[#allocation11 + $0x5d8] ss:$24 sps:$4 sm:$0xff]   ;;  %v3105_v41 = vmax.f32 %v3097_v36, 0.0 }
 0x795   :  { %4344 = vmatprep.subr.bf16.mxu1 %v6079_v42  ;;  %4426 = vmatprep.subr.bf16.mxu0 %v6082_v4  ;;  %v6149_v42 = vld [vmem:[#allocation11 + $0x10] ss:$24 sps:$4 sm:$0xff]  }
 0x796   :  { %v6852_v4 = vpack.c.bf16 %v3105_v41, %v3105_v41  ;;  %v6221_v36 = vld [vmem:[#allocation11 + $0x490] ss:$24 sps:$4 sm:$0xff]   ;;  %v6232_v41 = vld [vmem:[#allocation11 + $0x524] ss:$24 sps:$4 sm:$0xff]  }
 0x798   :  { %4345 = vmatpush1.bf16.msra.mxu1 %v6077_v43  ;;  %4427 = vmatpush1.bf16.msra.mxu0 %v6080_v44  ;;  %v6154_v43 = vld [vmem:[#allocation11 + $0x44] ss:$24 sps:$4 sm:$0xff]   ;;  %v6157_v44 = vld [vmem:[#allocation11 + $0x74] ss:$24 sps:$4 sm:$0xff]  }
 0x799   :  { %4346 = vmatprep.subr.bf16.mxu1 %v6085_v16  ;;  %4428 = vmatprep.subr.bf16.mxu0 %v6088_v45  ;;  %v6155_v16 = vld [vmem:[#allocation11 + $0x70] ss:$24 sps:$4 sm:$0xff]   ;;  %v6160_v45 = vld [vmem:[#allocation11 + $0xa4] ss:$24 sps:$4 sm:$0xff]  }
 0x79c   :  { %4347 = vmatpush1.bf16.msra.mxu1 %v6083_v46  ;;  %4429 = vmatpush1.bf16.msra.mxu0 %v6086_v47  ;;  %v6158_v46 = vld [vmem:[#allocation11 + $0xa0] ss:$24 sps:$4 sm:$0xff]   ;;  %v6163_v47 = vld [vmem:[#allocation11 + $0xd4] ss:$24 sps:$4 sm:$0xff]  }
 0x79d   :  { %4348 = vmatprep.subr.bf16.mxu1 %v6091_v48  ;;  %4430 = vmatprep.subr.bf16.mxu0 %v6094_v49  ;;  %v6161_v48 = vld [vmem:[#allocation11 + $0xd0] ss:$24 sps:$4 sm:$0xff]   ;;  %v6166_v49 = vld [vmem:[#allocation11 + $0x104] ss:$24 sps:$4 sm:$0xff]  }
 0x7a0   :  { %4349 = vmatpush1.bf16.msra.mxu1 %v6089_v50  ;;  %4431 = vmatpush1.bf16.msra.mxu0 %v6092_v51  ;;  %v6164_v50 = vld [vmem:[#allocation11 + $0x100] ss:$24 sps:$4 sm:$0xff]   ;;  %v6169_v51 = vld [vmem:[#allocation11 + $0x134] ss:$24 sps:$4 sm:$0xff]  }
 0x7a1   :  { %4350 = vmatprep.subr.bf16.mxu1 %v6097_v52  ;;  %4432 = vmatprep.subr.bf16.mxu0 %v6100_v53  ;;  %v6172_v52 = vld [vmem:[#allocation11 + $0x164] ss:$24 sps:$4 sm:$0xff]   ;;  %v6170_v53 = vld [vmem:[#allocation11 + $0x160] ss:$24 sps:$4 sm:$0xff]  }
 0x7a4   :  { %4351 = vmatpush1.bf16.msra.mxu1 %v6095_v54  ;;  %4433 = vmatpush1.bf16.msra.mxu0 %v6098_v55  ;;  %v6175_v54 = vld [vmem:[#allocation11 + $0x194] ss:$24 sps:$4 sm:$0xff]   ;;  %v6173_v55 = vld [vmem:[#allocation11 + $0x190] ss:$24 sps:$4 sm:$0xff]  }
 0x7a5   :  { %4352 = vmatprep.subr.bf16.mxu1 %v6103_v57  ;;  %4434 = vmatprep.subr.bf16.mxu0 %v6106_v59  ;;  %v6178_v57 = vld [vmem:[#allocation11 + $0x1c4] ss:$24 sps:$4 sm:$0xff]   ;;  %v6176_v59 = vld [vmem:[#allocation11 + $0x1c0] ss:$24 sps:$4 sm:$0xff]  }
 0x7a8   :  { %4353 = vmatpush1.bf16.msra.mxu1 %v6101_v60  ;;  %4435 = vmatpush1.bf16.msra.mxu0 %v6104_v61  ;;  %v6181_v60 = vld [vmem:[#allocation11 + $0x1f4] ss:$24 sps:$4 sm:$0xff]   ;;  %v6179_v61 = vld [vmem:[#allocation11 + $0x1f0] ss:$24 sps:$4 sm:$0xff]  }
 0x7a9   :  { %4354 = vmatprep.subr.bf16.mxu1 %v6109_v62  ;;  %4436 = vmatprep.subr.bf16.mxu0 %v6112_v0  ;;  %v6184_v62 = vld [vmem:[#allocation11 + $0x224] ss:$24 sps:$4 sm:$0xff]   ;;  %v6182_v0 = vld [vmem:[#allocation11 + $0x220] ss:$24 sps:$4 sm:$0xff]  }
 0x7ac   :  { %4355 = vmatpush1.bf16.msra.mxu1 %v6107_v2  ;;  %4437 = vmatpush1.bf16.msra.mxu0 %v6110_v3  ;;  %v6187_v2 = vld [vmem:[#allocation11 + $0x254] ss:$24 sps:$4 sm:$0xff]   ;;  %v6185_v3 = vld [vmem:[#allocation11 + $0x250] ss:$24 sps:$4 sm:$0xff]  }
 0x7ad   :  { %4356 = vmatprep.subr.bf16.mxu1 %v6115_v5  ;;  %4438 = vmatprep.subr.bf16.mxu0 %v6118_v10  ;;  %v6190_v5 = vld [vmem:[#allocation11 + $0x284] ss:$24 sps:$4 sm:$0xff]   ;;  %v6188_v10 = vld [vmem:[#allocation11 + $0x280] ss:$24 sps:$4 sm:$0xff]  }
 0x7b0   :  { %4357 = vmatpush1.bf16.msra.mxu1 %v6113_v26  ;;  %4439 = vmatpush1.bf16.msra.mxu0 %v6116_v11  ;;  %v6193_v26 = vld [vmem:[#allocation11 + $0x2b4] ss:$24 sps:$4 sm:$0xff]   ;;  %v6191_v11 = vld [vmem:[#allocation11 + $0x2b0] ss:$24 sps:$4 sm:$0xff]  }
 0x7b1   :  { %4358 = vmatprep.subr.bf16.mxu1 %v6121_v13  ;;  %4440 = vmatprep.subr.bf16.mxu0 %v6124_v14  ;;  %v6196_v13 = vld [vmem:[#allocation11 + $0x2e4] ss:$24 sps:$4 sm:$0xff]   ;;  %v6194_v14 = vld [vmem:[#allocation11 + $0x2e0] ss:$24 sps:$4 sm:$0xff]  }
 0x7b4   :  { %4359 = vmatpush1.bf16.msra.mxu1 %v6119_v17  ;;  %4441 = vmatpush1.bf16.msra.mxu0 %v6122_v19  ;;  %v6199_v17 = vld [vmem:[#allocation11 + $0x314] ss:$24 sps:$4 sm:$0xff]   ;;  %v6197_v19 = vld [vmem:[#allocation11 + $0x310] ss:$24 sps:$4 sm:$0xff]  }
 0x7b5   :  { %4360 = vmatprep.subr.bf16.mxu1 %v6127_v20  ;;  %4442 = vmatprep.subr.bf16.mxu0 %v6130_v21  ;;  %v6202_v20 = vld [vmem:[#allocation11 + $0x344] ss:$24 sps:$4 sm:$0xff]   ;;  %v6200_v21 = vld [vmem:[#allocation11 + $0x340] ss:$24 sps:$4 sm:$0xff]  }
 0x7b8   :  { %4361 = vmatpush1.bf16.msra.mxu1 %v6125_v22  ;;  %4443 = vmatpush1.bf16.msra.mxu0 %v6128_v23  ;;  %v6205_v22 = vld [vmem:[#allocation11 + $0x374] ss:$24 sps:$4 sm:$0xff]   ;;  %v6203_v23 = vld [vmem:[#allocation11 + $0x370] ss:$24 sps:$4 sm:$0xff]  }
 0x7b9   :  { %4362 = vmatprep.subr.bf16.mxu1 %v6133_v8  ;;  %4444 = vmatprep.subr.bf16.mxu0 %v6136_v25  ;;  %v6208_v8 = vld [vmem:[#allocation11 + $0x3a4] ss:$24 sps:$4 sm:$0xff]   ;;  %v6206_v25 = vld [vmem:[#allocation11 + $0x3a0] ss:$24 sps:$4 sm:$0xff]  }
 0x7bc   :  { %4363 = vmatpush1.bf16.msra.mxu1 %v6131_v27  ;;  %4445 = vmatpush1.bf16.msra.mxu0 %v6134_v29  ;;  %v6211_v27 = vld [vmem:[#allocation11 + $0x3d4] ss:$24 sps:$4 sm:$0xff]   ;;  %v6209_v29 = vld [vmem:[#allocation11 + $0x3d0] ss:$24 sps:$4 sm:$0xff]  }
 0x7bd   :  { %4364 = vmatprep.subr.bf16.mxu1 %v6139_v32  ;;  %4446 = vmatprep.subr.bf16.mxu0 %v6142_v33  ;;  %v6217_v32 = vld [vmem:[#allocation11 + $0x434] ss:$24 sps:$4 sm:$0xff]   ;;  %v6220_v33 = vld [vmem:[#allocation11 + $0x464] ss:$24 sps:$4 sm:$0xff]  }
 0x7c0   :  { %4365 = vmatpush1.bf16.msra.mxu1 %v6137_v34  ;;  %4447 = vmatpush1.bf16.msra.mxu0 %v6140_v35  ;;  %v6218_v34 = vld [vmem:[#allocation11 + $0x460] ss:$24 sps:$4 sm:$0xff]   ;;  %v6223_v35 = vld [vmem:[#allocation11 + $0x494] ss:$24 sps:$4 sm:$0xff]  }
 0x7c1   :  { %4366 = vmatprep.subr.bf16.mxu1 %v6145_v37  ;;  %4448 = vmatprep.subr.bf16.mxu0 %v6148_v38  ;;  %v6226_v37 = vld [vmem:[#allocation11 + $0x4c4] ss:$24 sps:$4 sm:$0xff]   ;;  %v6224_v38 = vld [vmem:[#allocation11 + $0x4c0] ss:$24 sps:$4 sm:$0xff]  }
 0x7c4   :  { %4367 = vmatpush1.bf16.msra.mxu1 %v6143_v39  ;;  %4449 = vmatpush1.bf16.msra.mxu0 %v6146_v40  ;;  %v6229_v39 = vld [vmem:[#allocation11 + $0x4f4] ss:$24 sps:$4 sm:$0xff]   ;;  %v6227_v40 = vld [vmem:[#allocation11 + $0x4f0] ss:$24 sps:$4 sm:$0xff]  }
 0x7c5   :  { %4459 = vmatprep.subr.bf16.mxu1 %v6151_v63  ;;  %v6230_v63 = vld [vmem:[#allocation11 + $0x520] ss:$24 sps:$4 sm:$0xff]  }
 0x7c7   :  { %4369 = vmatmul.mubr.bf16.vlgmr.msra.gmra.mrb[24].mxu1 %v6852_v4  ;;  %4451 = vmatmul.mubr.bf16.vlgmr.msra.gmra.mrb[16].mxu0 %v6852_v4 }
 0x7c8   :  { %4460 = vmatpush1.bf16.msra.mxu1 %v6149_v42  ;;  %4491 = vmatprep.mubr.bf16.mxu1 %v6837_v24  ;;  %v6167_v24 = vld [vmem:[#allocation11 + $0x130] ss:$24 sps:$4 sm:$0xff]   ;;  %v6235_v42 = vld [vmem:[#allocation11 + $0x554] ss:$24 sps:$4 sm:$0xff]  }
 0x7c9   :  { %4461 = vmatprep.subr.bf16.mxu1 %v6154_v43  ;;  %v6233_v43 = vld [vmem:[#allocation11 + $0x550] ss:$24 sps:$4 sm:$0xff]  }
 0x7cc   :  { %4462 = vmatpush1.bf16.msra.mxu1 %v6152_v9  ;;  %v6238_v9 = vld [vmem:[#allocation11 + $0x584] ss:$24 sps:$4 sm:$0xff]  }
 0x7cd   :  { %4463 = vmatprep.subr.bf16.mxu1 %v6157_v44  ;;  %v6236_v44 = vld [vmem:[#allocation11 + $0x580] ss:$24 sps:$4 sm:$0xff]  }
 0x7d0   :  { %4464 = vmatpush1.bf16.msra.mxu1 %v6155_v16  ;;  %v6241_v16 = vld [vmem:[#allocation11 + $0x5b4] ss:$24 sps:$4 sm:$0xff]  }
 0x7d1   :  { %4465 = vmatprep.subr.bf16.mxu1 %v6160_v45  ;;  %v6239_v45 = vld [vmem:[#allocation11 + $0x5b0] ss:$24 sps:$4 sm:$0xff]  }
 0x7d4   :  { %4466 = vmatpush1.bf16.msra.mxu1 %v6158_v46  ;;  %v6244_v46 = vld [vmem:[#allocation11 + $0x5e4] ss:$24 sps:$4 sm:$0xff]  }
 0x7d5   :  { %4467 = vmatprep.subr.bf16.mxu1 %v6163_v47  ;;  %v6242_v47 = vld [vmem:[#allocation11 + $0x5e0] ss:$24 sps:$4 sm:$0xff]  }
 0x7d8   :  { %4468 = vmatpush1.bf16.msra.mxu1 %v6161_v48  ;;  %v4612_v48 = vld [vmem:[%s6939_s17] sm:$0x3] }
 0x7d9   :  { %4469 = vmatprep.subr.bf16.mxu1 %v6166_v49  ;;  %v4621_v49 = vsel %vm2416_vm1, %v4612_v48, 0 }
 0x7dc   :  { %4470 = vmatpush1.bf16.msra.mxu1 %v6164_v50  ;;  %v3303_v50 = vld [vmem:[%s6938_s16] sm:$0x3f] }
 0x7dd   :  { %4471 = vmatprep.subr.bf16.mxu1 %v6169_v51  ;;  %v3308_v51 = vrot.slane %v3303_v50, %v6734_v15 }
 0x7e0   :  { %4472 = vmatpush1.bf16.msra.mxu1 %v6167_v24  ;;  %v3316_v24 = vrot.slane %v3303_v50, %v6749_v56 }
 0x7e1   :  { %4473 = vmatprep.subr.bf16.mxu1 %v6172_v52  ;;  %v3312_v52 = vrot.slane %v3303_v50, %v6742_v18 }
 0x7e4   :  { %4474 = vmatpush1.bf16.msra.mxu1 %v6170_v53  ;;  %v3320_v53 = vrot.slane %v3303_v50, %v6752_v58 }
 0x7e5   :  { %4475 = vmatprep.subr.bf16.mxu1 %v6175_v54 }
 0x7e8   :  { %4476 = vmatpush1.bf16.msra.mxu1 %v6173_v55 }
 0x7e9   :  { %4477 = vmatprep.subr.bf16.mxu1 %v6178_v57 }
 0x7ec   :  { %4478 = vmatpush1.bf16.msra.mxu1 %v6176_v59 }
 0x7ed   :  { %4479 = vmatprep.subr.bf16.mxu1 %v6181_v60 }
 0x7f0   :  { %4480 = vmatpush1.bf16.msra.mxu1 %v6179_v61 }
 0x7f1   :  { %4481 = vmatprep.subr.bf16.mxu1 %v6184_v62 }
 0x7f4   :  { %4482 = vmatpush1.bf16.msra.mxu1 %v6182_v0 }
 0x7f5   :  { %4483 = vmatprep.subr.bf16.mxu1 %v6187_v2 }
 0x7f8   :  { %4484 = vmatpush1.bf16.msra.mxu1 %v6185_v3 }
 0x7f9   :  { %4485 = vmatprep.subr.bf16.mxu1 %v6190_v5 }
 0x7fc   :  { %4486 = vmatpush1.bf16.msra.mxu1 %v6188_v10 }
 0x7fd   :  { %4487 = vmatprep.subr.bf16.mxu1 %v6193_v26 }
 0x800   :  { %4488 = vmatpush1.bf16.msra.mxu1 %v6191_v11 }
 0x801   :  { %4489 = vmatprep.subr.bf16.mxu1 %v6196_v13 }
 0x804   :  { %4490 = vmatpush1.bf16.msra.mxu1 %v6194_v14 }
 0x805   :  { %4500 = vmatprep.subr.bf16.mxu1 %v6199_v17 }
 0x807   :  { %4492 = vmatmul.mubr.bf16.vlgmr.msra.gmra.mrb[28].mxu1 %v6839_v28  ;;  %v6212_v28 = vld [vmem:[#allocation11 + $0x400] ss:$24 sps:$4 sm:$0xff]  }
 0x808   :  { %4501 = vmatpush1.bf16.msra.mxu1 %v6197_v19  ;;  %4532 = vmatprep.mubr.bf16.mxu1 %v6843_v31  ;;  %v6215_v31 = vld [vmem:[#allocation11 + $0x430] ss:$24 sps:$4 sm:$0xff]   ;;  %v6483_v19 = vmov 1983009808  }
 0x809   :  { %4502 = vmatprep.subr.bf16.mxu1 %v6202_v20  ;;  %v4586_v20 = vunpack.c.l.s4 %v6483_v19 }
 0x80c   :  { %4503 = vmatpush1.bf16.msra.mxu1 %v6200_v21  ;;  %v4587_v21 = vunpack.c.0.s8 %v4586_v20 }
 0x80d   :  { %4504 = vmatprep.subr.bf16.mxu1 %v6205_v22 }
 0x810   :  { %4505 = vmatpush1.bf16.msra.mxu1 %v6203_v23 }
 0x811   :  { %4506 = vmatprep.subr.bf16.mxu1 %v6208_v8  ;;  %v4590_v8 = vsub.s32 %v4587_v21, %v6677_v12 }
 0x814   :  { %4507 = vmatpush1.bf16.msra.mxu1 %v6206_v25 }
 0x815   :  { %4508 = vmatprep.subr.bf16.mxu1 %v6211_v27 }
 0x818   :  { %4509 = vmatpush1.bf16.msra.mxu1 %v6209_v29 }
 0x819   :  { %4510 = vmatprep.subr.bf16.mxu1 %v6214_v30 }
 0x81c   :  { %4511 = vmatpush1.bf16.msra.mxu1 %v6212_v28 }
 0x81d   :  { %4512 = vmatprep.subr.bf16.mxu1 %v6217_v32 }
 0x820   :  { %4513 = vmatpush1.bf16.msra.mxu1 %v6215_v31 }
 0x821   :  { %4514 = vmatprep.subr.bf16.mxu1 %v6220_v33  ;;  %v3323_v33 = vsub.s32 4, %v6677_v12 }
 0x824   :  { %4515 = vmatpush1.bf16.msra.mxu1 %v6218_v34  ;;  %v3327_v34 = vsub.s32 5, %v6677_v12 }
 0x825   :  { %4516 = vmatprep.subr.bf16.mxu1 %v6223_v35  ;;  %v3324_v35 = vrot.slane %v3303_v50, %v3323_v33 }
 0x828   :  { %4517 = vmatpush1.bf16.msra.mxu1 %v6221_v36  ;;  %v3328_v36 = vrot.slane %v3303_v50, %v3327_v34 }
 0x829   :  { %4518 = vmatprep.subr.bf16.mxu1 %v6226_v37 }
 0x82c   :  { %4519 = vmatpush1.bf16.msra.mxu1 %v6224_v38 }
 0x82d   :  { %4520 = vmatprep.subr.bf16.mxu1 %v6229_v39 }
 0x830   :  { %4521 = vmatpush1.bf16.msra.mxu1 %v6227_v40 }
 0x831   :  { %4522 = vmatprep.subr.bf16.mxu1 %v6232_v41 }
 0x834   :  { %4523 = vmatpush1.bf16.msra.mxu1 %v6230_v63 }
 0x835   :  { %4524 = vmatprep.subr.bf16.mxu1 %v6235_v42 }
 0x838   :  { %4525 = vmatpush1.bf16.msra.mxu1 %v6233_v43  ;;  %v4664_v43 = vand.u32 127, %v344_v7 }
 0x839   :  { %4526 = vmatprep.subr.bf16.mxu1 %v6238_v9 }
 0x83a   :  { %vm4683_vm3 = vcmp.ge.s32.totalorder %v4664_v43, 5  ;;  %vm4684_vm4 = vcmp.lt.s32.totalorder %v4664_v43, 8  ;;  %vm4666_vm5 = vcmp.lt.s32.totalorder %v4664_v43, 5 }
 0x83b   :  { %vm6883_vm7 = vmand %vm4683_vm3, %vm4684_vm4 }
 0x83c   :  { %4527 = vmatpush1.bf16.msra.mxu1 %v6236_v44  ;;  %v5296_v44 = vld [vmem:[%s6940_s18] ss:$0 sm:$0xff]  ;;  %s6484_s18 = smov [#allocation13]  }
 0x83d   :  { %4528 = vmatprep.subr.bf16.mxu1 %v6241_v16  ;;  %s4707_s4 = sshll.u32 %s6484_s18, 4  ;;  %s4708_s4 = int_to_ptr.vmem [resolvable:$true] %s4707_s4 }
 0x83e   :  { %s6409_s0 = scalar_lea.vmem %s4708_s4, 192  ;;  %p6414_p7 = scmp.lt.s32.totalorder %s4708_s4, %s4708_s4 }
 0x83f   :  { %p6410_p6 = scmp.ne.s32.totalorder %s4708_s4, %s6409_s0  ;;  %p6415_p8 = scmp.lt.s32.totalorder %s6409_s0, %s6409_s0 }
 0x840   :  { %4529 = vmatpush1.bf16.msra.mxu1 %v6239_v45 }
 0x841   :  { %4530 = vmatprep.subr.bf16.mxu1 %v6244_v46  ;;  %p6416_p9 = por %p6415_p8, %p6414_p7 }
 0x843   :  { %p6417_p10 = pnand %p6416_p9, %p6410_p6 }
 0x844   :  { %4531 = vmatpush1.bf16.msra.mxu1 %v6242_v47 }
 0x845   :  { %5359 = vmatprep.subr.bf16.mxu1 %v6480_v6 }
 0x847   :  { %4533 = vmatmul.mubr.bf16.vlgmr.msra.gmra.mrb[28].mxu1 %v6852_v4 }
 0x848   :  { %5360 = vmatpush3.bf16.msra.mxu1 %v4621_v49  ;;  %5361 = vmatprep.mubr.msk.bf16.mxu1 %vm6481_vm0, %v6480_v6 }
 0x84f   :  { %5362 = vmatmul.mubr.msk.bf16.vlgmr.msra.gmra.mrb[32].mxu1 %vm2412_vm2, %v6812_v1 }
 0x89a   :  { %v4370_v4 = vpop.f32.mrb[24].mxu1  ;;  %v4452_v54 = vpop.f32.mrb[16].mxu0 }
 0x89b   :  { %v5373_v55 = vadd.f32 %v4370_v4, %v3308_v51  ;;  %v5375_v57 = vadd.f32 %v4452_v54, %v3316_v24  ;;  %v4372_v6 = vpop.f32.mrb[25].mxu1  ;;  %v4454_v59 = vpop.f32.mrb[17].mxu0 }
 0x89c   :  { %v5374_v60 = vadd.f32 %v4372_v6, %v3312_v52  ;;  %v5376_v1 = vadd.f32 %v4454_v59, %v3320_v53  ;;  %v4374_v61 = vpop.f32.mrb[26].mxu1  ;;  %v4456_v62 = vpop.f32.mrb[18].mxu0 }
 0x89d   :  { %v5289_v0 = vmul.f32 -1.442695, %v5373_v55  ;;  %v5291_v2 = vmul.f32 -1.442695, %v5375_v57  ;;  %v4375_v3 = vpop.f32.mrb[27].mxu1  ;;  %v4457_v15 = vpop.f32.mrb[19].mxu0 }
 0x89e   :  { %v5290_v5 = vmul.f32 -1.442695, %v5374_v60  ;;  %v5292_v56 = vmul.f32 -1.442695, %v5376_v1 }
 0x89f   :  { %6245 = vpow2.f32 %v5289_v0 }
 0x8a0   :  { %6247 = vpow2.f32 %v5291_v2 }
 0x8a1   :  { %6249 = vpow2.f32 %v5290_v5 }
 0x8a2   :  { %6251 = vpow2.f32 %v5292_v56 }
 0x8a9   :  { %v6246_v18 = vpop.eup %6245 }
 0x8aa   :  { %v6248_v58 = vpop.eup %6247  ;;  %v4559_v10 = vadd.f32 1.0, %v6246_v18 }
 0x8ab   :  { %v6250_v26 = vpop.eup %6249  ;;  %v4561_v11 = vadd.f32 1.0, %v6248_v58 }
 0x8ac   :  { %v6252_v13 = vpop.eup %6251  ;;  %6253 = vrcp.f32 %v4559_v10  ;;  %v4560_v14 = vadd.f32 1.0, %v6250_v26 }
 0x8ad   :  { %6255 = vrcp.f32 %v4561_v11  ;;  %v4562_v17 = vadd.f32 1.0, %v6252_v13 }
 0x8ae   :  { %6257 = vrcp.f32 %v4560_v14 }
 0x8af   :  { %6259 = vrcp.f32 %v4562_v17 }
 0x8b6   :  { %v6254_v22 = vpop.eup %6253 }
 0x8b7   :  { %v6256_v23 = vpop.eup %6255 }
 0x8b8   :  { %v6258_v25 = vpop.eup %6257 }
 0x8b9   :  { %v6260_v27 = vpop.eup %6259  ;;  %v4583_v29 = vcombine.low %v6254_v22, %v6258_v25 }
 0x8ba   :  { %v4584_v30 = vcombine.low %v6256_v23, %v6260_v27 }
 0x8bb   :  { %v4591_v28 = vrot.slane %v4583_v29, %v4590_v8 }
 0x8bc   :  { %v4598_v32 = vrot.slane %v4584_v30, %v4590_v8 }
 0x8be   :  { %v4599_v31 = vcombine.low %v4591_v28, %v4598_v32 }
 0x8c0   :  { %4610 = vst [vmem:[#allocation13] sm:$0xff] %v4599_v31 }
 0x91a   :  { %v4534_v37 = vpop.f32.mrb[28].mxu1 }
 0x91b   :  { %v5377_v38 = vadd.f32 %v4534_v37, %v3324_v35  ;;  %v4536_v39 = vpop.f32.mrb[29].mxu1 }
 0x91c   :  { %v5378_v40 = vadd.f32 %v4536_v39, %v3328_v36  ;;  %v4538_v41 = vpop.f32.mrb[30].mxu1 }
 0x91d   :  { %v5293_v63 = vmul.f32 -1.442695, %v5377_v38  ;;  %v4539_v42 = vpop.f32.mrb[31].mxu1 }
 0x91e   :  { %v5294_v9 = vmul.f32 -1.442695, %v5378_v40 }
 0x91f   :  { %6261 = vpow2.f32 %v5293_v63 }
 0x920   :  { %6263 = vpow2.f32 %v5294_v9 }
 0x922   :  { %v4657_v12 = vpop.f32.mrb[32].mxu1 }
 0x923   :  { %v4658_v16 = vadd.f32 %v5296_v44, %v4657_v12  ;;  %v5363_v45 = vpop.f32.mrb[33].mxu1 }
 0x924   :  { %v4660_v46 = vpop.f32.mrb[34].mxu1 }
 0x925   :  { %v5364_v7 = vpop.f32.mrb[35].mxu1  ;;  %v4668_v48 = vsel %vm4666_vm5, %v4658_v16, -inf  ;;  %v4686_v50 = vsel %vm6883_vm7, %v4658_v16, -inf }
 0x926   :  { %v4670_v49 = vsel %vm4669_vm6, %v4668_v48, -inf  ;;  %v4687_v53 = vsel %vm4669_vm6, %v4686_v50, -inf }
 0x927   :  { %4671 = vmax.xlane.f32.xlu0 %v4670_v49 }
 0x929   :  { %v6262_v51 = vpop.eup %6261 }
 0x92a   :  { %v6264_v24 = vpop.eup %6263  ;;  %v4563_v52 = vadd.f32 1.0, %v6262_v51 }
 0x92b   :  { %v4564_v4 = vadd.f32 1.0, %v6264_v24  ;;  %4688 = vmax.xlane.f32.xlu0 %v4687_v53 }
 0x92c   :  { %6265 = vrcp.f32 %v4563_v52 }
 0x92d   :  { %6267 = vrcp.f32 %v4564_v4 }
 0x936   :  { %v6266_v54 = vpop.eup %6265 }
 0x937   :  { %v6268_v55 = vpop.eup %6267 }
 0x938   :  { %v4600_v57 = vcombine.low %v6266_v54, %v6268_v55 }
 0x93a   :  { %5295 = vst.sshfl [vmem:[#allocation13 + $0x8] sm:$0x33 pattern:$0x76325410] %v4600_v57 }
 0x9b4   :  { %v4672_v6 = vpop.xlane.xlu0 %4671 }
 0x9b5   :  { %v4673_v59 = vsub.f32 %v4658_v16, %v4672_v6 }
 0x9b7   :  { %v4674_v60 = vsel %vm4666_vm5, %v4673_v59, -inf }
 0x9b8   :  { %v4675_v1 = vmul.f32 1.442695, %v4674_v60  ;;  %v4689_v61 = vpop.xlane.xlu0 %4688 }
 0x9b9   :  { %v4690_v62 = vsub.f32 %v4658_v16, %v4689_v61 }
 0x9ba   :  { %6269 = vpow2.f32 %v4675_v1 }
 0x9bb   :  { %v4691_v0 = vsel %vm6883_vm7, %v4690_v62, -inf }
 0x9bc   :  { %v4692_v2 = vmul.f32 1.442695, %v4691_v0 }
 0x9be   :  { %6271 = vpow2.f32 %v4692_v2 }
 0x9c4   :  { %v6270_v3 = vpop.eup %6269 }
 0x9c5   :  { %v4677_v15 = vsel %vm4669_vm6, %v6270_v3, 0.0 }
 0x9c6   :  { %4678 = vadd.xlane.f32.xlu1 %v4677_v15 }
 0x9c8   :  { %v6272_v5 = vpop.eup %6271 }
 0x9c9   :  { %v4694_v56 = vsel %vm4669_vm6, %v6272_v5, 0.0 }
 0x9ca   :  { %4695 = vadd.xlane.f32.xlu1 %v4694_v56 }
 0x9cb   :  { %6420 = shalt.err (!%p6417_p10)
}
 0x9cc   :  { %s6961_s13 = sld [smem:[#allocation27_spill]] }
 0x9d2   :  { %s6421_s11 = scalar_lea.hbm %s6961_s13, 192 }
 0x9d3   :  { %p6422_p11 = scmp.ne.s32.totalorder %s6961_s13, %s6421_s11  ;;  %p6425_p12 = scmp.lt.u32.totalorder %s6421_s11, %s6961_s13 }
 0x9d5   :  { %p6427_p13 = pnand %p6425_p12, %p6422_p11 }
 0x9d7   :  { %6430 = shalt.err (!%p6427_p13)
}
 0x9d8   :  { %4710 = dma.vmem_to_hbm [thread:$0]  %s4708_s4, 192, %s6961_s13, [#allocation4]  }
 0x9d9   :  { %s6485_s20 = smov [#allocation14]  }
 0x9da   :  { %s4717_s26 = sshll.u32 %s6485_s20, 4  ;;  %s4718_s26 = int_to_ptr.vmem [resolvable:$true] %s4717_s26 }
 0x9db   :  { %s6431_s7 = scalar_lea.vmem %s4718_s26, 32  ;;  %p6436_p1 = scmp.lt.s32.totalorder %s4718_s26, %s4718_s26 }
 0x9dc   :  { %p6432_p0 = scmp.ne.s32.totalorder %s4718_s26, %s6431_s7  ;;  %p6437_p2 = scmp.lt.s32.totalorder %s6431_s7, %s6431_s7 }
 0x9de   :  { %p6438_p3 = por %p6437_p2, %p6436_p1 }
 0x9e0   :  { %p6439_p4 = pnand %p6438_p3, %p6432_p0 }
 0xa53   :  { %v4679_v18 = vpop.xlane.xlu1 %4678 }
 0xa54   :  { %6273 = vrcp.f32 %v4679_v18 }
 0xa57   :  { %v4696_v58 = vpop.xlane.xlu1 %4695 }
 0xa58   :  { %6275 = vrcp.f32 %v4696_v58 }
 0xa5e   :  { %v6274_v10 = vpop.eup %6273 }
 0xa5f   :  { %v4681_v11 = vmul.f32 %v6274_v10, %v6270_v3 }
 0xa62   :  { %v6276_v26 = vpop.eup %6275 }
 0xa63   :  { %v4698_v13 = vmul.f32 %v6276_v26, %v6272_v5 }
 0xa65   :  { %v4699_v14 = vadd.f32 %v4698_v13, %v4681_v11 }
 0xa67   :  { %4700 = vst.msk [vmem:[#allocation14] sm:$0x3] %vm4669_vm6, %v4699_v14 }
 0xa68   :  { %6442 = shalt.err (!%p6439_p4)
}
 0xa69   :  { %s6962_s22 = sld [smem:[#allocation28_spill]] }
 0xa6f   :  { %s6443_s8 = scalar_lea.hbm %s6962_s22, 32 }
 0xa70   :  { %p6444_p5 = scmp.ne.s32.totalorder %s6962_s22, %s6443_s8  ;;  %p6447_p6 = scmp.lt.u32.totalorder %s6443_s8, %s6962_s22 }
 0xa72   :  { %p6449_p7 = pnand %p6447_p6, %p6444_p5 }
 0xa74   :  { %6452 = shalt.err (!%p6449_p7)
}
 0xa75   :  { %4720 = dma.vmem_to_hbm [thread:$0]  %s4718_s26, 32, %s6962_s22, [#allocation15]  }
 0xa76   :  { %6461 = dma.done.wait [#allocation4], 192  }
 0xa77   :  { %6462 = vsyncadd [#allocation4], 4294967104 }
 0xa78   :  { %6463 = dma.done.wait [#allocation15], 32  }
 0xa79   :  { %6464 = vsyncadd [#allocation15], 4294967264 }
 0xa7a   :  { %4727 = vsyncpa [#allocation3], 1 }
 0xa7b   :  { %4728 = vsyncpa [#allocation6], 1 }
 0xa7c   :  { %4729 = vsyncpa [#allocation9], 1 }
 0xa7d   :  { %4730 = vsyncpa [#allocation12], 1 }
 0xa7e   :  { %4731 = vsyncpa [#allocation4], 1 }
 0xa7f   :  { %4732 = vsyncpa [#allocation15], 1 }

</bundles_post_ra>
